<compile_context>
chip_gen: v7x
topology: tpu7x:2x2x1
jax: 0.10.0
libtpu: 0.0.40
codegen_flags: <defaults>
</compile_context>

<pallas_src>
import math
import numpy as np
import jax
import jax.numpy as jnp
from jax.experimental import pallas as pl
from jax.experimental.pallas import tpu as pltpu  # noqa: F401  (TPU backend assumed)

# ---- small, module-consistent hyperparameters -------------------------------
NUM_STOCKS = 4         # S
MARKET_FEATURES = 16   # F
HIDDEN_DIM = 64        # H  (module default is 128; kept small)
EMBED = HIDDEN_DIM // 2   # E = hidden_dim // 2 (attention embed dim / encoded state)
NUM_HEADS = 4
HEAD_DIM = EMBED // NUM_HEADS
ACTION_SPACE = 3       # A
BATCH = 8              # B

S, F, H, E, A, B = NUM_STOCKS, MARKET_FEATURES, HIDDEN_DIM, EMBED, ACTION_SPACE, BATCH
HD = HEAD_DIM


# ------------------------------ fused kernel ----------------------------------
def fused_dqn_kernel(x_ref,                                       # [B, S*F]
                     ew1_ref, eb1_ref, ew2_ref, eb2_ref,          # per-stock encoders
                     wqkv_ref, bqkv_ref, wo_ref, bo_ref, wp_ref, bp_ref,   # attention
                     rel_ref, we1_ref, be1_ref, we2_ref, be2_ref,          # relationships
                     wh1_ref, bh1_ref, wh2_ref, bh2_ref,                   # Q heads
                     out_ref):                                    # [B, S*A]
    f32 = jnp.float32
    x_all = x_ref[...]                                            # [B, S*F]

    # ---- Stage A: per-stock MLP encoders (unrolled over S, static weight slices) ----
    encs = []
    for i in range(S):
        xi = x_all[:, i * F:(i + 1) * F]                          # [B, F]  lane slice
        h = jnp.maximum(
            jnp.dot(xi, ew1_ref[i], preferred_element_type=f32) + eb1_ref[i], 0.0)
        e = jnp.maximum(
            jnp.dot(h, ew2_ref[i], preferred_element_type=f32) + eb2_ref[i], 0.0)
        encs.append(e)                                            # [B, E]
    x3 = jnp.stack(encs, axis=1)                                  # [B, S, E]

    # ---- Stage B: multi-head self-attention over stocks + output projection ----
    x2 = x3.reshape(B * S, E)                                     # [B*S, E]
    qkv = jnp.dot(x2, wqkv_ref[...], preferred_element_type=f32) + bqkv_ref[...]
    qkv3 = qkv.reshape(B, S, 3 * E)                               # [B, S, 3E]
    scale = 1.0 / math.sqrt(HD)
    heads = []
    for hx in range(NUM_HEADS):
        qh = qkv3[:, :, hx * HD:(hx + 1) * HD]                    # [B, S, HD]
        kh = qkv3[:, :, E + hx * HD:E + (hx + 1) * HD]
        vh = qkv3[:, :, 2 * E + hx * HD:2 * E + (hx + 1) * HD]
        sc = jnp.einsum('bqd,bkd->bqk', qh, kh, preferred_element_type=f32) * scale
        sc = sc - jnp.max(sc, axis=-1, keepdims=True)
        pr = jnp.exp(sc)
        pr = pr * pl.reciprocal(jnp.sum(pr, axis=-1, keepdims=True), approx=True)
        heads.append(jnp.einsum('bqk,bkd->bqd', pr, vh, preferred_element_type=f32))
    attn2 = jnp.concatenate(heads, axis=-1).reshape(B * S, E)     # [B*S, E]
    o2 = jnp.dot(attn2, wo_ref[...], preferred_element_type=f32) + bo_ref[...]
    p2 = jnp.maximum(jnp.dot(o2, wp_ref[...], preferred_element_type=f32) + bp_ref[...], 0.0)
    enc3 = p2.reshape(B, S, E)                                    # encoded states [B, S, E]

    # ---- Stage C: cross-stock relationships (hoisted) + per-stock Q heads ----
    relf = rel_ref[...]                                           # [S*S, E]
    rh = jnp.maximum(
        jnp.dot(relf, we1_ref[...], preferred_element_type=f32) + be1_ref[...], 0.0)
    rel_enc = (jnp.dot(rh, we2_ref[...], preferred_element_type=f32)
               + be2_ref[...]).reshape(S, S, E)                   # [S, S, E]
    ii = jax.lax.broadcasted_iota(jnp.int32, (S, S, 1), 0)
    jj = jax.lax.broadcasted_iota(jnp.int32, (S, S, 1), 1)
    rel_enc = jnp.where(ii == jj, 0.0, rel_enc)                   # skip j == i

    q_parts = []
    for i in range(S):
        infl = jnp.sum(enc3 * rel_enc[i][None, :, :], axis=1)     # [B, E]
        enc_i = enc3[:, i, :]                                     # [B, E]
        w1 = wh1_ref[i]                                           # [2E, H] == [H, H]
        hh = jnp.maximum(
            jnp.dot(enc_i, w1[:E, :], preferred_element_type=f32)
            + jnp.dot(infl, w1[E:, :], preferred_element_type=f32)
            + bh1_ref[i], 0.0)
        q_parts.append(jnp.dot(hh, wh2_ref[i], preferred_element_type=f32) + bh2_ref[i])
    out_ref[...] = jnp.concatenate(q_parts, axis=-1)              # [B, S*A] lane-dense


# ------------------------------ wrapper ---------------------------------------
def prepare_kernel_params(p):
    """One-time host-side weight packing: fuse QKV weights, flatten relationship matrix."""
    return dict(
        ew1=p['enc_w1'], eb1=p['enc_b1'], ew2=p['enc_w2'], eb2=p['enc_b2'],
        wqkv=jnp.concatenate([p['wq'], p['wk'], p['wv']], axis=1),   # [E, 3E]
        bqkv=jnp.concatenate([p['bq'], p['bk'], p['bv']], axis=1),   # [1, 3E]
        wo=p['wo'], bo=p['bo'], wp=p['wp'], bp=p['bp'],
        rel=p['rel'].reshape(S * S, E),                              # [S*S, E]
        we1=p['we1'], be1=p['be1'], we2=p['we2'], be2=p['be2'],
        wh1=p['wh1'], bh1=p['bh1'], wh2=p['wh2'], bh2=p['bh2'],
    )


@jax.jit
def dq_forward(kp, states):
    # [B, S, F] -> [B, S*F] is a free row-major reshape (no transpose, no copy).
    states_flat = states.reshape(B, S * F)
    q_flat = pl.pallas_call(
        fused_dqn_kernel,
        out_shape=jax.ShapeDtypeStruct((B, S * A), jnp.float32),
    )(states_flat,
      kp['ew1'], kp['eb1'], kp['ew2'], kp['eb2'],
      kp['wqkv'], kp['bqkv'], kp['wo'], kp['bo'], kp['wp'], kp['bp'],
      kp['rel'], kp['we1'], kp['be1'], kp['we2'], kp['be2'],
      kp['wh1'], kp['bh1'], kp['wh2'], kp['bh2'])
    # lane-dense [B, S*A] slab -> [S, B, A]; q_all[i] == PyTorch q_values[i]
    return jnp.transpose(q_flat.reshape(B, S, A), (1, 0, 2))


# --------------------------- params & reference --------------------------------
def init_params(key):
    ks = jax.random.split(key, 23)
    w = lambda k, shape, scale=0.1: (scale * jax.random.normal(k, shape)).astype(jnp.float32)
    return {
        'enc_w1': w(ks[0], (S, F, H)),  'enc_b1': w(ks[1], (S, 1, H), 0.01),
        'enc_w2': w(ks[2], (S, H, E)),  'enc_b2': w(ks[3], (S, 1, E), 0.01),
        'wq': w(ks[4], (E, E)), 'bq': w(ks[5], (1, E), 0.01),
        'wk': w(ks[6], (E, E)), 'bk': w(ks[7], (1, E), 0.01),
        'wv': w(ks[8], (E, E)), 'bv': w(ks[9], (1, E), 0.01),
        'wo': w(ks[10], (E, E)), 'bo': w(ks[11], (1, E), 0.01),
        'wp': w(ks[12], (E, E)), 'bp': w(ks[13], (1, E), 0.01),
        'rel': w(ks[14], (S, S, E)),
        'we1': w(ks[15], (E, E)), 'be1': w(ks[16], (1, E), 0.01),
        'we2': w(ks[17], (E, E)), 'be2': w(ks[18], (1, E), 0.01),
        'wh1': w(ks[19], (S, H, H)),  'bh1': w(ks[20], (S, 1, H), 0.01),
        'wh2': w(ks[21], (S, H, A)),  'bh2': w(ks[22], (S, 1, A), 0.01),
    }


def forward_ref(p, states):
    """Pure-JAX reference mirroring the PyTorch forward (stock_idx=None path)."""
    encs = [jax.nn.relu(
        jax.nn.relu(states[:, s_, :] @ p['enc_w1'][s_] + p['enc_b1'][s_]) @ p['enc_w2'][s_]
        + p['enc_b2'][s_]) for s_ in range(S)]
    x = jnp.stack(encs, axis=1)                                        # [B, S, E]
    q = x @ p['wq'] + p['bq']
    k = x @ p['wk'] + p['bk']
    v = x @ p['wv'] + p['bv']
    outs = []
    for hh in range(NUM_HEADS):
        sl = slice(hh * HD, (hh + 1) * HD)
        sc = jnp.einsum('bqd,bkd->bqk', q[..., sl], k[..., sl]) / math.sqrt(HD)
        outs.append(jnp.einsum('bqk,bkd->bqd', jax.nn.softmax(sc, axis=-1), v[..., sl]))
    attn = jnp.concatenate(outs, axis=-1) @ p['wo'] + p['bo']
    enc = jax.nn.relu(attn @ p['wp'] + p['bp'])                        # [B, S, E]
    qs = []
    for i in range(S):
        rel_enc = jax.nn.relu(p['rel'][i] @ p['we1'] + p['be1']) @ p['we2'] + p['be2']
        infl = jnp.zeros((states.shape[0], E), jnp.float32)
        for j in range(S):
            if j == i:
                continue
            infl = infl + enc[:, j, :] * rel_enc[j]
        comb = jnp.concatenate([enc[:, i, :], infl], axis=-1)
        hq = jax.nn.relu(comb @ p['wh1'][i] + p['bh1'][i])
        qs.append(hq @ p['wh2'][i] + p['bh2'][i])
    return jnp.stack(qs, axis=0)                                       # [S, B, A]


# ------------------------------ main -------------------------------------------
if __name__ == "__main__":
    key = jax.random.PRNGKey(0)
    pkey, xkey = jax.random.split(key)
    params = init_params(pkey)
    kparams = prepare_kernel_params(params)
    states = jax.random.normal(xkey, (BATCH, NUM_STOCKS, MARKET_FEATURES), dtype=jnp.float32)

    q_all = jax.block_until_ready(dq_forward(kparams, states))        # [S, B, A]

    q_ref = forward_ref(params, states)
    # tolerance loosened slightly vs v1 because the softmax denominator now uses the
    # approximate EUP reciprocal (pl.reciprocal(..., approx=True)).
    np.testing.assert_allclose(np.asarray(q_all), np.asarray(q_ref), rtol=5e-3, atol=2e-3)
    print("KERNEL_OK")
</pallas_src>

<mosaic_0001>
module attributes {stable_mosaic.version = 11 : i64} {
  func.func @fused_dqn_kernel(%arg0: memref<8x64xf32, #tpu.memory_space<vmem>>, %arg1: memref<4x16x64xf32, #tpu.memory_space<vmem>>, %arg2: memref<4x1x64xf32, #tpu.memory_space<vmem>>, %arg3: memref<4x64x32xf32, #tpu.memory_space<vmem>>, %arg4: memref<4x1x32xf32, #tpu.memory_space<vmem>>, %arg5: memref<32x96xf32, #tpu.memory_space<vmem>>, %arg6: memref<1x96xf32, #tpu.memory_space<vmem>>, %arg7: memref<32x32xf32, #tpu.memory_space<vmem>>, %arg8: memref<1x32xf32, #tpu.memory_space<vmem>>, %arg9: memref<32x32xf32, #tpu.memory_space<vmem>>, %arg10: memref<1x32xf32, #tpu.memory_space<vmem>>, %arg11: memref<16x32xf32, #tpu.memory_space<vmem>>, %arg12: memref<32x32xf32, #tpu.memory_space<vmem>>, %arg13: memref<1x32xf32, #tpu.memory_space<vmem>>, %arg14: memref<32x32xf32, #tpu.memory_space<vmem>>, %arg15: memref<1x32xf32, #tpu.memory_space<vmem>>, %arg16: memref<4x64x64xf32, #tpu.memory_space<vmem>>, %arg17: memref<4x1x64xf32, #tpu.memory_space<vmem>>, %arg18: memref<4x64x3xf32, #tpu.memory_space<vmem>>, %arg19: memref<4x1x3xf32, #tpu.memory_space<vmem>>, %arg20: memref<8x12xf32, #tpu.memory_space<vmem>>) attributes {dimension_semantics = [], scalar_prefetch = 0 : i64, scratch_operands = 0 : i64, tpu.core_type = #tpu.core_type<tc>} {
    %c0 = arith.constant 0 : index
    %c0_0 = arith.constant 0 : index
    %0 = vector.load %arg0[%c0, %c0_0] : memref<8x64xf32, #tpu.memory_space<vmem>>, vector<8x64xf32>
    %1 = vector.extract_strided_slice %0 {offsets = [0, 0], sizes = [8, 16], strides = [1, 1]} : vector<8x64xf32> to vector<8x16xf32>
    %c0_1 = arith.constant 0 : index
    %c0_2 = arith.constant 0 : index
    %c0_3 = arith.constant 0 : index
    %2 = vector.load %arg1[%c0_1, %c0_2, %c0_3] : memref<4x16x64xf32, #tpu.memory_space<vmem>>, vector<1x16x64xf32>
    %3 = vector.shape_cast %2 : vector<1x16x64xf32> to vector<16x64xf32>
    %cst = arith.constant dense<0.000000e+00> : vector<8x64xf32>
    %4 = tpu.matmul %1, %3, %cst {dimension_numbers = #tpu.dot_dimension_numbers<[1], [0], [0], [1], [0, 0, 1, 1], [], []>} : vector<8x16xf32>, vector<16x64xf32>, vector<8x64xf32> -> vector<8x64xf32>
    %c0_4 = arith.constant 0 : index
    %c0_5 = arith.constant 0 : index
    %c0_6 = arith.constant 0 : index
    %5 = vector.load %arg2[%c0_4, %c0_5, %c0_6] : memref<4x1x64xf32, #tpu.memory_space<vmem>>, vector<1x1x64xf32>
    %6 = vector.shape_cast %5 : vector<1x1x64xf32> to vector<1x64xf32>
    %7 = vector.broadcast %6 : vector<1x64xf32> to vector<8x64xf32>
    %8 = arith.addf %4, %7 : vector<8x64xf32>
    %cst_7 = arith.constant 0.000000e+00 : f32
    %9 = vector.broadcast %cst_7 : f32 to vector<8x64xf32>
    %10 = arith.maximumf %8, %9 : vector<8x64xf32>
    %c0_8 = arith.constant 0 : index
    %c0_9 = arith.constant 0 : index
    %c0_10 = arith.constant 0 : index
    %11 = vector.load %arg3[%c0_8, %c0_9, %c0_10] : memref<4x64x32xf32, #tpu.memory_space<vmem>>, vector<1x64x32xf32>
    %12 = vector.shape_cast %11 : vector<1x64x32xf32> to vector<64x32xf32>
    %cst_11 = arith.constant dense<0.000000e+00> : vector<8x32xf32>
    %13 = tpu.matmul %10, %12, %cst_11 {dimension_numbers = #tpu.dot_dimension_numbers<[1], [0], [0], [1], [0, 0, 1, 1], [], []>} : vector<8x64xf32>, vector<64x32xf32>, vector<8x32xf32> -> vector<8x32xf32>
    %c0_12 = arith.constant 0 : index
    %c0_13 = arith.constant 0 : index
    %c0_14 = arith.constant 0 : index
    %14 = vector.load %arg4[%c0_12, %c0_13, %c0_14] : memref<4x1x32xf32, #tpu.memory_space<vmem>>, vector<1x1x32xf32>
    %15 = vector.shape_cast %14 : vector<1x1x32xf32> to vector<1x32xf32>
    %16 = vector.broadcast %15 : vector<1x32xf32> to vector<8x32xf32>
    %17 = arith.addf %13, %16 : vector<8x32xf32>
    %cst_15 = arith.constant 0.000000e+00 : f32
    %18 = vector.broadcast %cst_15 : f32 to vector<8x32xf32>
    %19 = arith.maximumf %17, %18 : vector<8x32xf32>
    %20 = vector.extract_strided_slice %0 {offsets = [0, 16], sizes = [8, 16], strides = [1, 1]} : vector<8x64xf32> to vector<8x16xf32>
    %c1 = arith.constant 1 : index
    %c0_16 = arith.constant 0 : index
    %c0_17 = arith.constant 0 : index
    %21 = vector.load %arg1[%c1, %c0_16, %c0_17] : memref<4x16x64xf32, #tpu.memory_space<vmem>>, vector<1x16x64xf32>
    %22 = vector.shape_cast %21 : vector<1x16x64xf32> to vector<16x64xf32>
    %cst_18 = arith.constant dense<0.000000e+00> : vector<8x64xf32>
    %23 = tpu.matmul %20, %22, %cst_18 {dimension_numbers = #tpu.dot_dimension_numbers<[1], [0], [0], [1], [0, 0, 1, 1], [], []>} : vector<8x16xf32>, vector<16x64xf32>, vector<8x64xf32> -> vector<8x64xf32>
    %c1_19 = arith.constant 1 : index
    %c0_20 = arith.constant 0 : index
    %c0_21 = arith.constant 0 : index
    %24 = vector.load %arg2[%c1_19, %c0_20, %c0_21] : memref<4x1x64xf32, #tpu.memory_space<vmem>>, vector<1x1x64xf32>
    %25 = vector.shape_cast %24 : vector<1x1x64xf32> to vector<1x64xf32>
    %26 = vector.broadcast %25 : vector<1x64xf32> to vector<8x64xf32>
    %27 = arith.addf %23, %26 : vector<8x64xf32>
    %cst_22 = arith.constant 0.000000e+00 : f32
    %28 = vector.broadcast %cst_22 : f32 to vector<8x64xf32>
    %29 = arith.maximumf %27, %28 : vector<8x64xf32>
    %c1_23 = arith.constant 1 : index
    %c0_24 = arith.constant 0 : index
    %c0_25 = arith.constant 0 : index
    %30 = vector.load %arg3[%c1_23, %c0_24, %c0_25] : memref<4x64x32xf32, #tpu.memory_space<vmem>>, vector<1x64x32xf32>
    %31 = vector.shape_cast %30 : vector<1x64x32xf32> to vector<64x32xf32>
    %cst_26 = arith.constant dense<0.000000e+00> : vector<8x32xf32>
    %32 = tpu.matmul %29, %31, %cst_26 {dimension_numbers = #tpu.dot_dimension_numbers<[1], [0], [0], [1], [0, 0, 1, 1], [], []>} : vector<8x64xf32>, vector<64x32xf32>, vector<8x32xf32> -> vector<8x32xf32>
    %c1_27 = arith.constant 1 : index
    %c0_28 = arith.constant 0 : index
    %c0_29 = arith.constant 0 : index
    %33 = vector.load %arg4[%c1_27, %c0_28, %c0_29] : memref<4x1x32xf32, #tpu.memory_space<vmem>>, vector<1x1x32xf32>
    %34 = vector.shape_cast %33 : vector<1x1x32xf32> to vector<1x32xf32>
    %35 = vector.broadcast %34 : vector<1x32xf32> to vector<8x32xf32>
    %36 = arith.addf %32, %35 : vector<8x32xf32>
    %cst_30 = arith.constant 0.000000e+00 : f32
    %37 = vector.broadcast %cst_30 : f32 to vector<8x32xf32>
    %38 = arith.maximumf %36, %37 : vector<8x32xf32>
    %39 = vector.extract_strided_slice %0 {offsets = [0, 32], sizes = [8, 16], strides = [1, 1]} : vector<8x64xf32> to vector<8x16xf32>
    %c2 = arith.constant 2 : index
    %c0_31 = arith.constant 0 : index
    %c0_32 = arith.constant 0 : index
    %40 = vector.load %arg1[%c2, %c0_31, %c0_32] : memref<4x16x64xf32, #tpu.memory_space<vmem>>, vector<1x16x64xf32>
    %41 = vector.shape_cast %40 : vector<1x16x64xf32> to vector<16x64xf32>
    %cst_33 = arith.constant dense<0.000000e+00> : vector<8x64xf32>
    %42 = tpu.matmul %39, %41, %cst_33 {dimension_numbers = #tpu.dot_dimension_numbers<[1], [0], [0], [1], [0, 0, 1, 1], [], []>} : vector<8x16xf32>, vector<16x64xf32>, vector<8x64xf32> -> vector<8x64xf32>
    %c2_34 = arith.constant 2 : index
    %c0_35 = arith.constant 0 : index
    %c0_36 = arith.constant 0 : index
    %43 = vector.load %arg2[%c2_34, %c0_35, %c0_36] : memref<4x1x64xf32, #tpu.memory_space<vmem>>, vector<1x1x64xf32>
    %44 = vector.shape_cast %43 : vector<1x1x64xf32> to vector<1x64xf32>
    %45 = vector.broadcast %44 : vector<1x64xf32> to vector<8x64xf32>
    %46 = arith.addf %42, %45 : vector<8x64xf32>
    %cst_37 = arith.constant 0.000000e+00 : f32
    %47 = vector.broadcast %cst_37 : f32 to vector<8x64xf32>
    %48 = arith.maximumf %46, %47 : vector<8x64xf32>
    %c2_38 = arith.constant 2 : index
    %c0_39 = arith.constant 0 : index
    %c0_40 = arith.constant 0 : index
    %49 = vector.load %arg3[%c2_38, %c0_39, %c0_40] : memref<4x64x32xf32, #tpu.memory_space<vmem>>, vector<1x64x32xf32>
    %50 = vector.shape_cast %49 : vector<1x64x32xf32> to vector<64x32xf32>
    %cst_41 = arith.constant dense<0.000000e+00> : vector<8x32xf32>
    %51 = tpu.matmul %48, %50, %cst_41 {dimension_numbers = #tpu.dot_dimension_numbers<[1], [0], [0], [1], [0, 0, 1, 1], [], []>} : vector<8x64xf32>, vector<64x32xf32>, vector<8x32xf32> -> vector<8x32xf32>
    %c2_42 = arith.constant 2 : index
    %c0_43 = arith.constant 0 : index
    %c0_44 = arith.constant 0 : index
    %52 = vector.load %arg4[%c2_42, %c0_43, %c0_44] : memref<4x1x32xf32, #tpu.memory_space<vmem>>, vector<1x1x32xf32>
    %53 = vector.shape_cast %52 : vector<1x1x32xf32> to vector<1x32xf32>
    %54 = vector.broadcast %53 : vector<1x32xf32> to vector<8x32xf32>
    %55 = arith.addf %51, %54 : vector<8x32xf32>
    %cst_45 = arith.constant 0.000000e+00 : f32
    %56 = vector.broadcast %cst_45 : f32 to vector<8x32xf32>
    %57 = arith.maximumf %55, %56 : vector<8x32xf32>
    %58 = vector.extract_strided_slice %0 {offsets = [0, 48], sizes = [8, 16], strides = [1, 1]} : vector<8x64xf32> to vector<8x16xf32>
    %c3 = arith.constant 3 : index
    %c0_46 = arith.constant 0 : index
    %c0_47 = arith.constant 0 : index
    %59 = vector.load %arg1[%c3, %c0_46, %c0_47] : memref<4x16x64xf32, #tpu.memory_space<vmem>>, vector<1x16x64xf32>
    %60 = vector.shape_cast %59 : vector<1x16x64xf32> to vector<16x64xf32>
    %cst_48 = arith.constant dense<0.000000e+00> : vector<8x64xf32>
    %61 = tpu.matmul %58, %60, %cst_48 {dimension_numbers = #tpu.dot_dimension_numbers<[1], [0], [0], [1], [0, 0, 1, 1], [], []>} : vector<8x16xf32>, vector<16x64xf32>, vector<8x64xf32> -> vector<8x64xf32>
    %c3_49 = arith.constant 3 : index
    %c0_50 = arith.constant 0 : index
    %c0_51 = arith.constant 0 : index
    %62 = vector.load %arg2[%c3_49, %c0_50, %c0_51] : memref<4x1x64xf32, #tpu.memory_space<vmem>>, vector<1x1x64xf32>
    %63 = vector.shape_cast %62 : vector<1x1x64xf32> to vector<1x64xf32>
    %64 = vector.broadcast %63 : vector<1x64xf32> to vector<8x64xf32>
    %65 = arith.addf %61, %64 : vector<8x64xf32>
    %cst_52 = arith.constant 0.000000e+00 : f32
    %66 = vector.broadcast %cst_52 : f32 to vector<8x64xf32>
    %67 = arith.maximumf %65, %66 : vector<8x64xf32>
    %c3_53 = arith.constant 3 : index
    %c0_54 = arith.constant 0 : index
    %c0_55 = arith.constant 0 : index
    %68 = vector.load %arg3[%c3_53, %c0_54, %c0_55] : memref<4x64x32xf32, #tpu.memory_space<vmem>>, vector<1x64x32xf32>
    %69 = vector.shape_cast %68 : vector<1x64x32xf32> to vector<64x32xf32>
    %cst_56 = arith.constant dense<0.000000e+00> : vector<8x32xf32>
    %70 = tpu.matmul %67, %69, %cst_56 {dimension_numbers = #tpu.dot_dimension_numbers<[1], [0], [0], [1], [0, 0, 1, 1], [], []>} : vector<8x64xf32>, vector<64x32xf32>, vector<8x32xf32> -> vector<8x32xf32>
    %c3_57 = arith.constant 3 : index
    %c0_58 = arith.constant 0 : index
    %c0_59 = arith.constant 0 : index
    %71 = vector.load %arg4[%c3_57, %c0_58, %c0_59] : memref<4x1x32xf32, #tpu.memory_space<vmem>>, vector<1x1x32xf32>
    %72 = vector.shape_cast %71 : vector<1x1x32xf32> to vector<1x32xf32>
    %73 = vector.broadcast %72 : vector<1x32xf32> to vector<8x32xf32>
    %74 = arith.addf %70, %73 : vector<8x32xf32>
    %cst_60 = arith.constant 0.000000e+00 : f32
    %75 = vector.broadcast %cst_60 : f32 to vector<8x32xf32>
    %76 = arith.maximumf %74, %75 : vector<8x32xf32>
    %77 = vector.shape_cast %19 : vector<8x32xf32> to vector<8x1x32xf32>
    %78 = vector.shape_cast %38 : vector<8x32xf32> to vector<8x1x32xf32>
    %79 = vector.shape_cast %57 : vector<8x32xf32> to vector<8x1x32xf32>
    %80 = vector.shape_cast %76 : vector<8x32xf32> to vector<8x1x32xf32>
    %81 = tpu.concatenate %77, %78, %79, %80 in 1 : vector<8x1x32xf32>, vector<8x1x32xf32>, vector<8x1x32xf32>, vector<8x1x32xf32> -> vector<8x4x32xf32>
    %82 = vector.shape_cast %81 : vector<8x4x32xf32> to vector<32x32xf32>
    %c0_61 = arith.constant 0 : index
    %c0_62 = arith.constant 0 : index
    %83 = vector.load %arg5[%c0_61, %c0_62] : memref<32x96xf32, #tpu.memory_space<vmem>>, vector<32x96xf32>
    %cst_63 = arith.constant dense<0.000000e+00> : vector<32x96xf32>
    %84 = tpu.matmul %82, %83, %cst_63 {dimension_numbers = #tpu.dot_dimension_numbers<[1], [0], [0], [1], [0, 0, 1, 1], [], []>} : vector<32x32xf32>, vector<32x96xf32>, vector<32x96xf32> -> vector<32x96xf32>
    %c0_64 = arith.constant 0 : index
    %c0_65 = arith.constant 0 : index
    %85 = vector.load %arg6[%c0_64, %c0_65] : memref<1x96xf32, #tpu.memory_space<vmem>>, vector<1x96xf32>
    %86 = vector.broadcast %85 : vector<1x96xf32> to vector<32x96xf32>
    %87 = arith.addf %84, %86 : vector<32x96xf32>
    %88 = vector.shape_cast %87 : vector<32x96xf32> to vector<8x4x96xf32>
    %89 = vector.extract_strided_slice %88 {offsets = [0, 0, 0], sizes = [8, 4, 8], strides = [1, 1, 1]} : vector<8x4x96xf32> to vector<8x4x8xf32>
    %90 = vector.extract_strided_slice %88 {offsets = [0, 0, 32], sizes = [8, 4, 8], strides = [1, 1, 1]} : vector<8x4x96xf32> to vector<8x4x8xf32>
    %91 = vector.extract_strided_slice %88 {offsets = [0, 0, 64], sizes = [8, 4, 8], strides = [1, 1, 1]} : vector<8x4x96xf32> to vector<8x4x8xf32>
    "tpu.trace_start"() <{level = 10 : i32, message = "bqd,bkd->bqk"}> : () -> ()
    %cst_66 = arith.constant dense<0.000000e+00> : vector<8x4x4xf32>
    %92 = tpu.matmul %89, %90, %cst_66 {dimension_numbers = #tpu.dot_dimension_numbers<[2], [2], [1], [1], [0, 0, 0, 1, 1, 1], [0], [0]>} : vector<8x4x8xf32>, vector<8x4x8xf32>, vector<8x4x4xf32> -> vector<8x4x4xf32>
    "tpu.trace_stop"() : () -> ()
    %cst_67 = arith.constant 0.353553385 : f32
    %93 = vector.broadcast %cst_67 : f32 to vector<8x4x4xf32>
    %94 = arith.mulf %92, %93 : vector<8x4x4xf32>
    %cst_68 = arith.constant dense<0xFF800000> : vector<8x4xf32>
    %95 = vector.multi_reduction <maximumf>, %94, %cst_68 [2] : vector<8x4x4xf32> to vector<8x4xf32>
    %96 = vector.shape_cast %95 : vector<8x4xf32> to vector<8x4x1xf32>
    %97 = vector.broadcast %96 : vector<8x4x1xf32> to vector<8x4x4xf32>
    %98 = arith.subf %94, %97 : vector<8x4x4xf32>
    %99 = math.exp %98 : vector<8x4x4xf32>
    %cst_69 = arith.constant dense<0.000000e+00> : vector<8x4xf32>
    %100 = vector.multi_reduction <add>, %99, %cst_69 [2] : vector<8x4x4xf32> to vector<8x4xf32>
    %101 = vector.shape_cast %100 : vector<8x4xf32> to vector<8x4x1xf32>
    %102 = tpu.reciprocal %101 {approx = true} : vector<8x4x1xf32> -> vector<8x4x1xf32>
    %103 = vector.broadcast %102 : vector<8x4x1xf32> to vector<8x4x4xf32>
    %104 = arith.mulf %99, %103 : vector<8x4x4xf32>
    "tpu.trace_start"() <{level = 10 : i32, message = "bqk,bkd->bqd"}> : () -> ()
    %cst_70 = arith.constant dense<0.000000e+00> : vector<8x4x8xf32>
    %105 = tpu.matmul %104, %91, %cst_70 {dimension_numbers = #tpu.dot_dimension_numbers<[2], [1], [1], [2], [0, 0, 0, 1, 1, 2], [0], [0]>} : vector<8x4x4xf32>, vector<8x4x8xf32>, vector<8x4x8xf32> -> vector<8x4x8xf32>
    "tpu.trace_stop"() : () -> ()
    %106 = vector.extract_strided_slice %88 {offsets = [0, 0, 8], sizes = [8, 4, 8], strides = [1, 1, 1]} : vector<8x4x96xf32> to vector<8x4x8xf32>
    %107 = vector.extract_strided_slice %88 {offsets = [0, 0, 40], sizes = [8, 4, 8], strides = [1, 1, 1]} : vector<8x4x96xf32> to vector<8x4x8xf32>
    %108 = vector.extract_strided_slice %88 {offsets = [0, 0, 72], sizes = [8, 4, 8], strides = [1, 1, 1]} : vector<8x4x96xf32> to vector<8x4x8xf32>
    "tpu.trace_start"() <{level = 10 : i32, message = "bqd,bkd->bqk"}> : () -> ()
    %cst_71 = arith.constant dense<0.000000e+00> : vector<8x4x4xf32>
    %109 = tpu.matmul %106, %107, %cst_71 {dimension_numbers = #tpu.dot_dimension_numbers<[2], [2], [1], [1], [0, 0, 0, 1, 1, 1], [0], [0]>} : vector<8x4x8xf32>, vector<8x4x8xf32>, vector<8x4x4xf32> -> vector<8x4x4xf32>
    "tpu.trace_stop"() : () -> ()
    %cst_72 = arith.constant 0.353553385 : f32
    %110 = vector.broadcast %cst_72 : f32 to vector<8x4x4xf32>
    %111 = arith.mulf %109, %110 : vector<8x4x4xf32>
    %cst_73 = arith.constant dense<0xFF800000> : vector<8x4xf32>
    %112 = vector.multi_reduction <maximumf>, %111, %cst_73 [2] : vector<8x4x4xf32> to vector<8x4xf32>
    %113 = vector.shape_cast %112 : vector<8x4xf32> to vector<8x4x1xf32>
    %114 = vector.broadcast %113 : vector<8x4x1xf32> to vector<8x4x4xf32>
    %115 = arith.subf %111, %114 : vector<8x4x4xf32>
    %116 = math.exp %115 : vector<8x4x4xf32>
    %cst_74 = arith.constant dense<0.000000e+00> : vector<8x4xf32>
    %117 = vector.multi_reduction <add>, %116, %cst_74 [2] : vector<8x4x4xf32> to vector<8x4xf32>
    %118 = vector.shape_cast %117 : vector<8x4xf32> to vector<8x4x1xf32>
    %119 = tpu.reciprocal %118 {approx = true} : vector<8x4x1xf32> -> vector<8x4x1xf32>
    %120 = vector.broadcast %119 : vector<8x4x1xf32> to vector<8x4x4xf32>
    %121 = arith.mulf %116, %120 : vector<8x4x4xf32>
    "tpu.trace_start"() <{level = 10 : i32, message = "bqk,bkd->bqd"}> : () -> ()
    %cst_75 = arith.constant dense<0.000000e+00> : vector<8x4x8xf32>
    %122 = tpu.matmul %121, %108, %cst_75 {dimension_numbers = #tpu.dot_dimension_numbers<[2], [1], [1], [2], [0, 0, 0, 1, 1, 2], [0], [0]>} : vector<8x4x4xf32>, vector<8x4x8xf32>, vector<8x4x8xf32> -> vector<8x4x8xf32>
    "tpu.trace_stop"() : () -> ()
    %123 = vector.extract_strided_slice %88 {offsets = [0, 0, 16], sizes = [8, 4, 8], strides = [1, 1, 1]} : vector<8x4x96xf32> to vector<8x4x8xf32>
    %124 = vector.extract_strided_slice %88 {offsets = [0, 0, 48], sizes = [8, 4, 8], strides = [1, 1, 1]} : vector<8x4x96xf32> to vector<8x4x8xf32>
    %125 = vector.extract_strided_slice %88 {offsets = [0, 0, 80], sizes = [8, 4, 8], strides = [1, 1, 1]} : vector<8x4x96xf32> to vector<8x4x8xf32>
    "tpu.trace_start"() <{level = 10 : i32, message = "bqd,bkd->bqk"}> : () -> ()
    %cst_76 = arith.constant dense<0.000000e+00> : vector<8x4x4xf32>
    %126 = tpu.matmul %123, %124, %cst_76 {dimension_numbers = #tpu.dot_dimension_numbers<[2], [2], [1], [1], [0, 0, 0, 1, 1, 1], [0], [0]>} : vector<8x4x8xf32>, vector<8x4x8xf32>, vector<8x4x4xf32> -> vector<8x4x4xf32>
    "tpu.trace_stop"() : () -> ()
    %cst_77 = arith.constant 0.353553385 : f32
    %127 = vector.broadcast %cst_77 : f32 to vector<8x4x4xf32>
    %128 = arith.mulf %126, %127 : vector<8x4x4xf32>
    %cst_78 = arith.constant dense<0xFF800000> : vector<8x4xf32>
    %129 = vector.multi_reduction <maximumf>, %128, %cst_78 [2] : vector<8x4x4xf32> to vector<8x4xf32>
    %130 = vector.shape_cast %129 : vector<8x4xf32> to vector<8x4x1xf32>
    %131 = vector.broadcast %130 : vector<8x4x1xf32> to vector<8x4x4xf32>
    %132 = arith.subf %128, %131 : vector<8x4x4xf32>
    %133 = math.exp %132 : vector<8x4x4xf32>
    %cst_79 = arith.constant dense<0.000000e+00> : vector<8x4xf32>
    %134 = vector.multi_reduction <add>, %133, %cst_79 [2] : vector<8x4x4xf32> to vector<8x4xf32>
    %135 = vector.shape_cast %134 : vector<8x4xf32> to vector<8x4x1xf32>
    %136 = tpu.reciprocal %135 {approx = true} : vector<8x4x1xf32> -> vector<8x4x1xf32>
    %137 = vector.broadcast %136 : vector<8x4x1xf32> to vector<8x4x4xf32>
    %138 = arith.mulf %133, %137 : vector<8x4x4xf32>
    "tpu.trace_start"() <{level = 10 : i32, message = "bqk,bkd->bqd"}> : () -> ()
    %cst_80 = arith.constant dense<0.000000e+00> : vector<8x4x8xf32>
    %139 = tpu.matmul %138, %125, %cst_80 {dimension_numbers = #tpu.dot_dimension_numbers<[2], [1], [1], [2], [0, 0, 0, 1, 1, 2], [0], [0]>} : vector<8x4x4xf32>, vector<8x4x8xf32>, vector<8x4x8xf32> -> vector<8x4x8xf32>
    "tpu.trace_stop"() : () -> ()
    %140 = vector.extract_strided_slice %88 {offsets = [0, 0, 24], sizes = [8, 4, 8], strides = [1, 1, 1]} : vector<8x4x96xf32> to vector<8x4x8xf32>
    %141 = vector.extract_strided_slice %88 {offsets = [0, 0, 56], sizes = [8, 4, 8], strides = [1, 1, 1]} : vector<8x4x96xf32> to vector<8x4x8xf32>
    %142 = vector.extract_strided_slice %88 {offsets = [0, 0, 88], sizes = [8, 4, 8], strides = [1, 1, 1]} : vector<8x4x96xf32> to vector<8x4x8xf32>
    "tpu.trace_start"() <{level = 10 : i32, message = "bqd,bkd->bqk"}> : () -> ()
    %cst_81 = arith.constant dense<0.000000e+00> : vector<8x4x4xf32>
    %143 = tpu.matmul %140, %141, %cst_81 {dimension_numbers = #tpu.dot_dimension_numbers<[2], [2], [1], [1], [0, 0, 0, 1, 1, 1], [0], [0]>} : vector<8x4x8xf32>, vector<8x4x8xf32>, vector<8x4x4xf32> -> vector<8x4x4xf32>
    "tpu.trace_stop"() : () -> ()
    %cst_82 = arith.constant 0.353553385 : f32
    %144 = vector.broadcast %cst_82 : f32 to vector<8x4x4xf32>
    %145 = arith.mulf %143, %144 : vector<8x4x4xf32>
    %cst_83 = arith.constant dense<0xFF800000> : vector<8x4xf32>
    %146 = vector.multi_reduction <maximumf>, %145, %cst_83 [2] : vector<8x4x4xf32> to vector<8x4xf32>
    %147 = vector.shape_cast %146 : vector<8x4xf32> to vector<8x4x1xf32>
    %148 = vector.broadcast %147 : vector<8x4x1xf32> to vector<8x4x4xf32>
    %149 = arith.subf %145, %148 : vector<8x4x4xf32>
    %150 = math.exp %149 : vector<8x4x4xf32>
    %cst_84 = arith.constant dense<0.000000e+00> : vector<8x4xf32>
    %151 = vector.multi_reduction <add>, %150, %cst_84 [2] : vector<8x4x4xf32> to vector<8x4xf32>
    %152 = vector.shape_cast %151 : vector<8x4xf32> to vector<8x4x1xf32>
    %153 = tpu.reciprocal %152 {approx = true} : vector<8x4x1xf32> -> vector<8x4x1xf32>
    %154 = vector.broadcast %153 : vector<8x4x1xf32> to vector<8x4x4xf32>
    %155 = arith.mulf %150, %154 : vector<8x4x4xf32>
    "tpu.trace_start"() <{level = 10 : i32, message = "bqk,bkd->bqd"}> : () -> ()
    %cst_85 = arith.constant dense<0.000000e+00> : vector<8x4x8xf32>
    %156 = tpu.matmul %155, %142, %cst_85 {dimension_numbers = #tpu.dot_dimension_numbers<[2], [1], [1], [2], [0, 0, 0, 1, 1, 2], [0], [0]>} : vector<8x4x4xf32>, vector<8x4x8xf32>, vector<8x4x8xf32> -> vector<8x4x8xf32>
    "tpu.trace_stop"() : () -> ()
    %157 = tpu.concatenate %105, %122, %139, %156 in 2 : vector<8x4x8xf32>, vector<8x4x8xf32>, vector<8x4x8xf32>, vector<8x4x8xf32> -> vector<8x4x32xf32>
    %158 = vector.shape_cast %157 : vector<8x4x32xf32> to vector<32x32xf32>
    %c0_86 = arith.constant 0 : index
    %c0_87 = arith.constant 0 : index
    %159 = vector.load %arg7[%c0_86, %c0_87] : memref<32x32xf32, #tpu.memory_space<vmem>>, vector<32x32xf32>
    %cst_88 = arith.constant dense<0.000000e+00> : vector<32x32xf32>
    %160 = tpu.matmul %158, %159, %cst_88 {dimension_numbers = #tpu.dot_dimension_numbers<[1], [0], [0], [1], [0, 0, 1, 1], [], []>} : vector<32x32xf32>, vector<32x32xf32>, vector<32x32xf32> -> vector<32x32xf32>
    %c0_89 = arith.constant 0 : index
    %c0_90 = arith.constant 0 : index
    %161 = vector.load %arg8[%c0_89, %c0_90] : memref<1x32xf32, #tpu.memory_space<vmem>>, vector<1x32xf32>
    %162 = vector.broadcast %161 : vector<1x32xf32> to vector<32x32xf32>
    %163 = arith.addf %160, %162 : vector<32x32xf32>
    %c0_91 = arith.constant 0 : index
    %c0_92 = arith.constant 0 : index
    %164 = vector.load %arg9[%c0_91, %c0_92] : memref<32x32xf32, #tpu.memory_space<vmem>>, vector<32x32xf32>
    %cst_93 = arith.constant dense<0.000000e+00> : vector<32x32xf32>
    %165 = tpu.matmul %163, %164, %cst_93 {dimension_numbers = #tpu.dot_dimension_numbers<[1], [0], [0], [1], [0, 0, 1, 1], [], []>} : vector<32x32xf32>, vector<32x32xf32>, vector<32x32xf32> -> vector<32x32xf32>
    %c0_94 = arith.constant 0 : index
    %c0_95 = arith.constant 0 : index
    %166 = vector.load %arg10[%c0_94, %c0_95] : memref<1x32xf32, #tpu.memory_space<vmem>>, vector<1x32xf32>
    %167 = vector.broadcast %166 : vector<1x32xf32> to vector<32x32xf32>
    %168 = arith.addf %165, %167 : vector<32x32xf32>
    %cst_96 = arith.constant 0.000000e+00 : f32
    %169 = vector.broadcast %cst_96 : f32 to vector<32x32xf32>
    %170 = arith.maximumf %168, %169 : vector<32x32xf32>
    %171 = vector.shape_cast %170 : vector<32x32xf32> to vector<8x4x32xf32>
    %c0_97 = arith.constant 0 : index
    %c0_98 = arith.constant 0 : index
    %172 = vector.load %arg11[%c0_97, %c0_98] : memref<16x32xf32, #tpu.memory_space<vmem>>, vector<16x32xf32>
    %c0_99 = arith.constant 0 : index
    %c0_100 = arith.constant 0 : index
    %173 = vector.load %arg12[%c0_99, %c0_100] : memref<32x32xf32, #tpu.memory_space<vmem>>, vector<32x32xf32>
    %cst_101 = arith.constant dense<0.000000e+00> : vector<16x32xf32>
    %174 = tpu.matmul %172, %173, %cst_101 {dimension_numbers = #tpu.dot_dimension_numbers<[1], [0], [0], [1], [0, 0, 1, 1], [], []>} : vector<16x32xf32>, vector<32x32xf32>, vector<16x32xf32> -> vector<16x32xf32>
    %c0_102 = arith.constant 0 : index
    %c0_103 = arith.constant 0 : index
    %175 = vector.load %arg13[%c0_102, %c0_103] : memref<1x32xf32, #tpu.memory_space<vmem>>, vector<1x32xf32>
    %176 = vector.broadcast %175 : vector<1x32xf32> to vector<16x32xf32>
    %177 = arith.addf %174, %176 : vector<16x32xf32>
    %cst_104 = arith.constant 0.000000e+00 : f32
    %178 = vector.broadcast %cst_104 : f32 to vector<16x32xf32>
    %179 = arith.maximumf %177, %178 : vector<16x32xf32>
    %c0_105 = arith.constant 0 : index
    %c0_106 = arith.constant 0 : index
    %180 = vector.load %arg14[%c0_105, %c0_106] : memref<32x32xf32, #tpu.memory_space<vmem>>, vector<32x32xf32>
    %cst_107 = arith.constant dense<0.000000e+00> : vector<16x32xf32>
    %181 = tpu.matmul %179, %180, %cst_107 {dimension_numbers = #tpu.dot_dimension_numbers<[1], [0], [0], [1], [0, 0, 1, 1], [], []>} : vector<16x32xf32>, vector<32x32xf32>, vector<16x32xf32> -> vector<16x32xf32>
    %c0_108 = arith.constant 0 : index
    %c0_109 = arith.constant 0 : index
    %182 = vector.load %arg15[%c0_108, %c0_109] : memref<1x32xf32, #tpu.memory_space<vmem>>, vector<1x32xf32>
    %183 = vector.broadcast %182 : vector<1x32xf32> to vector<16x32xf32>
    %184 = arith.addf %181, %183 : vector<16x32xf32>
    %185 = vector.shape_cast %184 : vector<16x32xf32> to vector<4x4x32xf32>
    %186 = tpu.iota {dimensions = array<i32: 0>} : vector<4x4x1xi32>
    %187 = tpu.iota {dimensions = array<i32: 1>} : vector<4x4x1xi32>
    %188 = arith.cmpi eq, %186, %187 : vector<4x4x1xi32>
    %cst_110 = arith.constant 0.000000e+00 : f32
    %189 = vector.shape_cast %188 : vector<4x4x1xi1> to vector<4x4x1xi1>
    %190 = vector.broadcast %189 : vector<4x4x1xi1> to vector<4x4x32xi1>
    %191 = vector.broadcast %cst_110 : f32 to vector<4x4x32xf32>
    %192 = arith.select %190, %191, %185 : vector<4x4x32xi1>, vector<4x4x32xf32>
    %193 = vector.extract_strided_slice %192 {offsets = [0, 0, 0], sizes = [1, 4, 32], strides = [1, 1, 1]} : vector<4x4x32xf32> to vector<1x4x32xf32>
    %194 = vector.shape_cast %193 : vector<1x4x32xf32> to vector<4x32xf32>
    %195 = vector.shape_cast %194 : vector<4x32xf32> to vector<1x4x32xf32>
    %196 = vector.broadcast %195 : vector<1x4x32xf32> to vector<8x4x32xf32>
    %197 = arith.mulf %171, %196 : vector<8x4x32xf32>
    %cst_111 = arith.constant dense<0.000000e+00> : vector<8x32xf32>
    %198 = vector.multi_reduction <add>, %197, %cst_111 [1] : vector<8x4x32xf32> to vector<8x32xf32>
    %199 = vector.extract_strided_slice %171 {offsets = [0, 0, 0], sizes = [8, 1, 32], strides = [1, 1, 1]} : vector<8x4x32xf32> to vector<8x1x32xf32>
    %200 = vector.shape_cast %199 : vector<8x1x32xf32> to vector<8x32xf32>
    %c0_112 = arith.constant 0 : index
    %c0_113 = arith.constant 0 : index
    %c0_114 = arith.constant 0 : index
    %201 = vector.load %arg16[%c0_112, %c0_113, %c0_114] : memref<4x64x64xf32, #tpu.memory_space<vmem>>, vector<1x64x64xf32>
    %202 = vector.shape_cast %201 : vector<1x64x64xf32> to vector<64x64xf32>
    %203 = vector.extract_strided_slice %202 {offsets = [0, 0], sizes = [32, 64], strides = [1, 1]} : vector<64x64xf32> to vector<32x64xf32>
    %cst_115 = arith.constant dense<0.000000e+00> : vector<8x64xf32>
    %204 = tpu.matmul %200, %203, %cst_115 {dimension_numbers = #tpu.dot_dimension_numbers<[1], [0], [0], [1], [0, 0, 1, 1], [], []>} : vector<8x32xf32>, vector<32x64xf32>, vector<8x64xf32> -> vector<8x64xf32>
    %205 = vector.extract_strided_slice %202 {offsets = [32, 0], sizes = [32, 64], strides = [1, 1]} : vector<64x64xf32> to vector<32x64xf32>
    %cst_116 = arith.constant dense<0.000000e+00> : vector<8x64xf32>
    %206 = tpu.matmul %198, %205, %cst_116 {dimension_numbers = #tpu.dot_dimension_numbers<[1], [0], [0], [1], [0, 0, 1, 1], [], []>} : vector<8x32xf32>, vector<32x64xf32>, vector<8x64xf32> -> vector<8x64xf32>
    %207 = arith.addf %204, %206 : vector<8x64xf32>
    %c0_117 = arith.constant 0 : index
    %c0_118 = arith.constant 0 : index
    %c0_119 = arith.constant 0 : index
    %208 = vector.load %arg17[%c0_117, %c0_118, %c0_119] : memref<4x1x64xf32, #tpu.memory_space<vmem>>, vector<1x1x64xf32>
    %209 = vector.shape_cast %208 : vector<1x1x64xf32> to vector<1x64xf32>
    %210 = vector.broadcast %209 : vector<1x64xf32> to vector<8x64xf32>
    %211 = arith.addf %207, %210 : vector<8x64xf32>
    %cst_120 = arith.constant 0.000000e+00 : f32
    %212 = vector.broadcast %cst_120 : f32 to vector<8x64xf32>
    %213 = arith.maximumf %211, %212 : vector<8x64xf32>
    %c0_121 = arith.constant 0 : index
    %c0_122 = arith.constant 0 : index
    %c0_123 = arith.constant 0 : index
    %214 = vector.load %arg18[%c0_121, %c0_122, %c0_123] : memref<4x64x3xf32, #tpu.memory_space<vmem>>, vector<1x64x3xf32>
    %215 = vector.shape_cast %214 : vector<1x64x3xf32> to vector<64x3xf32>
    %cst_124 = arith.constant dense<0.000000e+00> : vector<8x3xf32>
    %216 = tpu.matmul %213, %215, %cst_124 {dimension_numbers = #tpu.dot_dimension_numbers<[1], [0], [0], [1], [0, 0, 1, 1], [], []>} : vector<8x64xf32>, vector<64x3xf32>, vector<8x3xf32> -> vector<8x3xf32>
    %c0_125 = arith.constant 0 : index
    %c0_126 = arith.constant 0 : index
    %c0_127 = arith.constant 0 : index
    %217 = vector.load %arg19[%c0_125, %c0_126, %c0_127] : memref<4x1x3xf32, #tpu.memory_space<vmem>>, vector<1x1x3xf32>
    %218 = vector.shape_cast %217 : vector<1x1x3xf32> to vector<1x3xf32>
    %219 = vector.broadcast %218 : vector<1x3xf32> to vector<8x3xf32>
    %220 = arith.addf %216, %219 : vector<8x3xf32>
    %221 = vector.extract_strided_slice %192 {offsets = [1, 0, 0], sizes = [1, 4, 32], strides = [1, 1, 1]} : vector<4x4x32xf32> to vector<1x4x32xf32>
    %222 = vector.shape_cast %221 : vector<1x4x32xf32> to vector<4x32xf32>
    %223 = vector.shape_cast %222 : vector<4x32xf32> to vector<1x4x32xf32>
    %224 = vector.broadcast %223 : vector<1x4x32xf32> to vector<8x4x32xf32>
    %225 = arith.mulf %171, %224 : vector<8x4x32xf32>
    %cst_128 = arith.constant dense<0.000000e+00> : vector<8x32xf32>
    %226 = vector.multi_reduction <add>, %225, %cst_128 [1] : vector<8x4x32xf32> to vector<8x32xf32>
    %227 = vector.extract_strided_slice %171 {offsets = [0, 1, 0], sizes = [8, 1, 32], strides = [1, 1, 1]} : vector<8x4x32xf32> to vector<8x1x32xf32>
    %228 = vector.shape_cast %227 : vector<8x1x32xf32> to vector<8x32xf32>
    %c1_129 = arith.constant 1 : index
    %c0_130 = arith.constant 0 : index
    %c0_131 = arith.constant 0 : index
    %229 = vector.load %arg16[%c1_129, %c0_130, %c0_131] : memref<4x64x64xf32, #tpu.memory_space<vmem>>, vector<1x64x64xf32>
    %230 = vector.shape_cast %229 : vector<1x64x64xf32> to vector<64x64xf32>
    %231 = vector.extract_strided_slice %230 {offsets = [0, 0], sizes = [32, 64], strides = [1, 1]} : vector<64x64xf32> to vector<32x64xf32>
    %cst_132 = arith.constant dense<0.000000e+00> : vector<8x64xf32>
    %232 = tpu.matmul %228, %231, %cst_132 {dimension_numbers = #tpu.dot_dimension_numbers<[1], [0], [0], [1], [0, 0, 1, 1], [], []>} : vector<8x32xf32>, vector<32x64xf32>, vector<8x64xf32> -> vector<8x64xf32>
    %233 = vector.extract_strided_slice %230 {offsets = [32, 0], sizes = [32, 64], strides = [1, 1]} : vector<64x64xf32> to vector<32x64xf32>
    %cst_133 = arith.constant dense<0.000000e+00> : vector<8x64xf32>
    %234 = tpu.matmul %226, %233, %cst_133 {dimension_numbers = #tpu.dot_dimension_numbers<[1], [0], [0], [1], [0, 0, 1, 1], [], []>} : vector<8x32xf32>, vector<32x64xf32>, vector<8x64xf32> -> vector<8x64xf32>
    %235 = arith.addf %232, %234 : vector<8x64xf32>
    %c1_134 = arith.constant 1 : index
    %c0_135 = arith.constant 0 : index
    %c0_136 = arith.constant 0 : index
    %236 = vector.load %arg17[%c1_134, %c0_135, %c0_136] : memref<4x1x64xf32, #tpu.memory_space<vmem>>, vector<1x1x64xf32>
    %237 = vector.shape_cast %236 : vector<1x1x64xf32> to vector<1x64xf32>
    %238 = vector.broadcast %237 : vector<1x64xf32> to vector<8x64xf32>
    %239 = arith.addf %235, %238 : vector<8x64xf32>
    %cst_137 = arith.constant 0.000000e+00 : f32
    %240 = vector.broadcast %cst_137 : f32 to vector<8x64xf32>
    %241 = arith.maximumf %239, %240 : vector<8x64xf32>
    %c1_138 = arith.constant 1 : index
    %c0_139 = arith.constant 0 : index
    %c0_140 = arith.constant 0 : index
    %242 = vector.load %arg18[%c1_138, %c0_139, %c0_140] : memref<4x64x3xf32, #tpu.memory_space<vmem>>, vector<1x64x3xf32>
    %243 = vector.shape_cast %242 : vector<1x64x3xf32> to vector<64x3xf32>
    %cst_141 = arith.constant dense<0.000000e+00> : vector<8x3xf32>
    %244 = tpu.matmul %241, %243, %cst_141 {dimension_numbers = #tpu.dot_dimension_numbers<[1], [0], [0], [1], [0, 0, 1, 1], [], []>} : vector<8x64xf32>, vector<64x3xf32>, vector<8x3xf32> -> vector<8x3xf32>
    %c1_142 = arith.constant 1 : index
    %c0_143 = arith.constant 0 : index
    %c0_144 = arith.constant 0 : index
    %245 = vector.load %arg19[%c1_142, %c0_143, %c0_144] : memref<4x1x3xf32, #tpu.memory_space<vmem>>, vector<1x1x3xf32>
    %246 = vector.shape_cast %245 : vector<1x1x3xf32> to vector<1x3xf32>
    %247 = vector.broadcast %246 : vector<1x3xf32> to vector<8x3xf32>
    %248 = arith.addf %244, %247 : vector<8x3xf32>
    %249 = vector.extract_strided_slice %192 {offsets = [2, 0, 0], sizes = [1, 4, 32], strides = [1, 1, 1]} : vector<4x4x32xf32> to vector<1x4x32xf32>
    %250 = vector.shape_cast %249 : vector<1x4x32xf32> to vector<4x32xf32>
    %251 = vector.shape_cast %250 : vector<4x32xf32> to vector<1x4x32xf32>
    %252 = vector.broadcast %251 : vector<1x4x32xf32> to vector<8x4x32xf32>
    %253 = arith.mulf %171, %252 : vector<8x4x32xf32>
    %cst_145 = arith.constant dense<0.000000e+00> : vector<8x32xf32>
    %254 = vector.multi_reduction <add>, %253, %cst_145 [1] : vector<8x4x32xf32> to vector<8x32xf32>
    %255 = vector.extract_strided_slice %171 {offsets = [0, 2, 0], sizes = [8, 1, 32], strides = [1, 1, 1]} : vector<8x4x32xf32> to vector<8x1x32xf32>
    %256 = vector.shape_cast %255 : vector<8x1x32xf32> to vector<8x32xf32>
    %c2_146 = arith.constant 2 : index
    %c0_147 = arith.constant 0 : index
    %c0_148 = arith.constant 0 : index
    %257 = vector.load %arg16[%c2_146, %c0_147, %c0_148] : memref<4x64x64xf32, #tpu.memory_space<vmem>>, vector<1x64x64xf32>
    %258 = vector.shape_cast %257 : vector<1x64x64xf32> to vector<64x64xf32>
    %259 = vector.extract_strided_slice %258 {offsets = [0, 0], sizes = [32, 64], strides = [1, 1]} : vector<64x64xf32> to vector<32x64xf32>
    %cst_149 = arith.constant dense<0.000000e+00> : vector<8x64xf32>
    %260 = tpu.matmul %256, %259, %cst_149 {dimension_numbers = #tpu.dot_dimension_numbers<[1], [0], [0], [1], [0, 0, 1, 1], [], []>} : vector<8x32xf32>, vector<32x64xf32>, vector<8x64xf32> -> vector<8x64xf32>
    %261 = vector.extract_strided_slice %258 {offsets = [32, 0], sizes = [32, 64], strides = [1, 1]} : vector<64x64xf32> to vector<32x64xf32>
    %cst_150 = arith.constant dense<0.000000e+00> : vector<8x64xf32>
    %262 = tpu.matmul %254, %261, %cst_150 {dimension_numbers = #tpu.dot_dimension_numbers<[1], [0], [0], [1], [0, 0, 1, 1], [], []>} : vector<8x32xf32>, vector<32x64xf32>, vector<8x64xf32> -> vector<8x64xf32>
    %263 = arith.addf %260, %262 : vector<8x64xf32>
    %c2_151 = arith.constant 2 : index
    %c0_152 = arith.constant 0 : index
    %c0_153 = arith.constant 0 : index
    %264 = vector.load %arg17[%c2_151, %c0_152, %c0_153] : memref<4x1x64xf32, #tpu.memory_space<vmem>>, vector<1x1x64xf32>
    %265 = vector.shape_cast %264 : vector<1x1x64xf32> to vector<1x64xf32>
    %266 = vector.broadcast %265 : vector<1x64xf32> to vector<8x64xf32>
    %267 = arith.addf %263, %266 : vector<8x64xf32>
    %cst_154 = arith.constant 0.000000e+00 : f32
    %268 = vector.broadcast %cst_154 : f32 to vector<8x64xf32>
    %269 = arith.maximumf %267, %268 : vector<8x64xf32>
    %c2_155 = arith.constant 2 : index
    %c0_156 = arith.constant 0 : index
    %c0_157 = arith.constant 0 : index
    %270 = vector.load %arg18[%c2_155, %c0_156, %c0_157] : memref<4x64x3xf32, #tpu.memory_space<vmem>>, vector<1x64x3xf32>
    %271 = vector.shape_cast %270 : vector<1x64x3xf32> to vector<64x3xf32>
    %cst_158 = arith.constant dense<0.000000e+00> : vector<8x3xf32>
    %272 = tpu.matmul %269, %271, %cst_158 {dimension_numbers = #tpu.dot_dimension_numbers<[1], [0], [0], [1], [0, 0, 1, 1], [], []>} : vector<8x64xf32>, vector<64x3xf32>, vector<8x3xf32> -> vector<8x3xf32>
    %c2_159 = arith.constant 2 : index
    %c0_160 = arith.constant 0 : index
    %c0_161 = arith.constant 0 : index
    %273 = vector.load %arg19[%c2_159, %c0_160, %c0_161] : memref<4x1x3xf32, #tpu.memory_space<vmem>>, vector<1x1x3xf32>
    %274 = vector.shape_cast %273 : vector<1x1x3xf32> to vector<1x3xf32>
    %275 = vector.broadcast %274 : vector<1x3xf32> to vector<8x3xf32>
    %276 = arith.addf %272, %275 : vector<8x3xf32>
    %277 = vector.extract_strided_slice %192 {offsets = [3, 0, 0], sizes = [1, 4, 32], strides = [1, 1, 1]} : vector<4x4x32xf32> to vector<1x4x32xf32>
    %278 = vector.shape_cast %277 : vector<1x4x32xf32> to vector<4x32xf32>
    %279 = vector.shape_cast %278 : vector<4x32xf32> to vector<1x4x32xf32>
    %280 = vector.broadcast %279 : vector<1x4x32xf32> to vector<8x4x32xf32>
    %281 = arith.mulf %171, %280 : vector<8x4x32xf32>
    %cst_162 = arith.constant dense<0.000000e+00> : vector<8x32xf32>
    %282 = vector.multi_reduction <add>, %281, %cst_162 [1] : vector<8x4x32xf32> to vector<8x32xf32>
    %283 = vector.extract_strided_slice %171 {offsets = [0, 3, 0], sizes = [8, 1, 32], strides = [1, 1, 1]} : vector<8x4x32xf32> to vector<8x1x32xf32>
    %284 = vector.shape_cast %283 : vector<8x1x32xf32> to vector<8x32xf32>
    %c3_163 = arith.constant 3 : index
    %c0_164 = arith.constant 0 : index
    %c0_165 = arith.constant 0 : index
    %285 = vector.load %arg16[%c3_163, %c0_164, %c0_165] : memref<4x64x64xf32, #tpu.memory_space<vmem>>, vector<1x64x64xf32>
    %286 = vector.shape_cast %285 : vector<1x64x64xf32> to vector<64x64xf32>
    %287 = vector.extract_strided_slice %286 {offsets = [0, 0], sizes = [32, 64], strides = [1, 1]} : vector<64x64xf32> to vector<32x64xf32>
    %cst_166 = arith.constant dense<0.000000e+00> : vector<8x64xf32>
    %288 = tpu.matmul %284, %287, %cst_166 {dimension_numbers = #tpu.dot_dimension_numbers<[1], [0], [0], [1], [0, 0, 1, 1], [], []>} : vector<8x32xf32>, vector<32x64xf32>, vector<8x64xf32> -> vector<8x64xf32>
    %289 = vector.extract_strided_slice %286 {offsets = [32, 0], sizes = [32, 64], strides = [1, 1]} : vector<64x64xf32> to vector<32x64xf32>
    %cst_167 = arith.constant dense<0.000000e+00> : vector<8x64xf32>
    %290 = tpu.matmul %282, %289, %cst_167 {dimension_numbers = #tpu.dot_dimension_numbers<[1], [0], [0], [1], [0, 0, 1, 1], [], []>} : vector<8x32xf32>, vector<32x64xf32>, vector<8x64xf32> -> vector<8x64xf32>
    %291 = arith.addf %288, %290 : vector<8x64xf32>
    %c3_168 = arith.constant 3 : index
    %c0_169 = arith.constant 0 : index
    %c0_170 = arith.constant 0 : index
    %292 = vector.load %arg17[%c3_168, %c0_169, %c0_170] : memref<4x1x64xf32, #tpu.memory_space<vmem>>, vector<1x1x64xf32>
    %293 = vector.shape_cast %292 : vector<1x1x64xf32> to vector<1x64xf32>
    %294 = vector.broadcast %293 : vector<1x64xf32> to vector<8x64xf32>
    %295 = arith.addf %291, %294 : vector<8x64xf32>
    %cst_171 = arith.constant 0.000000e+00 : f32
    %296 = vector.broadcast %cst_171 : f32 to vector<8x64xf32>
    %297 = arith.maximumf %295, %296 : vector<8x64xf32>
    %c3_172 = arith.constant 3 : index
    %c0_173 = arith.constant 0 : index
    %c0_174 = arith.constant 0 : index
    %298 = vector.load %arg18[%c3_172, %c0_173, %c0_174] : memref<4x64x3xf32, #tpu.memory_space<vmem>>, vector<1x64x3xf32>
    %299 = vector.shape_cast %298 : vector<1x64x3xf32> to vector<64x3xf32>
    %cst_175 = arith.constant dense<0.000000e+00> : vector<8x3xf32>
    %300 = tpu.matmul %297, %299, %cst_175 {dimension_numbers = #tpu.dot_dimension_numbers<[1], [0], [0], [1], [0, 0, 1, 1], [], []>} : vector<8x64xf32>, vector<64x3xf32>, vector<8x3xf32> -> vector<8x3xf32>
    %c3_176 = arith.constant 3 : index
    %c0_177 = arith.constant 0 : index
    %c0_178 = arith.constant 0 : index
    %301 = vector.load %arg19[%c3_176, %c0_177, %c0_178] : memref<4x1x3xf32, #tpu.memory_space<vmem>>, vector<1x1x3xf32>
    %302 = vector.shape_cast %301 : vector<1x1x3xf32> to vector<1x3xf32>
    %303 = vector.broadcast %302 : vector<1x3xf32> to vector<8x3xf32>
    %304 = arith.addf %300, %303 : vector<8x3xf32>
    %305 = tpu.concatenate %220, %248, %276, %304 in 1 : vector<8x3xf32>, vector<8x3xf32>, vector<8x3xf32>, vector<8x3xf32> -> vector<8x12xf32>
    %c0_179 = arith.constant 0 : index
    %c0_180 = arith.constant 0 : index
    %306 = vector.load %arg20[%c0_179, %c0_180] : memref<8x12xf32, #tpu.memory_space<vmem>>, vector<8x12xf32>
    tpu.vector_store %arg20[%c0_179, %c0_180], %305 {strides = array<i32>} : memref<8x12xf32, #tpu.memory_space<vmem>>, vector<8x12xf32>,
    return
  }
}

</mosaic_0001>

<bundles_post_ra>
// kernel: dq_forward.1
= control target key start
LH: loop header
LB: loop body
LE: loop exit
PB: predicated region body
PF: predicated region fallthrough
CT: control target
= control target key end

     0   :  { %v12399_v1 = vmov 0.0|0.0   ;;  %vm10229_vm0 = vmmov 0   ;;  %v12401_v4 = vmov 0.0   ;;  %s12397_s27 = smov 112   ;;  %vm75_vm1 = vcmask 130048   ;;  %s10238_s21 = smov 56   ;;  %s12372_s0 = inlined_call_operand.vmem [shape: f32[8,64], index: 0, kind: input, shape index: {}]   ;;  %s12373_s1 = inlined_call_operand.vmem [shape: f32[4,16,64], index: 1, kind: input, shape index: {}]   ;;  %s12374_s3 = inlined_call_operand.vmem [shape: f32[4,64,32], index: 3, kind: input, shape index: {}]   ;;  %s12375_s2 = inlined_call_operand.vmem [shape: f32[4,1,64], index: 2, kind: input, shape index: {}]   ;;  %s12376_s4 = inlined_call_operand.vmem [shape: f32[4,1,32], index: 4, kind: input, shape index: {}]   ;;  %s12377_s5 = inlined_call_operand.vmem [shape: f32[32,96], index: 5, kind: input, shape index: {}]   ;;  %s12378_s6 = inlined_call_operand.vmem [shape: f32[1,96], index: 6, kind: input, shape index: {}]   ;;  %s12379_s7 = inlined_call_operand.vmem [shape: f32[32,32], index: 7, kind: input, shape index: {}]   ;;  %s12380_s12 = inlined_call_operand.vmem [shape: f32[32,32], index: 12, kind: input, shape index: {}]   ;;  %s12381_s9 = inlined_call_operand.vmem [shape: f32[32,32], index: 9, kind: input, shape index: {}]   ;;  %s12382_s11 = inlined_call_operand.vmem [shape: f32[16,32], index: 11, kind: input, shape index: {}]   ;;  %s12383_s14 = inlined_call_operand.vmem [shape: f32[32,32], index: 14, kind: input, shape index: {}]   ;;  %s12384_s8 = inlined_call_operand.vmem [shape: f32[1,32], index: 8, kind: input, shape index: {}]   ;;  %s12385_s13 = inlined_call_operand.vmem [shape: f32[1,32], index: 13, kind: input, shape index: {}]   ;;  %s12386_s16 = inlined_call_operand.vmem [shape: f32[4,64,64], index: 16, kind: input, shape index: {}]   ;;  %s12387_s10 = inlined_call_operand.vmem [shape: f32[1,32], index: 10, kind: input, shape index: {}]   ;;  %s12388_s15 = inlined_call_operand.vmem [shape: f32[1,32], index: 15, kind: input, shape index: {}]   ;;  %s12389_s18 = inlined_call_operand.vmem [shape: f32[4,64,3], index: 18, kind: input, shape index: {}]   ;;  %s12390_s17 = inlined_call_operand.vmem [shape: f32[4,1,64], index: 17, kind: input, shape index: {}]   ;;  %s12391_s19 = inlined_call_operand.vmem [shape: f32[4,1,3], index: 19, kind: input, shape index: {}]   ;;  %s12392_s20 = inlined_call_operand.vmem [shape: f32[8,12], index: 20, kind: output, shape index: {}]  }
   0x1   :  { %12417 = sst [smem:[#allocation15_spill]] %s12372_s0  ;;  %9883 = vmatprep.subr.bf16.mxu0 %v12399_v1  ;;  %9235 = vmatprep.mubr.msk.f32.mxu0 %vm10229_vm0, %v12401_v4  ;;  %s10232_s0 = smov 80   ;;  %vm165_vm2 = vcmask 523264   ;;  %vm1099_vm3 = vcmask 1040384   ;;  %vm1108_vm4 = vcmask 1041408   ;;  %vm1117_vm5 = vcmask 1042432  }
   0x2   :  { %12418 = sst [smem:[#allocation16_spill]] %s12373_s1  ;;  %s12422_s23 = sld [smem:[#allocation15_spill]]  ;;  %9886 = vmatprep.subr.bf16.mxu1 %v12399_v1  ;;  %9254 = vmatprep.mubr.msk.f32.mxu1 %vm10229_vm0, %v12401_v4  ;;  %vm1149_vm6 = vcmask 261120   ;;  %vm1253_vm7 = vcmask 64512   ;;  %vm1963_vm8 = vcmask 1043456   ;;  %vm1868_vm9 = vcmask 27648  }
   0x3   :  { %12419 = sst [smem:[#allocation17_spill]] %s12374_s3  ;;  %s12423_s25 = sld [smem:[#allocation16_spill]]  ;;  %vm1959_vm10 = vcmask 31744   ;;  %vm6695_vm11 = vcmask 195584   ;;  %vm7237_vm12 = vcmask 1041409   ;;  %vm7239_vm13 = vcmask 1042434  }
   0x4   :  { %12420 = sst [smem:[#allocation18_spill]] %s12375_s2  ;;  %s12424_s22 = sld [smem:[#allocation17_spill]]  ;;  %vm7241_vm14 = vcmask 1043459  }
   0x5   :  { %12421 = sst [smem:[#allocation19_spill]] %s12376_s4  ;;  %s10233_s4 = smov 96  }
   0x6   :  { %s12425_s3 = sld [smem:[#allocation18_spill]]  ;;  %s12427_s1 = smov 112  }
   0x7   :  { %s10240_s24 = smov 72   ;;  %s10241_s2 = smov 104  }
   0x8   :  { %v65_v0 = vld [vmem:[%s12422_s23] sm:$0xff]  ;;  %s10239_s23 = smov 48   ;;  %s10244_s26 = smov 16  }
   0x9   :  { %v66_v2 = vld [vmem:[%s12423_s25] sm:$0xff]  ;;  %v67_v3 = vld [vmem:[%s12423_s25 + $0x8] sm:$0xff]  ;;  %251 = vrot.lane.b32.xlu0 %v65_v0, %s12397_s27  ;;  %v8672_v6 = vld [vmem:[%s12423_s25 + $0x10] sm:$0xff] }
   0xa   :  { %v9884_v5 = vpack.c.bf16 %v67_v3, %v66_v2  ;;  %v8673_v7 = vld [vmem:[%s12423_s25 + $0x18] sm:$0xff]  ;;  %605 = vrot.lane.b32.xlu1 %v65_v0, %s10232_s0  ;;  %v150_v8 = vld [vmem:[%s12424_s22] sm:$0xff]  ;;  %v151_v9 = vld [vmem:[%s12424_s22 + $0x8] sm:$0xff] }
   0xb   :  { %v152_v10 = vld [vmem:[%s12424_s22 + $0x10] sm:$0xff]  ;;  %v9899_v11 = vpack.c.bf16 %v8673_v7, %v8672_v6  ;;  %v9887_v12 = vpack.c.bf16 %v151_v9, %v150_v8  ;;  %v153_v13 = vld [vmem:[%s12424_s22 + $0x18] sm:$0xff]  ;;  %v154_v15 = vld [vmem:[%s12424_s22 + $0x20] sm:$0xff] }
   0xc   :  { %9885 = vmatpush3.bf16.msra.mxu0 %v9884_v5  ;;  %v9890_v14 = vpack.c.bf16 %v153_v13, %v152_v10  ;;  %v155_v16 = vld [vmem:[%s12424_s22 + $0x28] sm:$0xff]  ;;  %v156_v18 = vld [vmem:[%s12424_s22 + $0x30] sm:$0xff]  ;;  %v157_v19 = vld [vmem:[%s12424_s22 + $0x38] sm:$0xff] }
   0xd   :  { %9898 = vmatprep.subr.bf16.mxu0 %v12399_v1  ;;  %428 = vrot.lane.b32.xlu0 %v65_v0, %s10233_s4  ;;  %v9893_v17 = vpack.c.bf16 %v155_v16, %v154_v15  ;;  %v9896_v20 = vpack.c.bf16 %v157_v19, %v156_v18  ;;  %v8677_v21 = vld [vmem:[%s12424_s22 + $0x40] sm:$0xff]  ;;  %v8678_v22 = vld [vmem:[%s12424_s22 + $0x48] sm:$0xff]  ;;  %v8679_v24 = vld [vmem:[%s12424_s22 + $0x50] sm:$0xff]  ;;  %v776_v19 = vlaneseq }
   0xe   :  { %9888 = vmatpush3.bf16.msra.mxu1 %v9887_v12  ;;  %v9902_v23 = vpack.c.bf16 %v8678_v22, %v8677_v21  ;;  %v8680_v25 = vld [vmem:[%s12424_s22 + $0x58] sm:$0xff]  ;;  %v8681_v28 = vld [vmem:[%s12424_s22 + $0x60] sm:$0xff]  ;;  %v8682_v29 = vld [vmem:[%s12424_s22 + $0x68] sm:$0xff] }
   0xf   :  { %9236 = vmatmul.mubr.msk.f32.vlgmr.msra.gmra.mrb[0].mxu0 %vm75_vm1, %v65_v0  ;;  %9889 = vmatprep.subr.bf16.mxu1 %v12399_v1  ;;  %v9905_v27 = vpack.c.bf16 %v8680_v25, %v8679_v24  ;;  %v9908_v30 = vpack.c.bf16 %v8682_v29, %v8681_v28  ;;  %v8683_v31 = vld [vmem:[%s12424_s22 + $0x70] sm:$0xff]  ;;  %v8684_v32 = vld [vmem:[%s12424_s22 + $0x78] sm:$0xff]  ;;  %v8668_v34 = vld [vmem:[%s12425_s3] ss:$0 sm:$0xff]  ;;  %v10532_v22 = vshrl.u32 %v776_v19, 7 }
  0x10   :  { %9900 = vmatpush3.bf16.msra.mxu0 %v9899_v11  ;;  %9261 = vmatprep.mubr.msk.f32.mxu0 %vm10229_vm0, %v12401_v4  ;;  %v9911_v33 = vpack.c.bf16 %v8684_v32, %v8683_v31  ;;  %v8693_v35 = vld [vmem:[%s12424_s22 + $0x80] sm:$0xff]  ;;  %v8694_v36 = vld [vmem:[%s12424_s22 + $0x88] sm:$0xff]  ;;  %v8695_v42 = vld [vmem:[%s12424_s22 + $0x90] sm:$0xff] }
  0x11   :  { %9901 = vmatprep.subr.bf16.mxu0 %v12399_v1  ;;  %v9917_v40 = vpack.c.bf16 %v8694_v36, %v8693_v35  ;;  %v8696_v43 = vld [vmem:[%s12424_s22 + $0x98] sm:$0xff]  ;;  %v8675_v45 = vld [vmem:[%s12425_s3 + $0x1] ss:$0 sm:$0xff]  ;;  %v8689_v47 = vld [vmem:[%s12423_s25 + $0x28] sm:$0xff]  ;;  %vm7142_vm15 = vcmp.eq.s32.totalorder %v10532_v22, 2 }
  0x12   :  { %9891 = vmatpush3.bf16.msra.mxu1 %v9890_v14  ;;  %v9920_v44 = vpack.c.bf16 %v8696_v43, %v8695_v42  ;;  %v8688_v46 = vld [vmem:[%s12423_s25 + $0x20] sm:$0xff]  ;;  %v8704_v53 = vld [vmem:[%s12423_s25 + $0x30] sm:$0xff]  ;;  %v8705_v54 = vld [vmem:[%s12423_s25 + $0x38] sm:$0xff]  ;;  %s12426_s25 = sld [smem:[#allocation19_spill]] }
  0x13   :  { %9892 = vmatprep.subr.bf16.mxu1 %v12399_v1  ;;  %v9914_v51 = vpack.c.bf16 %v8689_v47, %v8688_v46  ;;  %v9929_v56 = vpack.c.bf16 %v8705_v54, %v8704_v53  ;;  %v8709_v57 = vld [vmem:[%s12424_s22 + $0xc0] sm:$0xff]  ;;  %v8710_v58 = vld [vmem:[%s12424_s22 + $0xc8] sm:$0xff]  ;;  %v8711_v63 = vld [vmem:[%s12424_s22 + $0xd0] sm:$0xff] }
  0x14   :  { %v9932_v60 = vpack.c.bf16 %v8710_v58, %v8709_v57  ;;  %v8697_v61 = vld [vmem:[%s12424_s22 + $0xa0] sm:$0xff]  ;;  %v8698_v62 = vld [vmem:[%s12424_s22 + $0xa8] sm:$0xff]  ;;  %v8712_v2 = vld [vmem:[%s12424_s22 + $0xd8] sm:$0xff] }
  0x15   :  { %v9923_v0 = vpack.c.bf16 %v8698_v62, %v8697_v61  ;;  %v9935_v3 = vpack.c.bf16 %v8712_v2, %v8711_v63  ;;  %v8699_v5 = vld [vmem:[%s12424_s22 + $0xb0] sm:$0xff]  ;;  %v8700_v6 = vld [vmem:[%s12424_s22 + $0xb8] sm:$0xff]  ;;  %v8713_v7 = vld [vmem:[%s12424_s22 + $0xe0] sm:$0xff] }
  0x16   :  { %9894 = vmatpush3.bf16.msra.mxu1 %v9893_v17  ;;  %v9926_v8 = vpack.c.bf16 %v8700_v6, %v8699_v5  ;;  %v8714_v9 = vld [vmem:[%s12424_s22 + $0xe8] sm:$0xff]  ;;  %v8715_v11 = vld [vmem:[%s12424_s22 + $0xf0] sm:$0xff]  ;;  %v8716_v12 = vld [vmem:[%s12424_s22 + $0xf8] sm:$0xff]  ;;  %v10234_v17 = vmov 1966171168   ;;  %s10243_s22 = smov 8  }
  0x17   :  { %9895 = vmatprep.subr.bf16.mxu1 %v12399_v1  ;;  %v9938_v10 = vpack.c.bf16 %v8714_v9, %v8713_v7  ;;  %v9941_v13 = vpack.c.bf16 %v8716_v12, %v8715_v11  ;;  %v774_v18 = vunpack.c.l.s4 %v10234_v17 }
  0x18   :  { %v8670_v16 = vld [vmem:[%s12426_s25] ss:$0 sm:$0xff] }
  0x19   :  { %v775_v21 = vunpack.c.0.s8 %v774_v18 }
  0x1a   :  { %9897 = vmatpush3.bf16.msra.mxu1 %v9896_v20 }
  0x1b   :  { %9916 = vmatprep.subr.bf16.mxu1 %v12399_v1  ;;  %v10535_v24 = vsub.s32 %v775_v21, %v10532_v22  ;;  %v1126_v21 = vld [vmem:[%s12377_s5] sm:$0xff] }
  0x7b   :  { %v252_v26 = vpop.permute.xlu0 %251 }
  0x7c   :  { %9262 = vmatmul.mubr.msk.f32.vlgmr.msra.gmra.mrb[2].mxu0 %vm75_vm1, %v252_v26  ;;  %v606_v59 = vpop.permute.xlu1 %605 }
  0x7d   :  { %9903 = vmatpush3.bf16.msra.mxu0 %v9902_v23  ;;  %9280 = vmatprep.mubr.msk.f32.mxu0 %vm10229_vm0, %v12401_v4 }
  0x7e   :  { %9904 = vmatprep.subr.bf16.mxu0 %v12399_v1 }
  0x7f   :  { %v429_v55 = vpop.permute.xlu0 %428 }
  0x81   :  { %9906 = vmatpush3.bf16.msra.mxu0 %v9905_v27  ;;  %v8686_v27 = vld [vmem:[%s12426_s25 + $0x1] ss:$0 sm:$0xff] }
  0x82   :  { %9907 = vmatprep.subr.bf16.mxu0 %v12399_v1 }
  0x85   :  { %9909 = vmatpush3.bf16.msra.mxu0 %v9908_v30 }
  0x86   :  { %9910 = vmatprep.subr.bf16.mxu0 %v12399_v1 }
  0x89   :  { %9912 = vmatpush3.bf16.msra.mxu0 %v9911_v33  ;;  %v8691_v33 = vld [vmem:[%s12425_s3 + $0x2] ss:$0 sm:$0xff] }
  0x8a   :  { %9913 = vmatprep.subr.bf16.mxu0 %v12399_v1 }
  0xe2   :  { %v145_v37 = vpop.f32.mrb[0].mxu0 }
  0xe3   :  { %v146_v38 = vadd.f32 %v8668_v34, %v145_v37  ;;  %v9237_v39 = vpop.f32.mrb[1].mxu0 }
  0xe5   :  { %v149_v41 = vmax.f32 %v146_v38, 0.0 }
  0xe7   :  { %9255 = vmatmul.mubr.msk.f32.vlgmr.msra.gmra.mrb[0].mxu1 %vm165_vm2, %v149_v41 }
  0xe8   :  { %9918 = vmatpush3.bf16.msra.mxu1 %v9917_v40  ;;  %9306 = vmatprep.mubr.msk.f32.mxu1 %vm10229_vm0, %v12401_v4 }
  0xe9   :  { %9919 = vmatprep.subr.bf16.mxu1 %v12399_v1 }
  0xec   :  { %9921 = vmatpush3.bf16.msra.mxu1 %v9920_v44  ;;  %v10550_v44 = vsub.s32 0, %v10532_v22 }
  0xed   :  { %9922 = vmatprep.subr.bf16.mxu1 %v12399_v1 }
  0xf0   :  { %9924 = vmatpush3.bf16.msra.mxu1 %v9923_v0 }
  0xf1   :  { %9925 = vmatprep.subr.bf16.mxu1 %v12399_v1 }
  0xf4   :  { %9927 = vmatpush3.bf16.msra.mxu1 %v9926_v8 }
 0x14f   :  { %v321_v48 = vpop.f32.mrb[2].mxu0 }
 0x150   :  { %v322_v49 = vadd.f32 %v8675_v45, %v321_v48  ;;  %v9263_v50 = vpop.f32.mrb[3].mxu0 }
 0x152   :  { %v325_v52 = vmax.f32 %v322_v49, 0.0  ;;  %v8707_v49 = vld [vmem:[%s12425_s3 + $0x3] ss:$0 sm:$0xff]  ;;  %s10237_s3 = smov 120  }
 0x154   :  { %9281 = vmatmul.mubr.msk.f32.vlgmr.msra.gmra.mrb[4].mxu0 %vm165_vm2, %v325_v52 }
 0x155   :  { %9915 = vmatpush3.bf16.msra.mxu0 %v9914_v51  ;;  %9287 = vmatprep.mubr.msk.f32.mxu0 %vm10229_vm0, %v12401_v4 }
 0x156   :  { %9928 = vmatprep.subr.bf16.mxu0 %v12399_v1 }
 0x158   :  { %9288 = vmatmul.mubr.msk.f32.vlgmr.msra.gmra.mrb[6].mxu0 %vm75_vm1, %v429_v55 }
 0x159   :  { %9930 = vmatpush3.bf16.msra.mxu0 %v9929_v56  ;;  %9313 = vmatprep.mubr.msk.f32.mxu0 %vm10229_vm0, %v12401_v4 }
 0x15a   :  { %9931 = vmatprep.subr.bf16.mxu0 %v12399_v1 }
 0x15c   :  { %9314 = vmatmul.mubr.msk.f32.vlgmr.msra.gmra.mrb[8].mxu0 %vm75_vm1, %v606_v59 }
 0x15d   :  { %9933 = vmatpush3.bf16.msra.mxu0 %v9932_v60  ;;  %9332 = vmatprep.mubr.msk.f32.mxu0 %vm10229_vm0, %v12401_v4 }
 0x15e   :  { %9934 = vmatprep.subr.bf16.mxu0 %v12399_v1 }
 0x161   :  { %9936 = vmatpush3.bf16.msra.mxu0 %v9935_v3 }
 0x162   :  { %9937 = vmatprep.subr.bf16.mxu0 %v12399_v1 }
 0x165   :  { %9939 = vmatpush3.bf16.msra.mxu0 %v9938_v10 }
 0x166   :  { %9940 = vmatprep.subr.bf16.mxu0 %v12399_v1 }
 0x169   :  { %9942 = vmatpush3.bf16.msra.mxu0 %v9941_v13 }
 0x16a   :  { %9349 = vmatprep.subr.mxu0 %v12401_v4 }
 0x1ba   :  { %v235_v14 = vpop.f32.mrb[0].mxu1 }
 0x1bb   :  { %v9256_v15 = vpop.f32.mrb[1].mxu1  ;;  %v236_v20 = vadd.f32 %v8670_v16, %v235_v14 }
 0x1bd   :  { %v239_v23 = vmax.f32 %v236_v20, 0.0 }
 0x1bf   :  { %v772_v25 = vcombine.high %v239_v23, %v239_v23  ;;  %v779_v26 = vrot.slane %v239_v23, %v10535_v24  ;;  %v1127_v23 = vld [vmem:[%s12377_s5 + $0x8] sm:$0xff] }
 0x1c1   :  { %v786_v28 = vrot.slane %v772_v25, %v10535_v24  ;;  %v787_v32 = vcombine.high %v779_v26, %v779_v26  ;;  %v795_v36 = vrot.slane %v779_v26, %v10535_v24  ;;  %v9943_v25 = vpack.c.bf16 %v1127_v23, %v1126_v21  ;;  %v1128_v26 = vld [vmem:[%s12377_s5 + $0x10] sm:$0xff] }
 0x1c3   :  { %v788_v35 = vcombine.high %v786_v28, %v786_v28  ;;  %v802_v42 = vrot.slane %v786_v28, %v10535_v24  ;;  %v809_v43 = vrot.slane %v787_v32, %v10535_v24  ;;  %v817_v51 = vcombine.high %v795_v36, %v795_v36  ;;  %9944 = vmatprep.subr.bf16.mxu1 %v9943_v25 }
 0x1c5   :  { %v816_v50 = vrot.slane %v788_v35, %v10535_v24  ;;  %v818_v58 = vcombine.high %v802_v42, %v802_v42  ;;  %v819_v59 = vcombine.high %v809_v43, %v809_v43 }
 0x1c7   :  { %v820_v12 = vcombine.high %v816_v50, %v816_v50 }
 0x227   :  { %v412_v29 = vpop.f32.mrb[4].mxu0 }
 0x228   :  { %v413_v30 = vadd.f32 %v8686_v27, %v412_v29  ;;  %v9282_v31 = vpop.f32.mrb[5].mxu0  ;;  %v1129_v27 = vld [vmem:[%s12377_s5 + $0x18] sm:$0xff]  ;;  %v8702_v29 = vld [vmem:[%s12426_s25 + $0x2] ss:$0 sm:$0xff] }
 0x229   :  { %v9947_v28 = vpack.c.bf16 %v1129_v27, %v1128_v26 }
 0x22a   :  { %v416_v34 = vmax.f32 %v413_v30, 0.0 }
 0x22b   :  { %v498_v37 = vpop.f32.mrb[6].mxu0 }
 0x22c   :  { %v830_v38 = vcombine.high %v416_v34, %v416_v34  ;;  %v837_v39 = vrot.slane %v416_v34, %v10535_v24  ;;  %v499_v40 = vadd.f32 %v8691_v33, %v498_v37  ;;  %v9289_v41 = vpop.f32.mrb[7].mxu0  ;;  %v8718_v34 = vld [vmem:[%s12426_s25 + $0x3] ss:$0 sm:$0xff] }
 0x22e   :  { %v844_v45 = vrot.slane %v830_v38, %v10535_v24  ;;  %v845_v46 = vcombine.high %v837_v39, %v837_v39  ;;  %v853_v47 = vrot.slane %v837_v39, %v10535_v24  ;;  %v502_v48 = vmax.f32 %v499_v40, 0.0 }
 0x22f   :  { %v675_v52 = vpop.f32.mrb[8].mxu0 }
 0x230   :  { %v846_v53 = vcombine.high %v844_v45, %v844_v45  ;;  %v860_v54 = vrot.slane %v844_v45, %v10535_v24  ;;  %v867_v55 = vrot.slane %v845_v46, %v10535_v24  ;;  %v875_v56 = vcombine.high %v853_v47, %v853_v47  ;;  %9307 = vmatmul.mubr.msk.f32.vlgmr.msra.gmra.mrb[2].mxu1 %vm165_vm2, %v502_v48  ;;  %v9315_v57 = vpop.f32.mrb[9].mxu0 }
 0x231   :  { %v982_v60 = vrot.slane %v853_v47, %v10550_v44  ;;  %v676_v61 = vadd.f32 %v8707_v49, %v675_v52  ;;  %9946 = vmatpush3.bf16.msra.mxu1 %v9943_v25 }
 0x232   :  { %v874_v62 = vrot.slane %v846_v53, %v10535_v24  ;;  %v876_v63 = vcombine.high %v860_v54, %v860_v54  ;;  %v877_v0 = vcombine.high %v867_v55, %v867_v55  ;;  %v986_v2 = vrot.slane %v867_v55, %v10550_v44  ;;  %9948 = vmatprep.subr.bf16.mxu1 %v9947_v28 }
 0x233   :  { %v990_v3 = vrot.slane %v875_v56, %v10550_v44  ;;  %v998_v5 = vrot.slane %v860_v54, %v10550_v44  ;;  %v10567_v6 = vsel %vm1099_vm3, %v795_v36, %v982_v60  ;;  %v679_v7 = vmax.f32 %v676_v61, 0.0 }
 0x234   :  { %v878_v8 = vcombine.high %v874_v62, %v874_v62  ;;  %v994_v9 = vrot.slane %v877_v0, %v10550_v44  ;;  %v1002_v10 = vrot.slane %v874_v62, %v10550_v44  ;;  %v1006_v11 = vrot.slane %v876_v63, %v10550_v44 }
 0x235   :  { %v1102_v13 = vsel %vm1099_vm3, %v817_v51, %v990_v3  ;;  %9333 = vmatmul.mubr.msk.f32.vlgmr.msra.gmra.mrb[10].mxu0 %vm165_vm2, %v679_v7  ;;  %v10575_v14 = vsel %vm1099_vm3, %v809_v43, %v986_v2  ;;  %v10578_v15 = vsel %vm1099_vm3, %v802_v42, %v998_v5  ;;  %9950 = vmatpush3.bf16.msra.mxu1 %v9947_v28 }
 0x236   :  { %v1010_v16 = vrot.slane %v878_v8, %v10550_v44  ;;  %v10582_v17 = vsel %vm1099_vm3, %v819_v59, %v994_v9  ;;  %v10585_v18 = vsel %vm1099_vm3, %v816_v50, %v1002_v10  ;;  %v10588_v19 = vsel %vm1099_vm3, %v818_v58, %v1006_v11  ;;  %9351 = vmatprep.mubr.msk.f32.mxu0 %vm10229_vm0, %v12401_v4 }
 0x237   :  { %9359 = vmatprep.subr.mxu1 %v12401_v4 }
 0x238   :  { %v10593_v20 = vsel %vm1099_vm3, %v820_v12, %v1010_v16  ;;  %vm7143_vm3 = vcmp.eq.s32.totalorder %v10532_v22, 3 }
 0x303   :  { %v589_v30 = vpop.f32.mrb[2].mxu1 }
 0x304   :  { %v590_v31 = vadd.f32 %v8702_v29, %v589_v30  ;;  %v9308_v32 = vpop.f32.mrb[3].mxu1 }
 0x306   :  { %v593_v33 = vmax.f32 %v590_v31, 0.0 }
 0x308   :  { %v880_v35 = vcombine.high %v593_v33, %v593_v33  ;;  %v887_v36 = vrot.slane %v593_v33, %v10535_v24  ;;  %v766_v37 = vpop.f32.mrb[10].mxu0 }
 0x309   :  { %v767_v38 = vadd.f32 %v8718_v34, %v766_v37  ;;  %v9334_v39 = vpop.f32.mrb[11].mxu0 }
 0x30a   :  { %v894_v40 = vrot.slane %v880_v35, %v10535_v24  ;;  %v895_v41 = vcombine.high %v887_v36, %v887_v36  ;;  %v903_v42 = vrot.slane %v887_v36, %v10535_v24 }
 0x30b   :  { %v770_v43 = vmax.f32 %v767_v38, 0.0 }
 0x30c   :  { %v896_v45 = vcombine.high %v894_v40, %v894_v40  ;;  %v910_v46 = vrot.slane %v894_v40, %v10535_v24  ;;  %v917_v47 = vrot.slane %v895_v41, %v10535_v24  ;;  %v925_v48 = vcombine.high %v903_v42, %v903_v42 }
 0x30d   :  { %v1022_v49 = vrot.slane %v903_v42, %v10550_v44  ;;  %v930_v50 = vcombine.high %v770_v43, %v770_v43  ;;  %v937_v51 = vrot.slane %v770_v43, %v10535_v24 }
 0x30e   :  { %v924_v52 = vrot.slane %v896_v45, %v10535_v24  ;;  %v926_v53 = vcombine.high %v910_v46, %v910_v46  ;;  %v927_v54 = vcombine.high %v917_v47, %v917_v47  ;;  %v1026_v55 = vrot.slane %v917_v47, %v10550_v44 }
 0x30f   :  { %v1030_v56 = vrot.slane %v925_v48, %v10550_v44  ;;  %v1038_v57 = vrot.slane %v910_v46, %v10550_v44  ;;  %v944_v58 = vrot.slane %v930_v50, %v10535_v24  ;;  %v945_v59 = vcombine.high %v937_v51, %v937_v51 }
 0x310   :  { %v928_v60 = vcombine.high %v924_v52, %v924_v52  ;;  %v1034_v61 = vrot.slane %v927_v54, %v10550_v44  ;;  %v1042_v62 = vrot.slane %v924_v52, %v10550_v44  ;;  %v1046_v63 = vrot.slane %v926_v53, %v10550_v44 }
 0x311   :  { %v1111_v0 = vsel %vm1108_vm4, %v1102_v13, %v1030_v56  ;;  %v946_v2 = vcombine.high %v944_v58, %v944_v58  ;;  %v953_v3 = vrot.slane %v937_v51, %v10535_v24  ;;  %v960_v5 = vrot.slane %v944_v58, %v10535_v24 }
 0x312   :  { %v1050_v7 = vrot.slane %v928_v60, %v10550_v44  ;;  %v967_v8 = vrot.slane %v945_v59, %v10535_v24  ;;  %v1109_v9 = vsel %vm1108_vm4, %v10567_v6, %v1022_v49  ;;  %v1110_v10 = vsel %vm1108_vm4, %v10575_v14, %v1026_v55 }
 0x313   :  { %v974_v11 = vrot.slane %v946_v2, %v10535_v24  ;;  %v975_v12 = vcombine.high %v953_v3, %v953_v3  ;;  %v976_v16 = vcombine.high %v960_v5, %v960_v5  ;;  %v1062_v13 = vrot.slane %v953_v3, %v10550_v44 }
 0x314   :  { %v977_v21 = vcombine.high %v967_v8, %v967_v8  ;;  %v1066_v23 = vrot.slane %v967_v8, %v10550_v44  ;;  %v1078_v25 = vrot.slane %v960_v5, %v10550_v44  ;;  %v1112_v26 = vsel %vm1108_vm4, %v10582_v17, %v1034_v61 }
 0x315   :  { %v978_v27 = vcombine.high %v974_v11, %v974_v11  ;;  %v1070_v6 = vrot.slane %v975_v12, %v10550_v44  ;;  %v1082_v28 = vrot.slane %v974_v11, %v10550_v44  ;;  %v1086_v14 = vrot.slane %v976_v16, %v10550_v44 }
 0x316   :  { %v1074_v24 = vrot.slane %v977_v21, %v10550_v44  ;;  %v1118_v29 = vsel %vm1117_vm5, %v1109_v9, %v1062_v13  ;;  %v1119_v30 = vsel %vm1117_vm5, %v1110_v10, %v1066_v23  ;;  %v1113_v31 = vsel %vm1108_vm4, %v10578_v15, %v1038_v57 }
 0x317   :  { %v1145_v32 = vcombine.low %v1118_v29, %v1119_v30  ;;  %v1120_v33 = vsel %vm1117_vm5, %v1111_v0, %v1070_v6  ;;  %v1114_v17 = vsel %vm1108_vm4, %v10585_v18, %v1042_v62  ;;  %v1122_v34 = vsel %vm1117_vm5, %v1113_v31, %v1078_v25 }
 0x318   :  { %v1121_v35 = vsel %vm1117_vm5, %v1112_v26, %v1074_v24  ;;  %v1123_v36 = vsel %vm1117_vm5, %v1114_v17, %v1082_v28  ;;  %v1090_v37 = vrot.slane %v978_v27, %v10550_v44  ;;  %v1115_v38 = vsel %vm1108_vm4, %v10588_v19, %v1046_v63  ;;  %v8720_v19 = vld [vmem:[%s12378_s6] ss:$0 sm:$0xff]  ;;  %s10235_s6 = smov 64  }
 0x319   :  { %9343 = vmatprep.mubr.msk.f32.mxu1 %vm1149_vm6, %v1145_v32  ;;  %v1146_v15 = vcombine.low %v1120_v33, %v1121_v35  ;;  %v1147_v39 = vcombine.low %v1122_v34, %v1123_v36  ;;  %v1116_v40 = vsel %vm1108_vm4, %v10593_v20, %v1050_v7  ;;  %v1124_v18 = vsel %vm1117_vm5, %v1115_v38, %v1086_v14 }
 0x31a   :  { %v1125_v41 = vsel %vm1117_vm5, %v1116_v40, %v1090_v37  ;;  %vm7164_vm4 = vcmask 257024   ;;  %vm7140_vm5 = vcmp.eq.s32.totalorder %v10532_v22, 0 }
 0x31b   :  { %9344 = vmatmul.mubr.msk.f32.vlgmr.msra.gmra.mrb[4].mxu1 %vm1149_vm6, %v1146_v15  ;;  %v1148_v42 = vcombine.low %v1124_v18, %v1125_v41 }
 0x31c   :  { %9346 = vmatprep.mubr.msk.f32.mxu1 %vm1149_vm6, %v1147_v39 }
 0x31f   :  { %9347 = vmatmul.mubr.msk.f32.gmra.mrb[6].mxu1 %vm1149_vm6, %v1148_v42 }
 0x320   :  { %9361 = vmatprep.mubr.msk.f32.mxu1 %vm10229_vm0, %v12401_v4 }
 0x3ee   :  { %v9345_v43 = vpop.f32.mrb[4].mxu1 }
 0x3ef   :  { %v1224_v20 = vpop.f32.mrb[5].mxu1  ;;  %v10676_v46 = vadd.f32 %v9345_v43, %v8720_v19 }
 0x3f0   :  { %v10674_v45 = vadd.f32 %v8720_v19, %v1224_v20 }
 0x3f1   :  { %v10692_v51 = vcombine.high %v10676_v46, %v10676_v46 }
 0x3f2   :  { %1251 = vrot.lane.b32.xlu1 %v10674_v45, %s10233_s4  ;;  %v9348_v47 = vpop.f32.mrb[6].mxu1  ;;  %v10682_v48 = vcombine.high %v10674_v45, %v10674_v45 }
 0x3f3   :  { %v1234_v49 = vpop.f32.mrb[7].mxu1  ;;  %v10696_v52 = vadd.f32 %v9348_v47, %v8720_v19 }
 0x3f4   :  { %1328 = vrot.lane.b32.xlu0 %v10682_v48, %s10233_s4  ;;  %v10686_v50 = vadd.f32 %v8720_v19, %v1234_v49 }
 0x3f5   :  { %v10710_v54 = vcombine.high %v10696_v52, %v10696_v52 }
 0x3f6   :  { %1404 = vrot.lane.b32.xlu1 %v10676_v46, %s10233_s4  ;;  %v10702_v53 = vcombine.high %v10686_v50, %v10686_v50 }
 0x3f8   :  { %1480 = vrot.lane.b32.xlu0 %v10692_v51, %s10233_s4 }
 0x3fa   :  { %1556 = vrot.lane.b32.xlu1 %v10686_v50, %s10233_s4 }
 0x3fc   :  { %1632 = vrot.lane.b32.xlu0 %v10702_v53, %s10233_s4 }
 0x3fe   :  { %1708 = vrot.lane.b32.xlu1 %v10696_v52, %s10233_s4 }
 0x400   :  { %1784 = vrot.lane.b32.xlu0 %v10710_v54, %s10233_s4  ;;  %s10236_s4 = smov 88  }
 0x402   :  { %2036 = vrot.lane.b32.xlu1 %v10682_v48, %s10235_s6 }
 0x404   :  { %1957 = vrot.lane.b32.xlu0 %v10674_v45, %s10235_s6 }
 0x464   :  { %v1252_v55 = vpop.permute.xlu1 %1251 }
 0x465   :  { %9350 = vmatpush3.xpose.msk.msra.mxu0 %vm1253_vm7, %v1252_v55 }
 0x466   :  { %v1329_v56 = vpop.permute.xlu0 %1328  ;;  %9354 = vmatprep.subr.mxu0 %v12401_v4 }
 0x468   :  { %9352 = vmatmul.mubr.msk.f32.vlgmr.msra.gmra.mrb[12].mxu0 %vm1253_vm7, %v10674_v45  ;;  %v1405_v57 = vpop.permute.xlu1 %1404 }
 0x469   :  { %9355 = vmatpush3.xpose.msk.msra.mxu0 %vm1253_vm7, %v1329_v56  ;;  %9360 = vmatpush3.xpose.msk.msra.mxu1 %vm1253_vm7, %v1405_v57 }
 0x46a   :  { %v1481_v58 = vpop.permute.xlu0 %1480  ;;  %9356 = vmatprep.mubr.msk.f32.mxu0 %vm10229_vm0, %v12401_v4  ;;  %9364 = vmatprep.subr.mxu0 %v12401_v4 }
 0x46b   :  { %9369 = vmatprep.subr.mxu1 %v12401_v4 }
 0x46c   :  { %9357 = vmatmul.mubr.msk.f32.vlgmr.msra.gmra.mrb[14].mxu0 %vm1253_vm7, %v10682_v48  ;;  %9362 = vmatmul.mubr.msk.f32.vlgmr.msra.gmra.mrb[8].mxu1 %vm1253_vm7, %v10676_v46  ;;  %v1557_v59 = vpop.permute.xlu1 %1556 }
 0x46d   :  { %9365 = vmatpush3.xpose.msk.msra.mxu0 %vm1253_vm7, %v1481_v58  ;;  %9370 = vmatpush3.xpose.msk.msra.mxu1 %vm1253_vm7, %v1557_v59 }
 0x46e   :  { %v1633_v60 = vpop.permute.xlu0 %1632  ;;  %9366 = vmatprep.mubr.msk.f32.mxu0 %vm10229_vm0, %v12401_v4  ;;  %9371 = vmatprep.mubr.msk.f32.mxu1 %vm10229_vm0, %v12401_v4 }
 0x46f   :  { %9374 = vmatprep.subr.mxu0 %v12401_v4  ;;  %9379 = vmatprep.subr.mxu1 %v12401_v4 }
 0x470   :  { %9367 = vmatmul.mubr.msk.f32.vlgmr.msra.gmra.mrb[16].mxu0 %vm1253_vm7, %v10692_v51  ;;  %9372 = vmatmul.mubr.msk.f32.vlgmr.msra.gmra.mrb[10].mxu1 %vm1253_vm7, %v10686_v50  ;;  %v1709_v61 = vpop.permute.xlu1 %1708 }
 0x471   :  { %9375 = vmatpush3.xpose.msk.msra.mxu0 %vm1253_vm7, %v1633_v60  ;;  %9380 = vmatpush3.xpose.msk.msra.mxu1 %vm1253_vm7, %v1709_v61 }
 0x472   :  { %v1785_v62 = vpop.permute.xlu0 %1784  ;;  %9376 = vmatprep.mubr.msk.f32.mxu0 %vm10229_vm0, %v12401_v4  ;;  %9381 = vmatprep.mubr.msk.f32.mxu1 %vm10229_vm0, %v12401_v4 }
 0x473   :  { %9384 = vmatprep.subr.mxu0 %v12401_v4  ;;  %9389 = vmatprep.subr.mxu1 %v12401_v4 }
 0x474   :  { %9382 = vmatmul.mubr.msk.f32.vlgmr.msra.gmra.mrb[12].mxu1 %vm1253_vm7, %v10696_v52  ;;  %9377 = vmatmul.mubr.msk.f32.vlgmr.msra.gmra.mrb[18].mxu0 %vm1253_vm7, %v10702_v53  ;;  %v2037_v0 = vpop.permute.xlu1 %2036 }
 0x475   :  { %9385 = vmatpush3.xpose.msk.msra.mxu0 %vm1253_vm7, %v1785_v62  ;;  %9386 = vmatprep.mubr.msk.f32.mxu0 %vm10229_vm0, %v12401_v4 }
 0x476   :  { %v1958_v63 = vpop.permute.xlu0 %1957  ;;  %9394 = vmatprep.subr.mxu0 %v12401_v4  ;;  %9391 = vmatprep.mubr.msk.f32.mxu1 %vm10229_vm0, %v12401_v4 }
 0x477   :  { %9390 = vmatpush3.msk.msra.mxu1 %vm1963_vm8, %v1958_v63 }
 0x478   :  { %9387 = vmatmul.mubr.msk.f32.vlgmr.msra.gmra.mrb[20].mxu0 %vm1253_vm7, %v10710_v54  ;;  %9399 = vmatprep.subr.mxu1 %v12401_v4 }
 0x479   :  { %9395 = vmatpush3.msk.msra.mxu0 %vm1963_vm8, %v2037_v0  ;;  %9396 = vmatprep.mubr.msk.f32.mxu0 %vm10229_vm0, %v12401_v4 }
 0x47a   :  { %9404 = vmatprep.subr.mxu0 %v12401_v4 }
 0x53b   :  { %v1324_v2 = vpop.f32.mrb[12].mxu0 }
 0x53c   :  { %v1860_v3 = vmul.f32 0.35355338, %v1324_v2  ;;  %v9353_v5 = vpop.f32.mrb[13].mxu0 }
 0x53e   :  { %v1869_v7 = vsel %vm1868_vm9, %v1860_v3, -inf }
 0x53f   :  { %v1476_v8 = vpop.f32.mrb[8].mxu1  ;;  %1870 = vmax.xlane.f32.xlu1 %v1869_v7  ;;  %v1400_v9 = vpop.f32.mrb[14].mxu0 }
 0x540   :  { %v1862_v10 = vmul.f32 0.35355338, %v1476_v8  ;;  %v9358_v11 = vpop.f32.mrb[15].mxu0  ;;  %v9363_v12 = vpop.f32.mrb[9].mxu1  ;;  %v1861_v16 = vmul.f32 0.35355338, %v1400_v9 }
 0x542   :  { %v1875_v13 = vsel %vm1868_vm9, %v1862_v10, -inf  ;;  %v1872_v28 = vsel %vm1868_vm9, %v1861_v16, -inf }
 0x543   :  { %v1628_v21 = vpop.f32.mrb[10].mxu1  ;;  %1876 = vmax.xlane.f32.xlu0 %v1875_v13  ;;  %v1552_v23 = vpop.f32.mrb[16].mxu0 }
 0x544   :  { %v1863_v25 = vmul.f32 0.35355338, %v1552_v23  ;;  %v9368_v26 = vpop.f32.mrb[17].mxu0  ;;  %v9373_v27 = vpop.f32.mrb[11].mxu1  ;;  %v10772_v6 = vmul.f32 0.35355338, %v1628_v21 }
 0x546   :  { %v1878_v14 = vsel %vm1868_vm9, %v1863_v25, -inf  ;;  %v1881_v17 = vsel %vm1868_vm9, %v10772_v6, -inf }
 0x547   :  { %v1780_v24 = vpop.f32.mrb[12].mxu1  ;;  %1873 = vmax.xlane.f32.xlu0 %v1872_v28  ;;  %1879 = vmax.xlane.f32.xlu1 %v1878_v14  ;;  %v1704_v29 = vpop.f32.mrb[18].mxu0 }
 0x548   :  { %v1865_v30 = vmul.f32 0.35355338, %v1704_v29  ;;  %v9378_v31 = vpop.f32.mrb[19].mxu0  ;;  %v9383_v32 = vpop.f32.mrb[13].mxu1  ;;  %v10776_v33 = vmul.f32 0.35355338, %v1780_v24 }
 0x54a   :  { %v1884_v34 = vsel %vm1868_vm9, %v1865_v30, -inf  ;;  %v1887_v37 = vsel %vm1868_vm9, %v10776_v33, -inf }
 0x54b   :  { %1882 = vmax.xlane.f32.xlu0 %v1881_v17  ;;  %1885 = vmax.xlane.f32.xlu1 %v1884_v34  ;;  %v1856_v35 = vpop.f32.mrb[20].mxu0 }
 0x54c   :  { %v9388_v36 = vpop.f32.mrb[21].mxu0  ;;  %v1867_v38 = vmul.f32 0.35355338, %v1856_v35 }
 0x54e   :  { %v1890_v15 = vsel %vm1868_vm9, %v1867_v38, -inf }
 0x54f   :  { %1888 = vmax.xlane.f32.xlu0 %v1887_v37 }
 0x55c   :  { %2113 = vrot.lane.b32.xlu1 %v10676_v46, %s10235_s6 }
 0x565   :  { %2190 = vrot.lane.b32.xlu0 %v10692_v51, %s10235_s6 }
 0x569   :  { %2344 = vrot.lane.b32.xlu0 %v10702_v53, %s10235_s6 }
 0x56d   :  { %2498 = vrot.lane.b32.xlu0 %v10710_v54, %s10235_s6 }
 0x571   :  { %2655 = vrot.lane.b32.xlu0 %v10682_v48, %s10236_s4 }
 0x575   :  { %2653 = vrot.lane.b32.xlu0 %v10682_v48, %s10237_s3 }
 0x580   :  { %1891 = vmax.xlane.f32.xlu1 %v1890_v15 }
 0x591   :  { %2267 = vrot.lane.b32.xlu1 %v10686_v50, %s10235_s6 }
 0x595   :  { %2421 = vrot.lane.b32.xlu1 %v10696_v52, %s10235_s6 }
 0x599   :  { %2577 = vrot.lane.b32.xlu1 %v10674_v45, %s10236_s4 }
 0x59d   :  { %2575 = vrot.lane.b32.xlu1 %v10674_v45, %s10237_s3 }
 0x5a1   :  { %2733 = vrot.lane.b32.xlu1 %v10676_v46, %s10236_s4 }
 0x5a5   :  { %2731 = vrot.lane.b32.xlu1 %v10676_v46, %s10237_s3 }
 0x5cc   :  { %v1871_v39 = vpop.xlane.xlu1 %1870 }
 0x5cd   :  { %v1893_v40 = vsub.f32 %v1860_v3, %v1871_v39 }
 0x5cf   :  { %v1901_v42 = vmul.f32 1.442695, %v1893_v40 }
 0x5d0   :  { %v1877_v18 = vpop.xlane.xlu0 %1876 }
 0x5d1   :  { %v1895_v41 = vsub.f32 %v1862_v10, %v1877_v18 }
 0x5d3   :  { %v1905_v19 = vmul.f32 1.442695, %v1895_v41 }
 0x5d4   :  { %v1874_v43 = vpop.xlane.xlu0 %1873  ;;  %v1880_v20 = vpop.xlane.xlu1 %1879 }
 0x5d5   :  { %10100 = vpow2.f32 %v1905_v19  ;;  %v1894_v47 = vsub.f32 %v1861_v16, %v1874_v43  ;;  %v1896_v49 = vsub.f32 %v1863_v25, %v1880_v20 }
 0x5d6   :  { %10102 = vpow2.f32 %v1901_v42 }
 0x5d7   :  { %v1903_v55 = vmul.f32 1.442695, %v1894_v47  ;;  %v1907_v56 = vmul.f32 1.442695, %v1896_v49 }
 0x5d8   :  { %v1886_v57 = vpop.xlane.xlu1 %1885  ;;  %v1883_v9 = vpop.xlane.xlu0 %1882 }
 0x5d9   :  { %10104 = vpow2.f32 %v1903_v55  ;;  %v1898_v58 = vsub.f32 %v1865_v30, %v1886_v57  ;;  %v1897_v10 = vsub.f32 %v10772_v6, %v1883_v9 }
 0x5da   :  { %10106 = vpow2.f32 %v1907_v56 }
 0x5db   :  { %v1911_v59 = vmul.f32 1.442695, %v1898_v58  ;;  %v1909_v12 = vmul.f32 1.442695, %v1897_v10 }
 0x5dc   :  { %v1889_v11 = vpop.xlane.xlu0 %1888  ;;  %v2114_v13 = vpop.permute.xlu1 %2113 }
 0x5dd   :  { %10108 = vpow2.f32 %v1911_v59  ;;  %v1899_v16 = vsub.f32 %v10776_v33, %v1889_v11 }
 0x5de   :  { %10110 = vpow2.f32 %v1909_v12 }
 0x5df   :  { %v10808_v60 = vpop.eup %10100  ;;  %v1913_v21 = vmul.f32 1.442695, %v1899_v16 }
 0x5e0   :  { %v1923_v61 = vsel %vm1868_vm9, %v10808_v60, 0.0  ;;  %v10812_v62 = vpop.eup %10102  ;;  %v2191_v31 = vpop.permute.xlu0 %2190 }
 0x5e1   :  { %1924 = vadd.xlane.f32.xlu0 %v1923_v61  ;;  %v1917_v0 = vsel %vm1868_vm9, %v10812_v62, 0.0  ;;  %10112 = vpow2.f32 %v1913_v21 }
 0x5e3   :  { %v10814_v63 = vpop.eup %10104 }
 0x5e4   :  { %v1920_v2 = vsel %vm1868_vm9, %v10814_v63, 0.0  ;;  %v10820_v3 = vpop.eup %10106  ;;  %v2345_v33 = vpop.permute.xlu0 %2344 }
 0x5e5   :  { %1918 = vadd.xlane.f32.xlu0 %v1917_v0  ;;  %1921 = vadd.xlane.f32.xlu1 %v1920_v2  ;;  %v1926_v5 = vsel %vm1868_vm9, %v10820_v3, 0.0 }
 0x5e7   :  { %v10824_v7 = vpop.eup %10108 }
 0x5e8   :  { %v1932_v8 = vsel %vm1868_vm9, %v10824_v7, 0.0  ;;  %v10832_v27 = vpop.eup %10110  ;;  %v2499_v34 = vpop.permute.xlu0 %2498 }
 0x5e9   :  { %1927 = vadd.xlane.f32.xlu1 %v1926_v5  ;;  %v1929_v28 = vsel %vm1868_vm9, %v10832_v27, 0.0 }
 0x5eb   :  { %v10836_v14 = vpop.eup %10112 }
 0x5ec   :  { %v1935_v24 = vsel %vm1868_vm9, %v10836_v14, 0.0  ;;  %v10866_v36 = vpop.permute.xlu0 %2655 }
 0x5ed   :  { %1933 = vadd.xlane.f32.xlu1 %v1932_v8 }
 0x5fb   :  { %2811 = vrot.lane.b32.xlu0 %v10692_v51, %s10236_s4 }
 0x60d   :  { %v1892_v23 = vpop.xlane.xlu1 %1891 }
 0x60e   :  { %v1900_v25 = vsub.f32 %v1867_v38, %v1892_v23  ;;  %v10870_v38 = vpop.permute.xlu0 %2653 }
 0x610   :  { %v1915_v26 = vmul.f32 1.442695, %v1900_v25 }
 0x611   :  { %v2268_v30 = vpop.permute.xlu1 %2267 }
 0x612   :  { %10114 = vpow2.f32 %v1915_v26 }
 0x615   :  { %v2422_v32 = vpop.permute.xlu1 %2421 }
 0x619   :  { %v10862_v17 = vpop.permute.xlu1 %2577 }
 0x61a   :  { %1930 = vadd.xlane.f32.xlu0 %v1929_v28 }
 0x61c   :  { %v10838_v6 = vpop.eup %10114 }
 0x61d   :  { %v1938_v29 = vsel %vm1868_vm9, %v10838_v6, 0.0  ;;  %v10864_v35 = vpop.permute.xlu1 %2575 }
 0x61e   :  { %1936 = vadd.xlane.f32.xlu0 %v1935_v24  ;;  %1939 = vadd.xlane.f32.xlu1 %v1938_v29 }
 0x621   :  { %v10868_v37 = vpop.permute.xlu1 %2733 }
 0x625   :  { %v10872_v15 = vpop.permute.xlu1 %2731 }
 0x62f   :  { %2889 = vrot.lane.b32.xlu1 %v10686_v50, %s10236_s4 }
 0x633   :  { %2887 = vrot.lane.b32.xlu1 %v10686_v50, %s10237_s3 }
 0x634   :  { %2809 = vrot.lane.b32.xlu0 %v10692_v51, %s10237_s3 }
 0x637   :  { %3045 = vrot.lane.b32.xlu1 %v10696_v52, %s10236_s4 }
 0x638   :  { %2967 = vrot.lane.b32.xlu0 %v10702_v53, %s10236_s4 }
 0x63b   :  { %3043 = vrot.lane.b32.xlu1 %v10696_v52, %s10237_s3 }
 0x63c   :  { %2965 = vrot.lane.b32.xlu0 %v10702_v53, %s10237_s3 }
 0x640   :  { %3123 = vrot.lane.b32.xlu0 %v10710_v54, %s10236_s4 }
 0x644   :  { %3121 = vrot.lane.b32.xlu0 %v10710_v54, %s10237_s3 }
 0x66e   :  { %v1925_v39 = vpop.xlane.xlu0 %1924 }
 0x672   :  { %v1919_v40 = vpop.xlane.xlu0 %1918  ;;  %v1922_v18 = vpop.xlane.xlu1 %1921 }
 0x673   :  { %10116 = vrcp.f32 %v1919_v40 }
 0x674   :  { %10118 = vrcp.f32 %v1922_v18 }
 0x675   :  { %10120 = vrcp.f32 %v1925_v39 }
 0x676   :  { %v1928_v41 = vpop.xlane.xlu1 %1927 }
 0x677   :  { %10122 = vrcp.f32 %v1928_v41 }
 0x67a   :  { %v1934_v42 = vpop.xlane.xlu1 %1933 }
 0x67b   :  { %10124 = vrcp.f32 %v1934_v42 }
 0x67d   :  { %v10117_v19 = vpop.eup %10116 }
 0x67e   :  { %v10119_v43 = vpop.eup %10118  ;;  %v1949_v20 = vmul.f32 %v10117_v19, %v10812_v62 }
 0x67f   :  { %v10121_v47 = vpop.eup %10120  ;;  %v1950_v49 = vmul.f32 %v10119_v43, %v10814_v63 }
 0x680   :  { %9392 = vmatmul.mubr.msk.f32.vlgmr.msra.gmra.mrb[14].mxu1 %vm1959_vm10, %v1949_v20  ;;  %v1951_v56 = vmul.f32 %v10121_v47, %v10808_v60  ;;  %v2812_v60 = vpop.permute.xlu0 %2811 }
 0x681   :  { %v10123_v55 = vpop.eup %10122  ;;  %9397 = vmatmul.mubr.msk.f32.vlgmr.msra.gmra.mrb[22].mxu0 %vm1959_vm10, %v1950_v49  ;;  %9400 = vmatpush3.msk.msra.mxu1 %vm1963_vm8, %v2114_v13 }
 0x682   :  { %9405 = vmatpush3.msk.msra.mxu0 %vm1963_vm8, %v2191_v31  ;;  %9401 = vmatprep.mubr.msk.f32.mxu1 %vm10229_vm0, %v12401_v4  ;;  %v1952_v57 = vmul.f32 %v10123_v55, %v10820_v3 }
 0x683   :  { %9406 = vmatprep.mubr.msk.f32.mxu0 %vm10229_vm0, %v12401_v4  ;;  %9409 = vmatprep.subr.mxu1 %v12401_v4 }
 0x684   :  { %9414 = vmatprep.subr.mxu0 %v12401_v4  ;;  %9402 = vmatmul.mubr.msk.f32.vlgmr.msra.gmra.mrb[16].mxu1 %vm1959_vm10, %v1951_v56 }
 0x685   :  { %v10125_v58 = vpop.eup %10124  ;;  %9407 = vmatmul.mubr.msk.f32.vlgmr.msra.gmra.mrb[24].mxu0 %vm1959_vm10, %v1952_v57  ;;  %9410 = vmatpush3.msk.msra.mxu1 %vm1963_vm8, %v2268_v30 }
 0x686   :  { %9415 = vmatpush3.msk.msra.mxu0 %vm1963_vm8, %v2345_v33  ;;  %9416 = vmatprep.mubr.msk.f32.mxu0 %vm10229_vm0, %v12401_v4  ;;  %v1954_v59 = vmul.f32 %v10125_v58, %v10824_v7 }
 0x687   :  { %9424 = vmatprep.subr.mxu0 %v12401_v4  ;;  %9411 = vmatprep.mubr.msk.f32.mxu1 %vm10229_vm0, %v12401_v4 }
 0x688   :  { %9419 = vmatprep.subr.mxu1 %v12401_v4 }
 0x689   :  { %9417 = vmatmul.mubr.msk.f32.vlgmr.msra.gmra.mrb[26].mxu0 %vm1959_vm10, %v1954_v59 }
 0x68a   :  { %9425 = vmatpush3.msk.msra.mxu0 %vm1963_vm8, %v2499_v34  ;;  %9426 = vmatprep.mubr.msk.f32.mxu0 %vm10229_vm0, %v12401_v4 }
 0x68b   :  { %9434 = vmatprep.subr.mxu0 %v12401_v4 }
 0x6a7   :  { %v1931_v61 = vpop.xlane.xlu0 %1930 }
 0x6a8   :  { %10126 = vrcp.f32 %v1931_v61 }
 0x6ab   :  { %v1937_v62 = vpop.xlane.xlu0 %1936  ;;  %v1940_v63 = vpop.xlane.xlu1 %1939 }
 0x6ac   :  { %10128 = vrcp.f32 %v1937_v62 }
 0x6ad   :  { %10130 = vrcp.f32 %v1940_v63 }
 0x6af   :  { %v2810_v0 = vpop.permute.xlu0 %2809  ;;  %v2890_v11 = vpop.permute.xlu1 %2889 }
 0x6b2   :  { %v10127_v2 = vpop.eup %10126 }
 0x6b3   :  { %v1953_v3 = vmul.f32 %v10127_v2, %v10832_v27  ;;  %v2968_v8 = vpop.permute.xlu0 %2967  ;;  %v2888_v16 = vpop.permute.xlu1 %2887 }
 0x6b5   :  { %9412 = vmatmul.mubr.msk.f32.vlgmr.msra.gmra.mrb[18].mxu1 %vm1959_vm10, %v1953_v3 }
 0x6b6   :  { %v10129_v5 = vpop.eup %10128  ;;  %9420 = vmatpush3.msk.msra.mxu1 %vm1963_vm8, %v2422_v32  ;;  %9421 = vmatprep.mubr.msk.f32.mxu1 %vm10229_vm0, %v12401_v4 }
 0x6b7   :  { %v10131_v7 = vpop.eup %10130  ;;  %v1955_v9 = vmul.f32 %v10129_v5, %v10836_v14  ;;  %9429 = vmatprep.subr.mxu1 %v12401_v4  ;;  %v2966_v12 = vpop.permute.xlu0 %2965 }
 0x6b8   :  { %v1956_v10 = vmul.f32 %v10131_v7, %v10838_v6  ;;  %v3046_v21 = vpop.permute.xlu1 %3045 }
 0x6b9   :  { %9422 = vmatmul.mubr.msk.f32.vlgmr.msra.gmra.mrb[20].mxu1 %vm1959_vm10, %v1955_v9 }
 0x6ba   :  { %9427 = vmatmul.mubr.msk.f32.vlgmr.msra.gmra.mrb[28].mxu0 %vm1959_vm10, %v1956_v10  ;;  %9431 = vmatprep.mubr.msk.f32.mxu1 %vm10229_vm0, %v12401_v4 }
 0x6bb   :  { %9435 = vmatpush3.xpose.msk.msra.mxu0 %vm1253_vm7, %v10866_v36  ;;  %9436 = vmatprep.mubr.msk.f32.mxu0 %vm10229_vm0, %v12401_v4  ;;  %v3124_v13 = vpop.permute.xlu0 %3123 }
 0x6bc   :  { %9444 = vmatprep.subr.mxu0 %v12401_v4  ;;  %v3044_v25 = vpop.permute.xlu1 %3043 }
 0x6bd   :  { %9430 = vmatpush3.xpose.msk.msra.mxu1 %vm1253_vm7, %v10862_v17 }
 0x6be   :  { %9437 = vmatmul.mubr.msk.f32.vlgmr.msra.gmra.mrb[30].mxu0 %vm1253_vm7, %v10870_v38  ;;  %9439 = vmatprep.subr.mxu1 %v12401_v4 }
 0x6bf   :  { %9445 = vmatpush3.xpose.msk.msra.mxu0 %vm1253_vm7, %v2812_v60  ;;  %9446 = vmatprep.mubr.msk.f32.mxu0 %vm10229_vm0, %v12401_v4  ;;  %v3122_v23 = vpop.permute.xlu0 %3121 }
 0x6c0   :  { %9432 = vmatmul.mubr.msk.f32.vlgmr.msra.gmra.mrb[22].mxu1 %vm1253_vm7, %v10864_v35  ;;  %9454 = vmatprep.subr.mxu0 %v12401_v4 }
 0x6c1   :  { %9440 = vmatpush3.xpose.msk.msra.mxu1 %vm1253_vm7, %v10868_v37  ;;  %9441 = vmatprep.mubr.msk.f32.mxu1 %vm10229_vm0, %v12401_v4 }
 0x6c2   :  { %9447 = vmatmul.mubr.msk.f32.vlgmr.msra.gmra.mrb[32].mxu0 %vm1253_vm7, %v2810_v0  ;;  %9449 = vmatprep.subr.mxu1 %v12401_v4 }
 0x6c3   :  { %9455 = vmatpush3.xpose.msk.msra.mxu0 %vm1253_vm7, %v2968_v8  ;;  %9456 = vmatprep.mubr.msk.f32.mxu0 %vm10229_vm0, %v12401_v4 }
 0x6c4   :  { %9442 = vmatmul.mubr.msk.f32.vlgmr.msra.gmra.mrb[24].mxu1 %vm1253_vm7, %v10872_v15  ;;  %9464 = vmatprep.subr.mxu0 %v12401_v4 }
 0x6c5   :  { %9450 = vmatpush3.xpose.msk.msra.mxu1 %vm1253_vm7, %v2890_v11  ;;  %9451 = vmatprep.mubr.msk.f32.mxu1 %vm10229_vm0, %v12401_v4 }
 0x6c6   :  { %9457 = vmatmul.mubr.msk.f32.vlgmr.msra.gmra.mrb[34].mxu0 %vm1253_vm7, %v2966_v12  ;;  %9459 = vmatprep.subr.mxu1 %v12401_v4 }
 0x6c7   :  { %9465 = vmatpush3.xpose.msk.msra.mxu0 %vm1253_vm7, %v3124_v13  ;;  %9466 = vmatprep.mubr.msk.f32.mxu0 %vm10229_vm0, %v12401_v4 }
 0x6c8   :  { %9452 = vmatmul.mubr.msk.f32.vlgmr.msra.gmra.mrb[26].mxu1 %vm1253_vm7, %v2888_v16  ;;  %9474 = vmatprep.subr.mxu0 %v12401_v4 }
 0x6c9   :  { %9460 = vmatpush3.xpose.msk.msra.mxu1 %vm1253_vm7, %v3046_v21  ;;  %9461 = vmatprep.mubr.msk.f32.mxu1 %vm10229_vm0, %v12401_v4 }
 0x6ca   :  { %9467 = vmatmul.mubr.msk.f32.vlgmr.msra.gmra.mrb[36].mxu0 %vm1253_vm7, %v3122_v23  ;;  %9469 = vmatprep.subr.mxu1 %v12401_v4 }
 0x6cb   :  { %9476 = vmatprep.mubr.msk.f32.mxu0 %vm10229_vm0, %v12401_v4 }
 0x6cc   :  { %9462 = vmatmul.mubr.msk.f32.vlgmr.msra.gmra.mrb[28].mxu1 %vm1253_vm7, %v3044_v25 }
 0x6cd   :  { %9471 = vmatprep.mubr.msk.f32.mxu1 %vm10229_vm0, %v12401_v4 }
 0x753   :  { %v10964_v26 = vpop.f32.mrb[14].mxu1 }
 0x754   :  { %v10966_v27 = vpop.f32.mrb[22].mxu0  ;;  %v9393_v28 = vpop.f32.mrb[15].mxu1 }
 0x755   :  { %v9398_v14 = vpop.f32.mrb[23].mxu0 }
 0x757   :  { %v10968_v6 = vpop.f32.mrb[16].mxu1 }
 0x758   :  { %v10970_v24 = vpop.f32.mrb[24].mxu0  ;;  %v9403_v29 = vpop.f32.mrb[17].mxu1 }
 0x759   :  { %v9408_v30 = vpop.f32.mrb[25].mxu0 }
 0x75c   :  { %v10972_v31 = vpop.f32.mrb[26].mxu0 }
 0x75d   :  { %v9418_v32 = vpop.f32.mrb[27].mxu0 }
 0x788   :  { %v10974_v33 = vpop.f32.mrb[18].mxu1 }
 0x789   :  { %v9413_v17 = vpop.f32.mrb[19].mxu1 }
 0x78c   :  { %v10976_v34 = vpop.f32.mrb[20].mxu1 }
 0x78d   :  { %v10978_v35 = vpop.f32.mrb[28].mxu0  ;;  %v9423_v36 = vpop.f32.mrb[21].mxu1 }
 0x78e   :  { %v9428_v37 = vpop.f32.mrb[29].mxu0 }
 0x791   :  { %v2727_v38 = vpop.f32.mrb[30].mxu0 }
 0x792   :  { %v3200_v15 = vmul.f32 0.35355338, %v2727_v38  ;;  %v9438_v39 = vpop.f32.mrb[31].mxu0 }
 0x793   :  { %v2649_v40 = vpop.f32.mrb[22].mxu1 }
 0x794   :  { %v3199_v18 = vmul.f32 0.35355338, %v2649_v40  ;;  %v9433_v41 = vpop.f32.mrb[23].mxu1  ;;  %v3210_v42 = vsel %vm1868_vm9, %v3200_v15, -inf }
 0x795   :  { %3211 = vmax.xlane.f32.xlu0 %v3210_v42  ;;  %v2883_v19 = vpop.f32.mrb[32].mxu0 }
 0x796   :  { %v3202_v43 = vmul.f32 0.35355338, %v2883_v19  ;;  %v9448_v20 = vpop.f32.mrb[33].mxu0  ;;  %v3207_v47 = vsel %vm1868_vm9, %v3199_v18, -inf }
 0x797   :  { %3208 = vmax.xlane.f32.xlu1 %v3207_v47  ;;  %v2805_v49 = vpop.f32.mrb[24].mxu1 }
 0x798   :  { %v3201_v55 = vmul.f32 0.35355338, %v2805_v49  ;;  %v9443_v56 = vpop.f32.mrb[25].mxu1  ;;  %v3216_v61 = vsel %vm1868_vm9, %v3202_v43, -inf }
 0x799   :  { %v3039_v57 = vpop.f32.mrb[34].mxu0 }
 0x79a   :  { %v3204_v58 = vmul.f32 0.35355338, %v3039_v57  ;;  %v9458_v59 = vpop.f32.mrb[35].mxu0  ;;  %v3213_v60 = vsel %vm1868_vm9, %v3201_v55, -inf }
 0x79b   :  { %v2961_v62 = vpop.f32.mrb[26].mxu1  ;;  %3214 = vmax.xlane.f32.xlu0 %v3213_v60  ;;  %3217 = vmax.xlane.f32.xlu1 %v3216_v61 }
 0x79c   :  { %v3203_v63 = vmul.f32 0.35355338, %v2961_v62  ;;  %v9453_v0 = vpop.f32.mrb[27].mxu1  ;;  %v3222_v7 = vsel %vm1868_vm9, %v3204_v58, -inf }
 0x79d   :  { %v3195_v2 = vpop.f32.mrb[36].mxu0 }
 0x79e   :  { %v9468_v3 = vpop.f32.mrb[37].mxu0  ;;  %v3219_v5 = vsel %vm1868_vm9, %v3203_v63, -inf  ;;  %v10999_v12 = vmul.f32 0.35355338, %v3195_v2 }
 0x79f   :  { %v3117_v8 = vpop.f32.mrb[28].mxu1  ;;  %3220 = vmax.xlane.f32.xlu0 %v3219_v5  ;;  %3223 = vmax.xlane.f32.xlu1 %v3222_v7 }
 0x7a0   :  { %v3205_v9 = vmul.f32 0.35355338, %v3117_v8  ;;  %v9463_v10 = vpop.f32.mrb[29].mxu1  ;;  %v3228_v16 = vsel %vm1868_vm9, %v10999_v12, -inf }
 0x7a2   :  { %v3225_v11 = vsel %vm1868_vm9, %v3205_v9, -inf }
 0x7a3   :  { %3226 = vmax.xlane.f32.xlu0 %v3225_v11 }
 0x7b0   :  { %3372 = vrot.lane.b32.xlu1 %v10682_v48, %s10238_s21 }
 0x7b4   :  { %3449 = vrot.lane.b32.xlu1 %v10676_v46, %s10238_s21 }
 0x7b9   :  { %3295 = vrot.lane.b32.xlu0 %v10674_v45, %s10238_s21 }
 0x7bd   :  { %3526 = vrot.lane.b32.xlu0 %v10692_v51, %s10238_s21 }
 0x7c1   :  { %3680 = vrot.lane.b32.xlu0 %v10702_v53, %s10238_s21 }
 0x7c5   :  { %3834 = vrot.lane.b32.xlu0 %v10710_v54, %s10238_s21 }
 0x7c9   :  { %3991 = vrot.lane.b32.xlu0 %v10682_v48, %s10232_s0 }
 0x7cd   :  { %3989 = vrot.lane.b32.xlu0 %v10682_v48, %s12427_s1 }
 0x7d1   :  { %4147 = vrot.lane.b32.xlu0 %v10692_v51, %s10232_s0 }
 0x7d8   :  { %3229 = vmax.xlane.f32.xlu1 %v3228_v16 }
 0x7e9   :  { %3603 = vrot.lane.b32.xlu1 %v10686_v50, %s10238_s21 }
 0x7ed   :  { %3757 = vrot.lane.b32.xlu1 %v10696_v52, %s10238_s21  ;;  %s10247_s21 = smov 6  }
 0x7f1   :  { %3913 = vrot.lane.b32.xlu1 %v10674_v45, %s10232_s0 }
 0x7f5   :  { %3911 = vrot.lane.b32.xlu1 %v10674_v45, %s12427_s1 }
 0x7f9   :  { %4069 = vrot.lane.b32.xlu1 %v10676_v46, %s10232_s0 }
 0x7fd   :  { %4067 = vrot.lane.b32.xlu1 %v10676_v46, %s12427_s1 }
 0x822   :  { %v3212_v13 = vpop.xlane.xlu0 %3211 }
 0x823   :  { %v3232_v21 = vsub.f32 %v3200_v15, %v3212_v13 }
 0x824   :  { %v3209_v23 = vpop.xlane.xlu1 %3208 }
 0x825   :  { %v3241_v25 = vmul.f32 1.442695, %v3232_v21  ;;  %v3231_v28 = vsub.f32 %v3199_v18, %v3209_v23 }
 0x827   :  { %10132 = vpow2.f32 %v3241_v25  ;;  %v3239_v14 = vmul.f32 1.442695, %v3231_v28 }
 0x828   :  { %v3215_v29 = vpop.xlane.xlu0 %3214  ;;  %v3218_v30 = vpop.xlane.xlu1 %3217 }
 0x829   :  { %10134 = vpow2.f32 %v3239_v14  ;;  %v3233_v32 = vsub.f32 %v3201_v55, %v3215_v29  ;;  %v3234_v17 = vsub.f32 %v3202_v43, %v3218_v30 }
 0x82b   :  { %v3243_v36 = vmul.f32 1.442695, %v3233_v32  ;;  %v3245_v37 = vmul.f32 1.442695, %v3234_v17 }
 0x82c   :  { %v3221_v38 = vpop.xlane.xlu0 %3220  ;;  %v3224_v39 = vpop.xlane.xlu1 %3223 }
 0x82d   :  { %10136 = vpow2.f32 %v3243_v36  ;;  %v3235_v40 = vsub.f32 %v3203_v63, %v3221_v38  ;;  %v3236_v41 = vsub.f32 %v3204_v58, %v3224_v39 }
 0x82e   :  { %10138 = vpow2.f32 %v3245_v37 }
 0x82f   :  { %v3247_v42 = vmul.f32 1.442695, %v3235_v40  ;;  %v3249_v15 = vmul.f32 1.442695, %v3236_v41 }
 0x830   :  { %v3227_v19 = vpop.xlane.xlu0 %3226  ;;  %v3373_v20 = vpop.permute.xlu1 %3372 }
 0x831   :  { %v11013_v18 = vpop.eup %10132  ;;  %10140 = vpow2.f32 %v3247_v42  ;;  %v3237_v47 = vsub.f32 %v3205_v9, %v3227_v19  ;;  %9475 = vmatpush3.msk.msra.mxu0 %vm1963_vm8, %v3373_v20 }
 0x832   :  { %10142 = vpow2.f32 %v3249_v15  ;;  %v3258_v43 = vsel %vm1868_vm9, %v11013_v18, 0.0  ;;  %9484 = vmatprep.subr.mxu0 %v12401_v4 }
 0x833   :  { %v11019_v49 = vpop.eup %10134  ;;  %v3251_v55 = vmul.f32 1.442695, %v3237_v47  ;;  %3259 = vadd.xlane.f32.xlu1 %v3258_v43 }
 0x834   :  { %v3296_v56 = vpop.permute.xlu0 %3295  ;;  %v3255_v57 = vsel %vm1868_vm9, %v11019_v49, 0.0  ;;  %v11051_v7 = vpop.permute.xlu1 %3449 }
 0x835   :  { %10144 = vpow2.f32 %v3251_v55  ;;  %3256 = vadd.xlane.f32.xlu0 %v3255_v57  ;;  %9470 = vmatpush3.msk.msra.mxu1 %vm1963_vm8, %v3296_v56 }
 0x836   :  { %9479 = vmatprep.subr.mxu1 %v12401_v4 }
 0x837   :  { %v11025_v58 = vpop.eup %10136 }
 0x838   :  { %v11027_v59 = vpop.eup %10138  ;;  %v3261_v60 = vsel %vm1868_vm9, %v11025_v58, 0.0  ;;  %v3527_v13 = vpop.permute.xlu0 %3526 }
 0x839   :  { %3262 = vadd.xlane.f32.xlu0 %v3261_v60  ;;  %v3264_v61 = vsel %vm1868_vm9, %v11027_v59, 0.0 }
 0x83a   :  { %3265 = vadd.xlane.f32.xlu1 %v3264_v61 }
 0x83b   :  { %v11033_v62 = vpop.eup %10140 }
 0x83c   :  { %v11035_v63 = vpop.eup %10142  ;;  %v3267_v0 = vsel %vm1868_vm9, %v11033_v62, 0.0  ;;  %v3681_v23 = vpop.permute.xlu0 %3680 }
 0x83d   :  { %3268 = vadd.xlane.f32.xlu0 %v3267_v0  ;;  %v3270_v2 = vsel %vm1868_vm9, %v11035_v63, 0.0 }
 0x83e   :  { %3271 = vadd.xlane.f32.xlu1 %v3270_v2 }
 0x83f   :  { %v11041_v3 = vpop.eup %10144 }
 0x840   :  { %v3273_v5 = vsel %vm1868_vm9, %v11041_v3, 0.0  ;;  %v3835_v28 = vpop.permute.xlu0 %3834 }
 0x841   :  { %3274 = vadd.xlane.f32.xlu0 %v3273_v5 }
 0x844   :  { %v11090_v29 = vpop.permute.xlu0 %3991 }
 0x848   :  { %v11092_v32 = vpop.permute.xlu0 %3989 }
 0x84c   :  { %v11094_v36 = vpop.permute.xlu0 %4147 }
 0x857   :  { %4145 = vrot.lane.b32.xlu0 %v10692_v51, %s12427_s1 }
 0x85b   :  { %4303 = vrot.lane.b32.xlu0 %v10702_v53, %s10232_s0 }
 0x85f   :  { %4301 = vrot.lane.b32.xlu0 %v10702_v53, %s12427_s1 }
 0x863   :  { %4459 = vrot.lane.b32.xlu0 %v10710_v54, %s10232_s0 }
 0x865   :  { %v3230_v8 = vpop.xlane.xlu1 %3229 }
 0x866   :  { %v3238_v9 = vsub.f32 %v10999_v12, %v3230_v8 }
 0x867   :  { %4457 = vrot.lane.b32.xlu0 %v10710_v54, %s12427_s1 }
 0x868   :  { %v3253_v10 = vmul.f32 1.442695, %v3238_v9 }
 0x869   :  { %v3604_v12 = vpop.permute.xlu1 %3603 }
 0x86a   :  { %10146 = vpow2.f32 %v3253_v10 }
 0x86b   :  { %4631 = vrot.lane.b32.xlu0 %v10674_v45, %s10239_s23 }
 0x86d   :  { %v3758_v21 = vpop.permute.xlu1 %3757 }
 0x86f   :  { %4862 = vrot.lane.b32.xlu0 %v10692_v51, %s10239_s23 }
 0x871   :  { %v11084_v25 = vpop.permute.xlu1 %3913 }
 0x873   :  { %5016 = vrot.lane.b32.xlu0 %v10702_v53, %s10239_s23 }
 0x874   :  { %v11061_v11 = vpop.eup %10146 }
 0x875   :  { %v3276_v16 = vsel %vm1868_vm9, %v11061_v11, 0.0  ;;  %v3912_v14 = vpop.permute.xlu1 %3911 }
 0x876   :  { %3277 = vadd.xlane.f32.xlu1 %v3276_v16 }
 0x877   :  { %5170 = vrot.lane.b32.xlu0 %v10710_v54, %s10239_s23 }
 0x879   :  { %v4070_v30 = vpop.permute.xlu1 %4069 }
 0x87b   :  { %5327 = vrot.lane.b32.xlu0 %v10682_v48, %s10240_s24 }
 0x87d   :  { %v4068_v17 = vpop.permute.xlu1 %4067 }
 0x87f   :  { %5325 = vrot.lane.b32.xlu0 %v10682_v48, %s10241_s2 }
 0x887   :  { %4225 = vrot.lane.b32.xlu1 %v10686_v50, %s10232_s0 }
 0x88b   :  { %4223 = vrot.lane.b32.xlu1 %v10686_v50, %s12427_s1 }
 0x88f   :  { %4381 = vrot.lane.b32.xlu1 %v10696_v52, %s10232_s0  ;;  %s10242_s0 = smov 40  }
 0x893   :  { %4379 = vrot.lane.b32.xlu1 %v10696_v52, %s12427_s1 }
 0x897   :  { %4708 = vrot.lane.b32.xlu1 %v10682_v48, %s10239_s23 }
 0x89b   :  { %4785 = vrot.lane.b32.xlu1 %v10676_v46, %s10239_s23 }
 0x89f   :  { %4939 = vrot.lane.b32.xlu1 %v10686_v50, %s10239_s23 }
 0x8a3   :  { %5093 = vrot.lane.b32.xlu1 %v10696_v52, %s10239_s23  ;;  %s10248_s23 = smov 9  }
 0x8a7   :  { %5249 = vrot.lane.b32.xlu1 %v10674_v45, %s10240_s24 }
 0x8ab   :  { %5247 = vrot.lane.b32.xlu1 %v10674_v45, %s10241_s2 }
 0x8af   :  { %5405 = vrot.lane.b32.xlu1 %v10676_v46, %s10240_s24 }
 0x8c0   :  { %v3260_v37 = vpop.xlane.xlu1 %3259 }
 0x8c1   :  { %10148 = vrcp.f32 %v3260_v37 }
 0x8c2   :  { %v3257_v38 = vpop.xlane.xlu0 %3256 }
 0x8c3   :  { %10150 = vrcp.f32 %v3257_v38 }
 0x8c6   :  { %v3263_v39 = vpop.xlane.xlu0 %3262 }
 0x8c7   :  { %10152 = vrcp.f32 %v3263_v39  ;;  %v3266_v40 = vpop.xlane.xlu1 %3265 }
 0x8c8   :  { %10154 = vrcp.f32 %v3266_v40 }
 0x8ca   :  { %v3269_v41 = vpop.xlane.xlu0 %3268 }
 0x8cb   :  { %v10149_v42 = vpop.eup %10148  ;;  %10156 = vrcp.f32 %v3269_v41  ;;  %v3272_v15 = vpop.xlane.xlu1 %3271 }
 0x8cc   :  { %10158 = vrcp.f32 %v3272_v15  ;;  %v3288_v19 = vmul.f32 %v10149_v42, %v11013_v18 }
 0x8cd   :  { %v10151_v20 = vpop.eup %10150 }
 0x8ce   :  { %v3275_v47 = vpop.xlane.xlu0 %3274  ;;  %9477 = vmatmul.mubr.msk.f32.vlgmr.msra.gmra.mrb[38].mxu0 %vm1959_vm10, %v3288_v19  ;;  %v3287_v43 = vmul.f32 %v10151_v20, %v11019_v49 }
 0x8cf   :  { %10160 = vrcp.f32 %v3275_v47  ;;  %9485 = vmatpush3.msk.msra.mxu0 %vm1963_vm8, %v3527_v13  ;;  %9486 = vmatprep.mubr.msk.f32.mxu0 %vm10229_vm0, %v12401_v4 }
 0x8d0   :  { %9472 = vmatmul.mubr.msk.f32.vlgmr.msra.gmra.mrb[30].mxu1 %vm1959_vm10, %v3287_v43  ;;  %9494 = vmatprep.subr.mxu0 %v12401_v4 }
 0x8d1   :  { %v10153_v55 = vpop.eup %10152  ;;  %9480 = vmatpush3.msk.msra.mxu1 %vm1963_vm8, %v11051_v7  ;;  %9481 = vmatprep.mubr.msk.f32.mxu1 %vm10229_vm0, %v12401_v4 }
 0x8d2   :  { %v10155_v18 = vpop.eup %10154  ;;  %9489 = vmatprep.subr.mxu1 %v12401_v4  ;;  %v3289_v49 = vmul.f32 %v10153_v55, %v11025_v58 }
 0x8d3   :  { %v3290_v56 = vmul.f32 %v10155_v18, %v11027_v59 }
 0x8d4   :  { %9482 = vmatmul.mubr.msk.f32.vlgmr.msra.gmra.mrb[32].mxu1 %vm1959_vm10, %v3289_v49 }
 0x8d5   :  { %v10157_v57 = vpop.eup %10156  ;;  %9487 = vmatmul.mubr.msk.f32.vlgmr.msra.gmra.mrb[40].mxu0 %vm1959_vm10, %v3290_v56  ;;  %9490 = vmatpush3.msk.msra.mxu1 %vm1963_vm8, %v3604_v12 }
 0x8d6   :  { %v10159_v60 = vpop.eup %10158  ;;  %9495 = vmatpush3.msk.msra.mxu0 %vm1963_vm8, %v3681_v23  ;;  %9491 = vmatprep.mubr.msk.f32.mxu1 %vm10229_vm0, %v12401_v4  ;;  %v3291_v61 = vmul.f32 %v10157_v57, %v11033_v62 }
 0x8d7   :  { %9496 = vmatprep.mubr.msk.f32.mxu0 %vm10229_vm0, %v12401_v4  ;;  %9499 = vmatprep.subr.mxu1 %v12401_v4  ;;  %v3292_v58 = vmul.f32 %v10159_v60, %v11035_v63  ;;  %v4146_v63 = vpop.permute.xlu0 %4145 }
 0x8d8   :  { %9504 = vmatprep.subr.mxu0 %v12401_v4  ;;  %9492 = vmatmul.mubr.msk.f32.vlgmr.msra.gmra.mrb[34].mxu1 %vm1959_vm10, %v3291_v61 }
 0x8d9   :  { %v10161_v59 = vpop.eup %10160  ;;  %9497 = vmatmul.mubr.msk.f32.vlgmr.msra.gmra.mrb[42].mxu0 %vm1959_vm10, %v3292_v58  ;;  %9500 = vmatpush3.msk.msra.mxu1 %vm1963_vm8, %v3758_v21 }
 0x8da   :  { %9505 = vmatpush3.msk.msra.mxu0 %vm1963_vm8, %v3835_v28  ;;  %9501 = vmatprep.mubr.msk.f32.mxu1 %vm10229_vm0, %v12401_v4  ;;  %v3293_v62 = vmul.f32 %v10161_v59, %v11041_v3 }
 0x8db   :  { %9509 = vmatprep.subr.mxu1 %v12401_v4  ;;  %9506 = vmatprep.mubr.msk.f32.mxu0 %vm10229_vm0, %v12401_v4  ;;  %v4304_v0 = vpop.permute.xlu0 %4303 }
 0x8dc   :  { %9502 = vmatmul.mubr.msk.f32.vlgmr.msra.gmra.mrb[36].mxu1 %vm1959_vm10, %v3293_v62  ;;  %9514 = vmatprep.subr.mxu0 %v12401_v4 }
 0x8dd   :  { %9511 = vmatprep.mubr.msk.f32.mxu1 %vm10229_vm0, %v12401_v4 }
 0x8df   :  { %v4302_v2 = vpop.permute.xlu0 %4301 }
 0x8e0   :  { %9510 = vmatpush3.xpose.msk.msra.mxu1 %vm1253_vm7, %v11084_v25 }
 0x8e1   :  { %9519 = vmatprep.subr.mxu1 %v12401_v4 }
 0x8e3   :  { %9512 = vmatmul.mubr.msk.f32.vlgmr.msra.gmra.mrb[38].mxu1 %vm1253_vm7, %v3912_v14  ;;  %v4460_v7 = vpop.permute.xlu0 %4459 }
 0x8e4   :  { %9520 = vmatpush3.xpose.msk.msra.mxu1 %vm1253_vm7, %v4070_v30  ;;  %9521 = vmatprep.mubr.msk.f32.mxu1 %vm10229_vm0, %v12401_v4 }
 0x8e5   :  { %9529 = vmatprep.subr.mxu1 %v12401_v4 }
 0x8e7   :  { %9522 = vmatmul.mubr.msk.f32.vlgmr.msra.gmra.mrb[40].mxu1 %vm1253_vm7, %v4068_v17  ;;  %v4458_v10 = vpop.permute.xlu0 %4457 }
 0x8e8   :  { %9531 = vmatprep.mubr.msk.f32.mxu1 %vm10229_vm0, %v12401_v4 }
 0x8eb   :  { %v4632_v21 = vpop.permute.xlu0 %4631 }
 0x903   :  { %v3278_v3 = vpop.xlane.xlu1 %3277 }
 0x904   :  { %10162 = vrcp.f32 %v3278_v3 }
 0x907   :  { %v4226_v5 = vpop.permute.xlu1 %4225 }
 0x908   :  { %9530 = vmatpush3.xpose.msk.msra.mxu1 %vm1253_vm7, %v4226_v5 }
 0x909   :  { %9539 = vmatprep.subr.mxu1 %v12401_v4 }
 0x90b   :  { %v4224_v8 = vpop.permute.xlu1 %4223 }
 0x90c   :  { %9532 = vmatmul.mubr.msk.f32.vlgmr.msra.gmra.mrb[42].mxu1 %vm1253_vm7, %v4224_v8 }
 0x90d   :  { %9541 = vmatprep.mubr.msk.f32.mxu1 %vm10229_vm0, %v12401_v4 }
 0x90e   :  { %v10163_v9 = vpop.eup %10162 }
 0x90f   :  { %v4382_v16 = vpop.permute.xlu1 %4381  ;;  %v3294_v12 = vmul.f32 %v10163_v9, %v11061_v11 }
 0x910   :  { %9540 = vmatpush3.xpose.msk.msra.mxu1 %vm1253_vm7, %v4382_v16 }
 0x911   :  { %9507 = vmatmul.mubr.msk.f32.vlgmr.msra.gmra.mrb[44].mxu0 %vm1959_vm10, %v3294_v12  ;;  %9549 = vmatprep.subr.mxu1 %v12401_v4 }
 0x912   :  { %9515 = vmatpush3.xpose.msk.msra.mxu0 %vm1253_vm7, %v11090_v29  ;;  %9516 = vmatprep.mubr.msk.f32.mxu0 %vm10229_vm0, %v12401_v4 }
 0x913   :  { %v4380_v13 = vpop.permute.xlu1 %4379  ;;  %9524 = vmatprep.subr.mxu0 %v12401_v4 }
 0x914   :  { %9542 = vmatmul.mubr.msk.f32.vlgmr.msra.gmra.mrb[44].mxu1 %vm1253_vm7, %v4380_v13 }
 0x915   :  { %9550 = vmatpush3.msk.msra.mxu1 %vm1963_vm8, %v4632_v21  ;;  %9517 = vmatmul.mubr.msk.f32.vlgmr.msra.gmra.mrb[46].mxu0 %vm1253_vm7, %v11092_v32 }
 0x916   :  { %9525 = vmatpush3.xpose.msk.msra.mxu0 %vm1253_vm7, %v11094_v36  ;;  %9526 = vmatprep.mubr.msk.f32.mxu0 %vm10229_vm0, %v12401_v4 }
 0x917   :  { %9534 = vmatprep.subr.mxu0 %v12401_v4  ;;  %9551 = vmatprep.mubr.msk.f32.mxu1 %vm10229_vm0, %v12401_v4  ;;  %v4709_v11 = vpop.permute.xlu1 %4708 }
 0x918   :  { %9559 = vmatprep.subr.mxu1 %v12401_v4 }
 0x919   :  { %9527 = vmatmul.mubr.msk.f32.vlgmr.msra.gmra.mrb[48].mxu0 %vm1253_vm7, %v4146_v63 }
 0x91a   :  { %9535 = vmatpush3.xpose.msk.msra.mxu0 %vm1253_vm7, %v4304_v0  ;;  %9536 = vmatprep.mubr.msk.f32.mxu0 %vm10229_vm0, %v12401_v4 }
 0x91b   :  { %9544 = vmatprep.subr.mxu0 %v12401_v4 }
 0x91d   :  { %9537 = vmatmul.mubr.msk.f32.vlgmr.msra.gmra.mrb[50].mxu0 %vm1253_vm7, %v4302_v2 }
 0x91e   :  { %9545 = vmatpush3.xpose.msk.msra.mxu0 %vm1253_vm7, %v4460_v7  ;;  %9546 = vmatprep.mubr.msk.f32.mxu0 %vm10229_vm0, %v12401_v4 }
 0x91f   :  { %9554 = vmatprep.subr.mxu0 %v12401_v4 }
 0x921   :  { %9547 = vmatmul.mubr.msk.f32.vlgmr.msra.gmra.mrb[52].mxu0 %vm1253_vm7, %v4458_v10 }
 0x922   :  { %9555 = vmatpush3.msk.msra.mxu0 %vm1963_vm8, %v4709_v11  ;;  %9556 = vmatprep.mubr.msk.f32.mxu0 %vm10229_vm0, %v12401_v4 }
 0x923   :  { %9564 = vmatprep.subr.mxu0 %v12401_v4 }
 0x9a1   :  { %v11189_v23 = vpop.f32.mrb[38].mxu0 }
 0x9a2   :  { %v9478_v25 = vpop.f32.mrb[39].mxu0 }
 0x9a3   :  { %v11191_v28 = vpop.f32.mrb[30].mxu1 }
 0x9a4   :  { %v9473_v14 = vpop.f32.mrb[31].mxu1 }
 0x9a7   :  { %v11193_v29 = vpop.f32.mrb[32].mxu1 }
 0x9a8   :  { %v11195_v30 = vpop.f32.mrb[40].mxu0  ;;  %v9483_v32 = vpop.f32.mrb[33].mxu1 }
 0x9a9   :  { %v9488_v17 = vpop.f32.mrb[41].mxu0 }
 0x9ab   :  { %v11197_v36 = vpop.f32.mrb[34].mxu1 }
 0x9ac   :  { %v11199_v37 = vpop.f32.mrb[42].mxu0  ;;  %v9493_v38 = vpop.f32.mrb[35].mxu1 }
 0x9ad   :  { %v9498_v39 = vpop.f32.mrb[43].mxu0  ;;  %v11223_v38 = vpop.permute.xlu1 %4785 }
 0x9af   :  { %v11201_v40 = vpop.f32.mrb[36].mxu1 }
 0x9b0   :  { %v9503_v41 = vpop.f32.mrb[37].mxu1 }
 0x9b1   :  { %v11225_v39 = vpop.permute.xlu1 %4939 }
 0x9b5   :  { %v11227_v41 = vpop.permute.xlu1 %5093 }
 0x9b6   :  { %v3985_v42 = vpop.f32.mrb[38].mxu1 }
 0x9b7   :  { %v4535_v15 = vmul.f32 0.35355338, %v3985_v42  ;;  %v9513_v19 = vpop.f32.mrb[39].mxu1 }
 0x9b9   :  { %v4543_v20 = vsel %vm1868_vm9, %v4535_v15, -inf  ;;  %v11229_v42 = vpop.permute.xlu1 %5249 }
 0x9ba   :  { %4544 = vmax.xlane.f32.xlu1 %v4543_v20  ;;  %v4141_v47 = vpop.f32.mrb[40].mxu1 }
 0x9bb   :  { %v9523_v43 = vpop.f32.mrb[41].mxu1  ;;  %v4537_v62 = vmul.f32 0.35355338, %v4141_v47 }
 0x9bd   :  { %v4549_v7 = vsel %vm1868_vm9, %v4537_v62, -inf  ;;  %v11231_v19 = vpop.permute.xlu1 %5247 }
 0x9c1   :  { %v11233_v20 = vpop.permute.xlu1 %5405 }
 0x9df   :  { %v4297_v55 = vpop.f32.mrb[42].mxu1 }
 0x9e0   :  { %v9533_v18 = vpop.f32.mrb[43].mxu1  ;;  %v4539_v5 = vmul.f32 0.35355338, %v4297_v55 }
 0x9e2   :  { %v4555_v13 = vsel %vm1868_vm9, %v4539_v5, -inf }
 0x9e4   :  { %v11204_v49 = vpop.f32.mrb[44].mxu0 }
 0x9e5   :  { %v9508_v56 = vpop.f32.mrb[45].mxu0 }
 0x9e7   :  { %v4453_v57 = vpop.f32.mrb[44].mxu1 }
 0x9e8   :  { %v4063_v60 = vpop.f32.mrb[46].mxu0  ;;  %v9543_v61 = vpop.f32.mrb[45].mxu1  ;;  %v11209_v12 = vmul.f32 0.35355338, %v4453_v57 }
 0x9e9   :  { %v4536_v58 = vmul.f32 0.35355338, %v4063_v60  ;;  %v9518_v59 = vpop.f32.mrb[47].mxu0  ;;  %v11239_v57 = vpop.permute.xlu0 %4862 }
 0x9ea   :  { %v4561_v32 = vsel %vm1868_vm9, %v11209_v12, -inf }
 0x9eb   :  { %v4546_v63 = vsel %vm1868_vm9, %v4536_v58, -inf }
 0x9ec   :  { %4547 = vmax.xlane.f32.xlu0 %v4546_v63  ;;  %v4219_v0 = vpop.f32.mrb[48].mxu0 }
 0x9ed   :  { %v4538_v2 = vmul.f32 0.35355338, %v4219_v0  ;;  %v9528_v3 = vpop.f32.mrb[49].mxu0  ;;  %v11241_v60 = vpop.permute.xlu0 %5016 }
 0x9ef   :  { %v4552_v8 = vsel %vm1868_vm9, %v4538_v2, -inf }
 0x9f0   :  { %4550 = vmax.xlane.f32.xlu0 %v4549_v7  ;;  %4553 = vmax.xlane.f32.xlu1 %v4552_v8  ;;  %v4375_v9 = vpop.f32.mrb[50].mxu0 }
 0x9f1   :  { %v4540_v10 = vmul.f32 0.35355338, %v4375_v9  ;;  %v9538_v16 = vpop.f32.mrb[51].mxu0  ;;  %v11243_v61 = vpop.permute.xlu0 %5170 }
 0x9f3   :  { %v4558_v21 = vsel %vm1868_vm9, %v4540_v10, -inf }
 0x9f4   :  { %4556 = vmax.xlane.f32.xlu0 %v4555_v13  ;;  %4559 = vmax.xlane.f32.xlu1 %v4558_v21  ;;  %v4531_v11 = vpop.f32.mrb[52].mxu0 }
 0x9f5   :  { %v11213_v25 = vmul.f32 0.35355338, %v4531_v11  ;;  %v9548_v14 = vpop.f32.mrb[53].mxu0  ;;  %v11245_v59 = vpop.permute.xlu0 %5327 }
 0x9f7   :  { %v4564_v17 = vsel %vm1868_vm9, %v11213_v25, -inf }
 0x9f8   :  { %4562 = vmax.xlane.f32.xlu0 %v4561_v32  ;;  %4565 = vmax.xlane.f32.xlu1 %v4564_v17 }
 0x9f9   :  { %v11247_v63 = vpop.permute.xlu0 %5325 }
 0xa09   :  { %5403 = vrot.lane.b32.xlu1 %v10676_v46, %s10241_s2 }
 0xa0e   :  { %5483 = vrot.lane.b32.xlu0 %v10692_v51, %s10240_s24 }
 0xa47   :  { %v4545_v47 = vpop.xlane.xlu1 %4544 }
 0xa48   :  { %v4567_v43 = vsub.f32 %v4535_v15, %v4545_v47 }
 0xa4a   :  { %v4575_v55 = vmul.f32 1.442695, %v4567_v43 }
 0xa4c   :  { %10164 = vpow2.f32 %v4575_v55 }
 0xa56   :  { %v11235_v18 = vpop.eup %10164 }
 0xa57   :  { %v4591_v56 = vsel %vm1868_vm9, %v11235_v18, 0.0 }
 0xa58   :  { %4592 = vadd.xlane.f32.xlu0 %v4591_v56 }
 0xa79   :  { %v4548_v0 = vpop.xlane.xlu0 %4547 }
 0xa7a   :  { %v4568_v15 = vsub.f32 %v4536_v58, %v4548_v0 }
 0xa7c   :  { %v4577_v3 = vmul.f32 1.442695, %v4568_v15 }
 0xa7d   :  { %v4551_v7 = vpop.xlane.xlu0 %4550  ;;  %v4554_v8 = vpop.xlane.xlu1 %4553 }
 0xa7e   :  { %10166 = vpow2.f32 %v4577_v3  ;;  %v4569_v9 = vsub.f32 %v4537_v62, %v4551_v7  ;;  %v4570_v16 = vsub.f32 %v4538_v2, %v4554_v8 }
 0xa80   :  { %v4579_v13 = vmul.f32 1.442695, %v4569_v9  ;;  %v4581_v21 = vmul.f32 1.442695, %v4570_v16 }
 0xa81   :  { %v4557_v11 = vpop.xlane.xlu0 %4556  ;;  %v4560_v14 = vpop.xlane.xlu1 %4559 }
 0xa82   :  { %10168 = vpow2.f32 %v4579_v13  ;;  %v4571_v32 = vsub.f32 %v4539_v5, %v4557_v11  ;;  %v4572_v17 = vsub.f32 %v4540_v10, %v4560_v14 }
 0xa83   :  { %10170 = vpow2.f32 %v4581_v21 }
 0xa84   :  { %v4583_v47 = vmul.f32 1.442695, %v4571_v32  ;;  %v4585_v43 = vmul.f32 1.442695, %v4572_v17 }
 0xa85   :  { %v4563_v7 = vpop.xlane.xlu0 %4562  ;;  %v4566_v8 = vpop.xlane.xlu1 %4565 }
 0xa86   :  { %10172 = vpow2.f32 %v4583_v47  ;;  %v4573_v9 = vsub.f32 %v11209_v12, %v4563_v7  ;;  %v4574_v16 = vsub.f32 %v11213_v25, %v4566_v8 }
 0xa87   :  { %10174 = vpow2.f32 %v4585_v43 }
 0xa88   :  { %v10167_v55 = vpop.eup %10166  ;;  %v4587_v13 = vmul.f32 1.442695, %v4573_v9  ;;  %v4589_v21 = vmul.f32 1.442695, %v4574_v16 }
 0xa89   :  { %v4594_v58 = vsel %vm1868_vm9, %v10167_v55, 0.0  ;;  %v11283_v12 = vpop.permute.xlu0 %5483 }
 0xa8a   :  { %4595 = vadd.xlane.f32.xlu1 %v4594_v58  ;;  %10176 = vpow2.f32 %v4587_v13  ;;  %v11300_v58 = vpop.permute.xlu1 %5403 }
 0xa8b   :  { %10178 = vpow2.f32 %v4589_v21 }
 0xa8c   :  { %v10169_v56 = vpop.eup %10168 }
 0xa8d   :  { %v11250_v0 = vpop.eup %10170  ;;  %v4597_v62 = vsel %vm1868_vm9, %v10169_v56, 0.0 }
 0xa8e   :  { %4598 = vadd.xlane.f32.xlu0 %v4597_v62  ;;  %v4600_v2 = vsel %vm1868_vm9, %v11250_v0, 0.0 }
 0xa8f   :  { %4601 = vadd.xlane.f32.xlu1 %v4600_v2 }
 0xa90   :  { %v11255_v5 = vpop.eup %10172 }
 0xa91   :  { %v11257_v10 = vpop.eup %10174  ;;  %v4603_v15 = vsel %vm1868_vm9, %v11255_v5, 0.0 }
 0xa92   :  { %4604 = vadd.xlane.f32.xlu0 %v4603_v15  ;;  %v4606_v3 = vsel %vm1868_vm9, %v11257_v10, 0.0 }
 0xa93   :  { %4607 = vadd.xlane.f32.xlu1 %v4606_v3 }
 0xa94   :  { %v11269_v11 = vpop.eup %10176 }
 0xa95   :  { %v11271_v14 = vpop.eup %10178  ;;  %v4609_v32 = vsel %vm1868_vm9, %v11269_v11, 0.0 }
 0xa96   :  { %v4612_v17 = vsel %vm1868_vm9, %v11271_v14, 0.0 }
 0xaa4   :  { %5561 = vrot.lane.b32.xlu1 %v10686_v50, %s10240_s24 }
 0xaa8   :  { %5481 = vrot.lane.b32.xlu0 %v10692_v51, %s10241_s2 }
 0xac7   :  { %4610 = vadd.xlane.f32.xlu0 %v4609_v32 }
 0xac8   :  { %4613 = vadd.xlane.f32.xlu1 %v4612_v17 }
 0xad9   :  { %5559 = vrot.lane.b32.xlu1 %v10686_v50, %s10241_s2 }
 0xadd   :  { %5717 = vrot.lane.b32.xlu1 %v10696_v52, %s10240_s24  ;;  %5639 = vrot.lane.b32.xlu0 %v10702_v53, %s10240_s24 }
 0xae1   :  { %5715 = vrot.lane.b32.xlu1 %v10696_v52, %s10241_s2  ;;  %5637 = vrot.lane.b32.xlu0 %v10702_v53, %s10241_s2 }
 0xae5   :  { %v4593_v25 = vpop.xlane.xlu0 %4592  ;;  %5795 = vrot.lane.b32.xlu0 %v10710_v54, %s10240_s24  ;;  %s10245_s24 = smov 24  }
 0xae6   :  { %10180 = vrcp.f32 %v4593_v25 }
 0xae9   :  { %5793 = vrot.lane.b32.xlu0 %v10710_v54, %s10241_s2 }
 0xaf0   :  { %v10181_v47 = vpop.eup %10180 }
 0xaf1   :  { %v4623_v43 = vmul.f32 %v10181_v47, %v11235_v18 }
 0xaf3   :  { %9552 = vmatmul.mubr.msk.f32.vlgmr.msra.gmra.mrb[46].mxu1 %vm1959_vm10, %v4623_v43 }
 0xaf4   :  { %9560 = vmatpush3.msk.msra.mxu1 %vm1963_vm8, %v11223_v38  ;;  %9561 = vmatprep.mubr.msk.f32.mxu1 %vm10229_vm0, %v12401_v4 }
 0xaf5   :  { %9569 = vmatprep.subr.mxu1 %v12401_v4 }
 0xb17   :  { %v4596_v62 = vpop.xlane.xlu1 %4595 }
 0xb18   :  { %10182 = vrcp.f32 %v4596_v62 }
 0xb1b   :  { %v4599_v2 = vpop.xlane.xlu0 %4598 }
 0xb1c   :  { %10184 = vrcp.f32 %v4599_v2  ;;  %v4602_v15 = vpop.xlane.xlu1 %4601 }
 0xb1d   :  { %10186 = vrcp.f32 %v4602_v15 }
 0xb1f   :  { %v4605_v3 = vpop.xlane.xlu0 %4604 }
 0xb20   :  { %10188 = vrcp.f32 %v4605_v3  ;;  %v4608_v18 = vpop.xlane.xlu1 %4607 }
 0xb21   :  { %10190 = vrcp.f32 %v4608_v18 }
 0xb22   :  { %v10183_v7 = vpop.eup %10182 }
 0xb23   :  { %v4624_v8 = vmul.f32 %v10183_v7, %v10167_v55 }
 0xb25   :  { %9557 = vmatmul.mubr.msk.f32.vlgmr.msra.gmra.mrb[54].mxu0 %vm1959_vm10, %v4624_v8 }
 0xb26   :  { %v10185_v38 = vpop.eup %10184  ;;  %9565 = vmatpush3.msk.msra.mxu0 %vm1963_vm8, %v11239_v57  ;;  %9566 = vmatprep.mubr.msk.f32.mxu0 %vm10229_vm0, %v12401_v4 }
 0xb27   :  { %v10187_v9 = vpop.eup %10186  ;;  %v4625_v16 = vmul.f32 %v10185_v38, %v10169_v56  ;;  %9574 = vmatprep.subr.mxu0 %v12401_v4 }
 0xb28   :  { %v4626_v13 = vmul.f32 %v10187_v9, %v11250_v0 }
 0xb29   :  { %9562 = vmatmul.mubr.msk.f32.vlgmr.msra.gmra.mrb[48].mxu1 %vm1959_vm10, %v4625_v16 }
 0xb2a   :  { %v10189_v21 = vpop.eup %10188  ;;  %9567 = vmatmul.mubr.msk.f32.vlgmr.msra.gmra.mrb[56].mxu0 %vm1959_vm10, %v4626_v13  ;;  %9570 = vmatpush3.msk.msra.mxu1 %vm1963_vm8, %v11225_v39  ;;  %v5482_v39 = vpop.permute.xlu0 %5481 }
 0xb2b   :  { %v10191_v55 = vpop.eup %10190  ;;  %v4627_v57 = vmul.f32 %v10189_v21, %v11255_v5  ;;  %9575 = vmatpush3.msk.msra.mxu0 %vm1963_vm8, %v11241_v60  ;;  %9571 = vmatprep.mubr.msk.f32.mxu1 %vm10229_vm0, %v12401_v4  ;;  %v5562_v60 = vpop.permute.xlu1 %5561 }
 0xb2c   :  { %v4628_v56 = vmul.f32 %v10191_v55, %v11257_v10  ;;  %9576 = vmatprep.mubr.msk.f32.mxu0 %vm10229_vm0, %v12401_v4  ;;  %9579 = vmatprep.subr.mxu1 %v12401_v4 }
 0xb2d   :  { %9584 = vmatprep.subr.mxu0 %v12401_v4  ;;  %9572 = vmatmul.mubr.msk.f32.vlgmr.msra.gmra.mrb[50].mxu1 %vm1959_vm10, %v4627_v57 }
 0xb2e   :  { %9577 = vmatmul.mubr.msk.f32.vlgmr.msra.gmra.mrb[58].mxu0 %vm1959_vm10, %v4628_v56  ;;  %9580 = vmatpush3.msk.msra.mxu1 %vm1963_vm8, %v11227_v41 }
 0xb2f   :  { %9585 = vmatpush3.msk.msra.mxu0 %vm1963_vm8, %v11243_v61  ;;  %9581 = vmatprep.mubr.msk.f32.mxu1 %vm10229_vm0, %v12401_v4 }
 0xb30   :  { %9586 = vmatprep.mubr.msk.f32.mxu0 %vm10229_vm0, %v12401_v4  ;;  %9589 = vmatprep.subr.mxu1 %v12401_v4 }
 0xb31   :  { %9594 = vmatprep.subr.mxu0 %v12401_v4 }
 0xb54   :  { %v4611_v0 = vpop.xlane.xlu0 %4610 }
 0xb55   :  { %10192 = vrcp.f32 %v4611_v0  ;;  %v4614_v5 = vpop.xlane.xlu1 %4613 }
 0xb56   :  { %10194 = vrcp.f32 %v4614_v5 }
 0xb58   :  { %v5640_v32 = vpop.permute.xlu0 %5639 }
 0xb59   :  { %v5560_v25 = vpop.permute.xlu1 %5559 }
 0xb5f   :  { %v10193_v41 = vpop.eup %10192 }
 0xb60   :  { %v10195_v10 = vpop.eup %10194  ;;  %v4629_v61 = vmul.f32 %v10193_v41, %v11269_v11  ;;  %v5638_v11 = vpop.permute.xlu0 %5637 }
 0xb61   :  { %v4630_v17 = vmul.f32 %v10195_v10, %v11271_v14 }
 0xb62   :  { %9582 = vmatmul.mubr.msk.f32.vlgmr.msra.gmra.mrb[52].mxu1 %vm1959_vm10, %v4629_v61 }
 0xb63   :  { %9587 = vmatmul.mubr.msk.f32.vlgmr.msra.gmra.mrb[60].mxu0 %vm1959_vm10, %v4630_v17  ;;  %9590 = vmatpush3.xpose.msk.msra.mxu1 %vm1253_vm7, %v11229_v42  ;;  %v5718_v42 = vpop.permute.xlu1 %5717 }
 0xb64   :  { %9595 = vmatpush3.xpose.msk.msra.mxu0 %vm1253_vm7, %v11245_v59  ;;  %9591 = vmatprep.mubr.msk.f32.mxu1 %vm10229_vm0, %v12401_v4 }
 0xb65   :  { %9596 = vmatprep.mubr.msk.f32.mxu0 %vm10229_vm0, %v12401_v4  ;;  %9599 = vmatprep.subr.mxu1 %v12401_v4 }
 0xb66   :  { %9604 = vmatprep.subr.mxu0 %v12401_v4  ;;  %9592 = vmatmul.mubr.msk.f32.vlgmr.msra.gmra.mrb[54].mxu1 %vm1253_vm7, %v11231_v19  ;;  %v5796_v19 = vpop.permute.xlu0 %5795 }
 0xb67   :  { %9597 = vmatmul.mubr.msk.f32.vlgmr.msra.gmra.mrb[62].mxu0 %vm1253_vm7, %v11247_v63  ;;  %9600 = vmatpush3.xpose.msk.msra.mxu1 %vm1253_vm7, %v11233_v20  ;;  %v5716_v20 = vpop.permute.xlu1 %5715 }
 0xb68   :  { %9605 = vmatpush3.xpose.msk.msra.mxu0 %vm1253_vm7, %v11283_v12  ;;  %9601 = vmatprep.mubr.msk.f32.mxu1 %vm10229_vm0, %v12401_v4 }
 0xb69   :  { %9606 = vmatprep.mubr.msk.f32.mxu0 %vm10229_vm0, %v12401_v4  ;;  %9609 = vmatprep.subr.mxu1 %v12401_v4 }
 0xb6a   :  { %9614 = vmatprep.subr.mxu0 %v12401_v4  ;;  %9602 = vmatmul.mubr.msk.f32.vlgmr.msra.gmra.mrb[56].mxu1 %vm1253_vm7, %v11300_v58  ;;  %v5794_v59 = vpop.permute.xlu0 %5793 }
 0xb6b   :  { %9607 = vmatmul.mubr.msk.f32.vlgmr.msra.gmra.mrb[64].mxu0 %vm1253_vm7, %v5482_v39  ;;  %9610 = vmatpush3.xpose.msk.msra.mxu1 %vm1253_vm7, %v5562_v60 }
 0xb6c   :  { %9615 = vmatpush3.xpose.msk.msra.mxu0 %vm1253_vm7, %v5640_v32  ;;  %9611 = vmatprep.mubr.msk.f32.mxu1 %vm10229_vm0, %v12401_v4 }
 0xb6d   :  { %9616 = vmatprep.mubr.msk.f32.mxu0 %vm10229_vm0, %v12401_v4  ;;  %9619 = vmatprep.subr.mxu1 %v12401_v4 }
 0xb6e   :  { %9624 = vmatprep.subr.mxu0 %v12401_v4  ;;  %9612 = vmatmul.mubr.msk.f32.vlgmr.msra.gmra.mrb[58].mxu1 %vm1253_vm7, %v5560_v25 }
 0xb6f   :  { %9617 = vmatmul.mubr.msk.f32.vlgmr.msra.gmra.mrb[66].mxu0 %vm1253_vm7, %v5638_v11  ;;  %9620 = vmatpush3.xpose.msk.msra.mxu1 %vm1253_vm7, %v5718_v42 }
 0xb70   :  { %9625 = vmatpush3.xpose.msk.msra.mxu0 %vm1253_vm7, %v5796_v19  ;;  %9621 = vmatprep.mubr.msk.f32.mxu1 %vm10229_vm0, %v12401_v4 }
 0xb71   :  { %9626 = vmatprep.mubr.msk.f32.mxu0 %vm10229_vm0, %v12401_v4  ;;  %9629 = vmatprep.subr.mxu1 %v12401_v4 }
 0xb72   :  { %9622 = vmatmul.mubr.msk.f32.vlgmr.msra.gmra.mrb[60].mxu1 %vm1253_vm7, %v5716_v20  ;;  %9634 = vmatprep.subr.mxu0 %v12401_v4 }
 0xb73   :  { %9627 = vmatmul.mubr.msk.f32.vlgmr.msra.gmra.mrb[68].mxu0 %vm1253_vm7, %v5794_v59  ;;  %9631 = vmatprep.mubr.msk.f32.mxu1 %vm10229_vm0, %v12401_v4 }
 0xb74   :  { %9636 = vmatprep.mubr.msk.f32.mxu0 %vm10229_vm0, %v12401_v4 }
 0xbc6   :  { %v11390_v63 = vpop.f32.mrb[46].mxu1 }
 0xbc7   :  { %v9553_v14 = vpop.f32.mrb[47].mxu1 }
 0xbf8   :  { %v11392_v12 = vpop.f32.mrb[54].mxu0 }
 0xbf9   :  { %v9558_v47 = vpop.f32.mrb[55].mxu0 }
 0xbfc   :  { %v11394_v43 = vpop.f32.mrb[48].mxu1 }
 0xbfd   :  { %v11396_v58 = vpop.f32.mrb[56].mxu0  ;;  %v9563_v62 = vpop.f32.mrb[49].mxu1 }
 0xbfe   :  { %v9568_v2 = vpop.f32.mrb[57].mxu0 }
 0xc00   :  { %v11398_v15 = vpop.f32.mrb[50].mxu1 }
 0xc01   :  { %v11400_v3 = vpop.f32.mrb[58].mxu0  ;;  %v9573_v18 = vpop.f32.mrb[51].mxu1 }
 0xc02   :  { %v9578_v7 = vpop.f32.mrb[59].mxu0 }
 0xc35   :  { %v11402_v8 = vpop.f32.mrb[52].mxu1 }
 0xc36   :  { %v11404_v38 = vpop.f32.mrb[60].mxu0  ;;  %v9583_v9 = vpop.f32.mrb[53].mxu1 }
 0xc37   :  { %v9588_v16 = vpop.f32.mrb[61].mxu0 }
 0xc39   :  { %v5321_v13 = vpop.f32.mrb[54].mxu1 }
 0xc3a   :  { %v5871_v21 = vmul.f32 0.35355338, %v5321_v13  ;;  %v5399_v55 = vpop.f32.mrb[62].mxu0  ;;  %v9593_v57 = vpop.f32.mrb[55].mxu1 }
 0xc3b   :  { %v5872_v56 = vmul.f32 0.35355338, %v5399_v55  ;;  %v9598_v39 = vpop.f32.mrb[63].mxu0 }
 0xc3c   :  { %v5879_v60 = vsel %vm1868_vm9, %v5871_v21, -inf }
 0xc3d   :  { %5880 = vmax.xlane.f32.xlu1 %v5879_v60  ;;  %v5477_v0 = vpop.f32.mrb[56].mxu1  ;;  %v5882_v5 = vsel %vm1868_vm9, %v5872_v56, -inf }
 0xc3e   :  { %v5873_v41 = vmul.f32 0.35355338, %v5477_v0  ;;  %5883 = vmax.xlane.f32.xlu0 %v5882_v5  ;;  %v5555_v10 = vpop.f32.mrb[64].mxu0  ;;  %v9603_v61 = vpop.f32.mrb[57].mxu1 }
 0xc3f   :  { %v5874_v32 = vmul.f32 0.35355338, %v5555_v10  ;;  %v9608_v17 = vpop.f32.mrb[65].mxu0 }
 0xc40   :  { %v5885_v25 = vsel %vm1868_vm9, %v5873_v41, -inf }
 0xc41   :  { %v5633_v11 = vpop.f32.mrb[58].mxu1  ;;  %v5888_v42 = vsel %vm1868_vm9, %v5874_v32, -inf }
 0xc42   :  { %v5875_v19 = vmul.f32 0.35355338, %v5633_v11  ;;  %5886 = vmax.xlane.f32.xlu0 %v5885_v25  ;;  %5889 = vmax.xlane.f32.xlu1 %v5888_v42  ;;  %v5711_v20 = vpop.f32.mrb[66].mxu0  ;;  %v9613_v59 = vpop.f32.mrb[59].mxu1 }
 0xc43   :  { %v5876_v14 = vmul.f32 0.35355338, %v5711_v20  ;;  %v9618_v47 = vpop.f32.mrb[67].mxu0 }
 0xc44   :  { %v5891_v62 = vsel %vm1868_vm9, %v5875_v19, -inf }
 0xc45   :  { %v5789_v2 = vpop.f32.mrb[60].mxu1  ;;  %v5894_v18 = vsel %vm1868_vm9, %v5876_v14, -inf }
 0xc46   :  { %v5877_v7 = vmul.f32 0.35355338, %v5789_v2  ;;  %5892 = vmax.xlane.f32.xlu0 %v5891_v62  ;;  %5895 = vmax.xlane.f32.xlu1 %v5894_v18  ;;  %v5867_v9 = vpop.f32.mrb[68].mxu0  ;;  %v9623_v16 = vpop.f32.mrb[61].mxu1 }
 0xc47   :  { %v5878_v13 = vmul.f32 0.35355338, %v5867_v9  ;;  %v9628_v55 = vpop.f32.mrb[69].mxu0 }
 0xc48   :  { %v5897_v57 = vsel %vm1868_vm9, %v5877_v7, -inf }
 0xc49   :  { %v5900_v39 = vsel %vm1868_vm9, %v5878_v13, -inf }
 0xc4a   :  { %5898 = vmax.xlane.f32.xlu0 %v5897_v57  ;;  %5901 = vmax.xlane.f32.xlu1 %v5900_v39 }
 0xc5b   :  { %6044 = vrot.lane.b32.xlu1 %v10682_v48, %s10242_s0 }
 0xc5f   :  { %6121 = vrot.lane.b32.xlu1 %v10676_v46, %s10242_s0 }
 0xc60   :  { %5967 = vrot.lane.b32.xlu0 %v10674_v45, %s10242_s0 }
 0xc63   :  { %6275 = vrot.lane.b32.xlu1 %v10686_v50, %s10242_s0 }
 0xc64   :  { %6198 = vrot.lane.b32.xlu0 %v10692_v51, %s10242_s0 }
 0xc68   :  { %6352 = vrot.lane.b32.xlu0 %v10702_v53, %s10242_s0 }
 0xcca   :  { %v5881_v60 = vpop.xlane.xlu1 %5880 }
 0xccb   :  { %v5903_v0 = vsub.f32 %v5871_v21, %v5881_v60  ;;  %v5884_v5 = vpop.xlane.xlu0 %5883 }
 0xccc   :  { %v5904_v10 = vsub.f32 %v5872_v56, %v5884_v5 }
 0xccd   :  { %v5911_v48 = vmul.f32 1.442695, %v5903_v0 }
 0xcce   :  { %v5913_v61 = vmul.f32 1.442695, %v5904_v10 }
 0xccf   :  { %10196 = vpow2.f32 %v5911_v48  ;;  %v5887_v46 = vpop.xlane.xlu0 %5886  ;;  %v5890_v17 = vpop.xlane.xlu1 %5889 }
 0xcd0   :  { %10198 = vpow2.f32 %v5913_v61  ;;  %v5905_v45 = vsub.f32 %v5873_v41, %v5887_v46  ;;  %v5906_v25 = vsub.f32 %v5874_v32, %v5890_v17 }
 0xcd2   :  { %v5915_v11 = vmul.f32 1.442695, %v5905_v45  ;;  %v5917_v50 = vmul.f32 1.442695, %v5906_v25 }
 0xcd3   :  { %v5893_v42 = vpop.xlane.xlu0 %5892  ;;  %v5896_v20 = vpop.xlane.xlu1 %5895 }
 0xcd4   :  { %10200 = vpow2.f32 %v5915_v11  ;;  %v5907_v51 = vsub.f32 %v5875_v19, %v5893_v42  ;;  %v5908_v59 = vsub.f32 %v5876_v14, %v5896_v20 }
 0xcd5   :  { %10202 = vpow2.f32 %v5917_v50 }
 0xcd6   :  { %v5919_v53 = vmul.f32 1.442695, %v5907_v51  ;;  %v5921_v21 = vmul.f32 1.442695, %v5908_v59 }
 0xcd7   :  { %v5899_v47 = vpop.xlane.xlu0 %5898  ;;  %v5902_v56 = vpop.xlane.xlu1 %5901 }
 0xcd8   :  { %10204 = vpow2.f32 %v5919_v53  ;;  %v5909_v62 = vsub.f32 %v5877_v7, %v5899_v47  ;;  %v5910_v2 = vsub.f32 %v5878_v13, %v5902_v56 }
 0xcd9   :  { %v11426_v18 = vpop.eup %10196  ;;  %10206 = vpow2.f32 %v5921_v21 }
 0xcda   :  { %v11428_v41 = vpop.eup %10198  ;;  %v5923_v32 = vmul.f32 1.442695, %v5909_v62  ;;  %v5925_v9 = vmul.f32 1.442695, %v5910_v2  ;;  %v5927_v16 = vsel %vm1868_vm9, %v11426_v18, 0.0  ;;  %v6704_v62 = vld [vmem:[%s12379_s7] sm:$0xff] }
 0xcdb   :  { %v5968_v19 = vpop.permute.xlu0 %5967  ;;  %v6045_v14 = vpop.permute.xlu1 %6044  ;;  %5928 = vadd.xlane.f32.xlu0 %v5927_v16  ;;  %v5930_v55 = vsel %vm1868_vm9, %v11428_v41, 0.0  ;;  %v6705_v2 = vld [vmem:[%s12379_s7 + $0x8] sm:$0xff]  ;;  %v6946_v16 = vld [vmem:[%s12380_s12] sm:$0xff] }
 0xcdc   :  { %10208 = vpow2.f32 %v5923_v32  ;;  %9630 = vmatpush3.msk.msra.mxu1 %vm1963_vm8, %v5968_v19  ;;  %5931 = vadd.xlane.f32.xlu1 %v5930_v55  ;;  %v6707_v32 = vld [vmem:[%s12379_s7 + $0x18] sm:$0xff]  ;;  %v6947_v19 = vld [vmem:[%s12380_s12 + $0x8] sm:$0xff] }
 0xcdd   :  { %10210 = vpow2.f32 %v5925_v9  ;;  %9635 = vmatpush3.msk.msra.mxu0 %vm1963_vm8, %v6045_v14  ;;  %9639 = vmatprep.subr.mxu1 %v12401_v4  ;;  %v11538_v55 = vpack.c.bf16 %v6947_v19, %v6946_v16 }
 0xcde   :  { %v11437_v7 = vpop.eup %10200  ;;  %9644 = vmatprep.subr.mxu0 %v12401_v4 }
 0xcdf   :  { %v11440_v13 = vpop.eup %10202  ;;  %v5933_v57 = vsel %vm1868_vm9, %v11437_v7, 0.0 }
 0xce0   :  { %5934 = vadd.xlane.f32.xlu0 %v5933_v57  ;;  %v5936_v39 = vsel %vm1868_vm9, %v11440_v13, 0.0 }
 0xce1   :  { %5937 = vadd.xlane.f32.xlu1 %v5936_v39 }
 0xce2   :  { %v11446_v60 = vpop.eup %10204 }
 0xce3   :  { %v11448_v0 = vpop.eup %10206  ;;  %v5939_v5 = vsel %vm1868_vm9, %v11446_v60, 0.0 }
 0xce4   :  { %5940 = vadd.xlane.f32.xlu0 %v5939_v5  ;;  %v5942_v10 = vsel %vm1868_vm9, %v11448_v0, 0.0 }
 0xce5   :  { %5943 = vadd.xlane.f32.xlu1 %v5942_v10 }
 0xce6   :  { %v11454_v48 = vpop.eup %10208 }
 0xce7   :  { %v11456_v61 = vpop.eup %10210  ;;  %v5945_v46 = vsel %vm1868_vm9, %v11454_v48, 0.0 }
 0xce8   :  { %5946 = vadd.xlane.f32.xlu0 %v5945_v46  ;;  %v5948_v17 = vsel %vm1868_vm9, %v11456_v61, 0.0  ;;  %v6820_v46 = vld [vmem:[%s12381_s9] sm:$0xff]  ;;  %vm7247_vm9 = vcmask 1046534  }
 0xce9   :  { %5949 = vadd.xlane.f32.xlu1 %v5948_v17  ;;  %v6821_v17 = vld [vmem:[%s12381_s9 + $0x8] sm:$0xff] }
 0xcfa   :  { %6429 = vrot.lane.b32.xlu1 %v10696_v52, %s10242_s0  ;;  %v6199_v52 = vpop.permute.xlu0 %6198 }
 0xcfe   :  { %6591 = vrot.lane.b32.xlu1 %v11191_v28, %s10243_s22  ;;  %6506 = vrot.lane.b32.xlu0 %v10710_v54, %s10242_s0  ;;  %v6122_v54 = vpop.permute.xlu1 %6121 }
 0xd02   :  { %6595 = vrot.lane.b32.xlu1 %v11193_v29, %s10243_s22  ;;  %6593 = vrot.lane.b32.xlu0 %v11189_v23, %s10243_s22  ;;  %v6353_v23 = vpop.permute.xlu0 %6352  ;;  %v6276_v28 = vpop.permute.xlu1 %6275 }
 0xd06   :  { %6623 = vrot.lane.b32.xlu1 %v11390_v63, %s10244_s26  ;;  %6597 = vrot.lane.b32.xlu0 %v11195_v30, %s10243_s22 }
 0xd0a   :  { %6627 = vrot.lane.b32.xlu1 %v11394_v43, %s10244_s26  ;;  %6625 = vrot.lane.b32.xlu0 %v11392_v12, %s10244_s26 }
 0xd0e   :  { %6599 = vrot.lane.b32.xlu1 %v11197_v36, %s10243_s22  ;;  %6629 = vrot.lane.b32.xlu0 %v11396_v58, %s10244_s26 }
 0xd12   :  { %6603 = vrot.lane.b32.xlu1 %v11201_v40, %s10243_s22  ;;  %6601 = vrot.lane.b32.xlu0 %v11199_v37, %s10243_s22 }
 0xd16   :  { %6631 = vrot.lane.b32.xlu1 %v11398_v15, %s10244_s26  ;;  %6605 = vrot.lane.b32.xlu0 %v11204_v49, %s10243_s22 }
 0xd1a   :  { %6635 = vrot.lane.b32.xlu1 %v11402_v8, %s10244_s26  ;;  %6633 = vrot.lane.b32.xlu0 %v11400_v3, %s10244_s26 }
 0xd1e   :  { %6637 = vrot.lane.b32.xlu0 %v11404_v38, %s10244_s26 }
 0xd68   :  { %v5929_v29 = vpop.xlane.xlu0 %5928 }
 0xd69   :  { %10212 = vrcp.f32 %v5929_v29  ;;  %v5932_v30 = vpop.xlane.xlu1 %5931 }
 0xd6a   :  { %10214 = vrcp.f32 %v5932_v30 }
 0xd6d   :  { %v5935_v36 = vpop.xlane.xlu0 %5934 }
 0xd6e   :  { %10216 = vrcp.f32 %v5935_v36  ;;  %v5938_v37 = vpop.xlane.xlu1 %5937 }
 0xd6f   :  { %10218 = vrcp.f32 %v5938_v37 }
 0xd71   :  { %v5941_v40 = vpop.xlane.xlu0 %5940 }
 0xd72   :  { %10220 = vrcp.f32 %v5941_v40  ;;  %v5944_v49 = vpop.xlane.xlu1 %5943 }
 0xd73   :  { %v10213_v63 = vpop.eup %10212  ;;  %10222 = vrcp.f32 %v5944_v49 }
 0xd74   :  { %v10215_v12 = vpop.eup %10214  ;;  %v5959_v43 = vmul.f32 %v10213_v63, %v11426_v18  ;;  %v9951_v18 = vpack.c.bf16 %v6705_v2, %v6704_v62 }
 0xd75   :  { %v5960_v58 = vmul.f32 %v10215_v12, %v11428_v41  ;;  %v5947_v15 = vpop.xlane.xlu0 %5946  ;;  %v6706_v41 = vld [vmem:[%s12379_s7 + $0x10] sm:$0xff] }
 0xd76   :  { %10224 = vrcp.f32 %v5947_v15  ;;  %v5950_v3 = vpop.xlane.xlu1 %5949  ;;  %9632 = vmatmul.mubr.msk.f32.vlgmr.msra.gmra.mrb[62].mxu1 %vm1959_vm10, %v5959_v43  ;;  %v9955_v9 = vpack.c.bf16 %v6707_v32, %v6706_v41  ;;  %v6948_v41 = vld [vmem:[%s12380_s12 + $0x10] sm:$0xff]  ;;  %v6949_v32 = vld [vmem:[%s12380_s12 + $0x18] sm:$0xff] }
 0xd77   :  { %10226 = vrcp.f32 %v5950_v3  ;;  %9637 = vmatmul.mubr.msk.f32.vlgmr.msra.gmra.mrb[70].mxu0 %vm1959_vm10, %v5960_v58  ;;  %9640 = vmatpush3.msk.msra.mxu1 %vm1963_vm8, %v6122_v54  ;;  %v9959_v54 = vpack.c.bf16 %v6821_v17, %v6820_v46 }
 0xd78   :  { %v10217_v8 = vpop.eup %10216  ;;  %9645 = vmatpush3.msk.msra.mxu0 %vm1963_vm8, %v6199_v52  ;;  %9641 = vmatprep.mubr.msk.f32.mxu1 %vm10229_vm0, %v12401_v4 }
 0xd79   :  { %v10219_v38 = vpop.eup %10218  ;;  %v5961_v45 = vmul.f32 %v10217_v8, %v11437_v7  ;;  %9646 = vmatprep.mubr.msk.f32.mxu0 %vm10229_vm0, %v12401_v4  ;;  %9649 = vmatprep.subr.mxu1 %v12401_v4  ;;  %v6507_v53 = vpop.permute.xlu0 %6506 }
 0xd7a   :  { %v5962_v25 = vmul.f32 %v10219_v38, %v11440_v13  ;;  %9654 = vmatprep.subr.mxu0 %v12401_v4  ;;  %v6430_v51 = vpop.permute.xlu1 %6429 }
 0xd7b   :  { %9642 = vmatmul.mubr.msk.f32.vlgmr.msra.gmra.mrb[64].mxu1 %vm1959_vm10, %v5961_v45 }
 0xd7c   :  { %v10221_v11 = vpop.eup %10220  ;;  %9647 = vmatmul.mubr.msk.f32.vlgmr.msra.gmra.mrb[72].mxu0 %vm1959_vm10, %v5962_v25  ;;  %9650 = vmatpush3.msk.msra.mxu1 %vm1963_vm8, %v6276_v28 }
 0xd7d   :  { %v10223_v50 = vpop.eup %10222  ;;  %v5963_v42 = vmul.f32 %v10221_v11, %v11446_v60  ;;  %9655 = vmatpush3.msk.msra.mxu0 %vm1963_vm8, %v6353_v23  ;;  %9651 = vmatprep.mubr.msk.f32.mxu1 %vm10229_vm0, %v12401_v4  ;;  %v6594_v37 = vpop.permute.xlu0 %6593 }
 0xd7e   :  { %v5964_v20 = vmul.f32 %v10223_v50, %v11448_v0  ;;  %9656 = vmatprep.mubr.msk.f32.mxu0 %vm10229_vm0, %v12401_v4  ;;  %9659 = vmatprep.subr.mxu1 %v12401_v4  ;;  %v6592_v36 = vpop.permute.xlu1 %6591 }
 0xd7f   :  { %9664 = vmatprep.subr.mxu0 %v12401_v4  ;;  %9652 = vmatmul.mubr.msk.f32.vlgmr.msra.gmra.mrb[66].mxu1 %vm1959_vm10, %v5963_v42  ;;  %v6679_v42 = vsel %vm1253_vm7, %v10964_v26, %v6592_v36  ;;  %v7040_v36 = vld [vmem:[%s12383_s14] sm:$0xff] }
 0xd80   :  { %v10225_v59 = vpop.eup %10224  ;;  %9657 = vmatmul.mubr.msk.f32.vlgmr.msra.gmra.mrb[74].mxu0 %vm1959_vm10, %v5964_v20  ;;  %9660 = vmatpush3.msk.msra.mxu1 %vm1963_vm8, %v6430_v51  ;;  %v6680_v20 = vsel %vm1253_vm7, %v10966_v27, %v6594_v37  ;;  %v7041_v37 = vld [vmem:[%s12383_s14 + $0x8] sm:$0xff] }
 0xd81   :  { %v10227_v21 = vpop.eup %10226  ;;  %v5965_v47 = vmul.f32 %v10225_v59, %v11454_v48  ;;  %9665 = vmatpush3.msk.msra.mxu0 %vm1963_vm8, %v6507_v53  ;;  %9661 = vmatprep.mubr.msk.f32.mxu1 %vm10229_vm0, %v12401_v4  ;;  %v6598_v49 = vpop.permute.xlu0 %6597  ;;  %vm7245_vm8 = vcmask 1045509  }
 0xd82   :  { %v5966_v56 = vmul.f32 %v10227_v21, %v11456_v61  ;;  %9666 = vmatprep.mubr.msk.f32.mxu0 %vm10229_vm0, %v12401_v4  ;;  %9952 = vmatprep.subr.bf16.mxu1 %v9951_v18  ;;  %v6596_v40 = vpop.permute.xlu1 %6595  ;;  %v6682_v26 = vsel %vm1253_vm7, %v10970_v24, %v6598_v49  ;;  %v8853_v49 = vld [vmem:[%s12384_s8] ss:$0 sm:$0xff] }
 0xd83   :  { %9662 = vmatmul.mubr.msk.f32.vlgmr.msra.gmra.mrb[68].mxu1 %vm1959_vm10, %v5965_v47  ;;  %9960 = vmatprep.subr.bf16.mxu0 %v9959_v54  ;;  %v6681_v2 = vsel %vm1253_vm7, %v10968_v6, %v6596_v40  ;;  %v9975_v40 = vpack.c.bf16 %v7041_v37, %v7040_v36  ;;  %v11748_v36 = vsub.s32 3, %v10532_v22 }
 0xd84   :  { %9667 = vmatmul.mubr.msk.f32.vlgmr.msra.gmra.mrb[76].mxu0 %vm1959_vm10, %v5966_v56  ;;  %9954 = vmatpush3.bf16.msra.mxu1 %v9951_v18  ;;  %vm7249_vm10 = vcmask 1047559  }
 0xd85   :  { %9956 = vmatprep.subr.bf16.mxu1 %v9955_v9  ;;  %9962 = vmatpush3.bf16.msra.mxu0 %v9959_v54  ;;  %v6626_v12 = vpop.permute.xlu0 %6625  ;;  %12435 = vst [vmem:[#allocation9_spill] sm:$0xff] %v11748_v36 }
 0xd86   :  { %v6624_v63 = vpop.permute.xlu1 %6623  ;;  %v6688_v53 = vsel %vm75_vm1, %v6680_v20, %v6626_v12  ;;  %v7042_v12 = vld [vmem:[%s12383_s14 + $0x10] sm:$0xff] }
 0xd87   :  { %v6687_v51 = vsel %vm75_vm1, %v6679_v42, %v6624_v63 }
 0xd88   :  { %9958 = vmatpush3.bf16.msra.mxu1 %v9955_v9 }
 0xd89   :  { %9968 = vmatprep.subr.bf16.mxu1 %v11538_v55  ;;  %v6630_v58 = vpop.permute.xlu0 %6629 }
 0xd8a   :  { %v6628_v43 = vpop.permute.xlu1 %6627  ;;  %v6690_v9 = vsel %vm75_vm1, %v6682_v26, %v6630_v58  ;;  %v7224_v26 = vld [vmem:[%s12386_s16 + $0x18] sm:$0xff] }
 0xd8b   :  { %v6689_v18 = vsel %vm75_vm1, %v6681_v2, %v6628_v43  ;;  %v7043_v43 = vld [vmem:[%s12383_s14 + $0x18] sm:$0xff]  ;;  %v7223_v2 = vld [vmem:[%s12386_s16 + $0x10] sm:$0xff] }
 0xd8d   :  { %v6602_v3 = vpop.permute.xlu0 %6601 }
 0xd8e   :  { %v6600_v15 = vpop.permute.xlu1 %6599 }
 0xd8f   :  { %v6683_v19 = vsel %vm1253_vm7, %v10974_v33, %v6600_v15 }
 0xd91   :  { %v6606_v38 = vpop.permute.xlu0 %6605 }
 0xd92   :  { %v6604_v8 = vpop.permute.xlu1 %6603 }
 0xd93   :  { %v6685_v33 = vsel %vm1253_vm7, %v10976_v34, %v6604_v8  ;;  %v6944_v34 = vld [vmem:[%s12382_s11] sm:$0xff]  ;;  %v9979_v8 = vpack.c.bf16 %v7043_v43, %v7042_v12 }
 0xd95   :  { %v6634_v25 = vpop.permute.xlu0 %6633 }
 0xd96   :  { %v6632_v45 = vpop.permute.xlu1 %6631 }
 0xd99   :  { %v6638_v50 = vpop.permute.xlu0 %6637 }
 0xd9a   :  { %v6636_v11 = vpop.permute.xlu1 %6635 }
 0xe49   :  { %v6040_v14 = vpop.f32.mrb[62].mxu1 }
 0xe4a   :  { %v6117_v7 = vpop.f32.mrb[70].mxu0  ;;  %v9633_v13 = vpop.f32.mrb[63].mxu1  ;;  %6655 = vrot.lane.b32.xlu1 %v6040_v14, %s10245_s24 }
 0xe4b   :  { %6657 = vrot.lane.b32.xlu0 %v6117_v7, %s10245_s24  ;;  %v9638_v57 = vpop.f32.mrb[71].mxu0  ;;  %v9971_v7 = vpack.c.bf16 %v6949_v32, %v6948_v41  ;;  %v6684_v13 = vsel %vm1253_vm7, %v10972_v31, %v6602_v3  ;;  %v6686_v31 = vsel %vm1253_vm7, %v10978_v35, %v6606_v38  ;;  %v6945_v35 = vld [vmem:[%s12382_s11 + $0x8] sm:$0xff]  ;;  %vm7141_vm7 = vcmp.eq.s32.totalorder %v10532_v22, 1 }
 0xe4c   :  { %v6691_v57 = vsel %vm75_vm1, %v6683_v19, %v6632_v45  ;;  %v6694_v17 = vsel %vm75_vm1, %v6686_v31, %v6638_v50  ;;  %v7226_v41 = vld [vmem:[%s12386_s16 + $0x28] sm:$0xff]  ;;  %v11708_v31 = vld [vmem:[%s12386_s16 + $0xa0] sm:$0xff] }
 0xe4d   :  { %12428 = vst [vmem:[#allocation2_spill] sm:$0xff] %v11708_v31 }
 0xe4e   :  { %v6194_v39 = vpop.f32.mrb[64].mxu1 }
 0xe4f   :  { %v6271_v60 = vpop.f32.mrb[72].mxu0  ;;  %6659 = vrot.lane.b32.xlu1 %v6194_v39, %s10245_s24  ;;  %v9643_v0 = vpop.f32.mrb[65].mxu1 }
 0xe50   :  { %6661 = vrot.lane.b32.xlu0 %v6271_v60, %s10245_s24  ;;  %v9648_v5 = vpop.f32.mrb[73].mxu0  ;;  %v6692_v60 = vsel %vm75_vm1, %v6684_v13, %v6634_v25  ;;  %v11678_v13 = vld [vmem:[%s12386_s16 + $0x70] sm:$0xff] }
 0xe52   :  { %v6348_v10 = vpop.f32.mrb[66].mxu1 }
 0xe53   :  { %v6425_v48 = vpop.f32.mrb[74].mxu0  ;;  %6663 = vrot.lane.b32.xlu1 %v6348_v10, %s10245_s24  ;;  %v9653_v61 = vpop.f32.mrb[67].mxu1 }
 0xe54   :  { %6665 = vrot.lane.b32.xlu0 %v6425_v48, %s10245_s24  ;;  %v9658_v52 = vpop.f32.mrb[75].mxu0  ;;  %v6693_v61 = vsel %vm75_vm1, %v6685_v33, %v6636_v11  ;;  %v8863_v11 = vld [vmem:[%s12385_s13] ss:$0 sm:$0xff]  ;;  %v11698_v33 = vld [vmem:[%s12386_s16 + $0x50] sm:$0xff]  ;;  %vm7243_vm1 = vcmask 1044484  }
 0xe56   :  { %v6502_v23 = vpop.f32.mrb[68].mxu1 }
 0xe57   :  { %v6579_v28 = vpop.f32.mrb[76].mxu0  ;;  %6667 = vrot.lane.b32.xlu1 %v6502_v23, %s10245_s24  ;;  %v9663_v29 = vpop.f32.mrb[69].mxu1 }
 0xe58   :  { %6669 = vrot.lane.b32.xlu0 %v6579_v28, %s10245_s24  ;;  %v9668_v30 = vpop.f32.mrb[77].mxu0  ;;  %v6822_v28 = vld [vmem:[%s12381_s9 + $0x10] sm:$0xff]  ;;  %v6823_v29 = vld [vmem:[%s12381_s9 + $0x18] sm:$0xff] }
 0xe59   :  { %v9963_v30 = vpack.c.bf16 %v6823_v29, %v6822_v28 }
 0xe5b   :  { %9964 = vmatprep.subr.bf16.mxu0 %v9963_v30 }
 0xe5c   :  { %9966 = vmatpush3.bf16.msra.mxu0 %v9963_v30 }
 0xe5d   :  { %9976 = vmatprep.subr.bf16.mxu0 %v9975_v40 }
 0xebc   :  { %v6656_v59 = vpop.permute.xlu1 %6655 }
 0xebd   :  { %v6696_v21 = vsel %vm6695_vm11, %v6687_v51, %v6656_v59  ;;  %v6658_v47 = vpop.permute.xlu0 %6657 }
 0xebe   :  { %v6697_v56 = vsel %vm6695_vm11, %v6688_v53, %v6658_v47  ;;  %v7221_v47 = vld [vmem:[%s12386_s16] sm:$0xff] }
 0xebf   :  { %v6723_v62 = vcombine.low %v6696_v21, %v6697_v56  ;;  %v7222_v56 = vld [vmem:[%s12386_s16 + $0x8] sm:$0xff] }
 0xec1   :  { %v6660_v27 = vpop.permute.xlu1 %6659  ;;  %9677 = vmatprep.mubr.msk.f32.mxu1 %vm1149_vm6, %v6723_v62  ;;  %v9990_v62 = vpack.c.bf16 %v7222_v56, %v7221_v47  ;;  %v11789_v47 = vld [vmem:[%s12386_s16 + $0x80] sm:$0xff]  ;;  %v11794_v56 = vld [vmem:[%s12386_s16 + $0x88] sm:$0xff] }
 0xec2   :  { %v6698_v6 = vsel %vm6695_vm11, %v6689_v18, %v6660_v27  ;;  %v6662_v16 = vpop.permute.xlu0 %6661  ;;  %v9993_v18 = vpack.c.bf16 %v7224_v26, %v7223_v2  ;;  %v7225_v27 = vld [vmem:[%s12386_s16 + $0x20] sm:$0xff]  ;;  %12437 = vst [vmem:[#allocation11_spill] sm:$0xff] %v11789_v47  ;;  %12438 = vst [vmem:[#allocation12_spill] sm:$0xff] %v11794_v56 }
 0xec3   :  { %v6699_v24 = vsel %vm6695_vm11, %v6690_v9, %v6662_v16  ;;  %v9984_v32 = vpack.c.bf16 %v7226_v41, %v7225_v27  ;;  %v7227_v9 = vld [vmem:[%s12386_s16 + $0x30] sm:$0xff] }
 0xec4   :  { %v6724_v14 = vcombine.low %v6698_v6, %v6699_v24  ;;  %v7228_v6 = vld [vmem:[%s12386_s16 + $0x38] sm:$0xff]  ;;  %v8858_v24 = vld [vmem:[%s12387_s10] ss:$0 sm:$0xff] }
 0xec5   :  { %v6664_v39 = vpop.permute.xlu1 %6663  ;;  %v9987_v16 = vpack.c.bf16 %v7228_v6, %v7227_v9 }
 0xec6   :  { %v6700_v0 = vsel %vm6695_vm11, %v6691_v57, %v6664_v39  ;;  %9678 = vmatmul.mubr.msk.f32.vlgmr.msra.gmra.mrb[70].mxu1 %vm1149_vm6, %v6724_v14  ;;  %v6666_v5 = vpop.permute.xlu0 %6665  ;;  %v11668_v14 = vld [vmem:[%s12386_s16 + $0x60] sm:$0xff] }
 0xec7   :  { %v6701_v10 = vsel %vm6695_vm11, %v6692_v60, %v6666_v5  ;;  %9970 = vmatpush3.bf16.msra.mxu1 %v11538_v55  ;;  %v11683_v60 = vld [vmem:[%s12386_s16 + $0x78] sm:$0xff]  ;;  %v11693_v5 = vld [vmem:[%s12386_s16 + $0x48] sm:$0xff] }
 0xec8   :  { %v6725_v48 = vcombine.low %v6700_v0, %v6701_v10  ;;  %9972 = vmatprep.subr.bf16.mxu1 %v9971_v7  ;;  %v11688_v0 = vld [vmem:[%s12386_s16 + $0x40] sm:$0xff] }
 0xec9   :  { %v6668_v46 = vpop.permute.xlu1 %6667 }
 0xeca   :  { %v6702_v52 = vsel %vm6695_vm11, %v6693_v61, %v6668_v46  ;;  %9680 = vmatprep.mubr.msk.f32.mxu1 %vm1149_vm6, %v6725_v48  ;;  %v6670_v54 = vpop.permute.xlu0 %6669  ;;  %v11703_v48 = vld [vmem:[%s12386_s16 + $0x58] sm:$0xff]  ;;  %v11713_v46 = vsub.s32 1, %v10532_v22 }
 0xecb   :  { %v6703_v55 = vsel %vm6695_vm11, %v6694_v17, %v6670_v54  ;;  %9974 = vmatpush3.bf16.msra.mxu1 %v9971_v7  ;;  %v11673_v7 = vld [vmem:[%s12386_s16 + $0x68] sm:$0xff]  ;;  %v11728_v54 = vld [vmem:[%s12386_s16 + $0xb8] sm:$0xff]  ;;  %vm8662_vm11 = vcmask 97280  }
 0xecc   :  { %v6726_v23 = vcombine.low %v6702_v52, %v6703_v55  ;;  %9983 = vmatprep.subr.bf16.mxu1 %v12399_v1  ;;  %v11718_v17 = vld [vmem:[%s12386_s16 + $0xa8] sm:$0xff]  ;;  %v11723_v52 = vld [vmem:[%s12386_s16 + $0xb0] sm:$0xff]  ;;  %12432 = vst [vmem:[#allocation6_spill] sm:$0xff] %v11728_v54  ;;  %v11731_v55 = vsub.s32 2, %v10532_v22 }
 0xecd   :  { %12430 = vst [vmem:[#allocation4_spill] sm:$0xff] %v11718_v17  ;;  %12431 = vst [vmem:[#allocation5_spill] sm:$0xff] %v11723_v52 }
 0xece   :  { %9681 = vmatmul.mubr.msk.f32.gmra.mrb[72].mxu1 %vm1149_vm6, %v6726_v23 }
 0xecf   :  { %9705 = vmatprep.mubr.msk.f32.mxu1 %vm1149_vm6, %v6944_v34 }
 0xed2   :  { %9706 = vmatmul.mubr.msk.f32.vlgmr.msra.gmra.mrb[74].mxu1 %vm1149_vm6, %v6945_v35 }
 0xed3   :  { %9727 = vmatprep.mubr.msk.f32.mxu1 %vm10229_vm0, %v12401_v4  ;;  %9985 = vmatpush3.bf16.msra.mxu1 %v9984_v32  ;;  %v8866_v32 = vld [vmem:[%s12388_s15] ss:$0 sm:$0xff] }
 0xed4   :  { %9986 = vmatprep.subr.bf16.mxu1 %v12399_v1 }
 0xed7   :  { %9988 = vmatpush3.bf16.msra.mxu1 %v9987_v16 }
 0xed8   :  { %9995 = vmatprep.subr.bf16.mxu1 %v12399_v1 }
 0xf99   :  { %v9679_v63 = vpop.f32.mrb[70].mxu1 }
 0xf9a   :  { %v6801_v58 = vpop.f32.mrb[71].mxu1  ;;  %v6807_v3 = vadd.f32 %v9679_v63, %v8853_v49 }
 0xf9b   :  { %v6802_v15 = vadd.f32 %v8853_v49, %v6801_v58 }
 0xf9d   :  { %9691 = vmatprep.mubr.msk.f32.mxu0 %vm1149_vm6, %v6802_v15 }
 0xf9e   :  { %9692 = vmatmul.mubr.msk.f32.vlgmr.msra.gmra.mrb[78].mxu0 %vm1149_vm6, %v6807_v3 }
 0xf9f   :  { %9978 = vmatpush3.bf16.msra.mxu0 %v9975_v40 }
 0xfa0   :  { %9980 = vmatprep.subr.bf16.mxu0 %v9979_v8 }
 0xfa1   :  { %v9682_v38 = vpop.f32.mrb[72].mxu1 }
 0xfa2   :  { %v6811_v45 = vpop.f32.mrb[73].mxu1  ;;  %v6817_v50 = vadd.f32 %v9682_v38, %v8853_v49 }
 0xfa3   :  { %v6812_v25 = vadd.f32 %v8853_v49, %v6811_v45  ;;  %9982 = vmatpush3.bf16.msra.mxu0 %v9979_v8 }
 0xfa4   :  { %9989 = vmatprep.subr.bf16.mxu0 %v12399_v1 }
 0xfa5   :  { %9694 = vmatprep.mubr.msk.f32.mxu0 %vm1149_vm6, %v6812_v25  ;;  %v9707_v42 = vpop.f32.mrb[74].mxu1 }
 0xfa6   :  { %v7035_v20 = vadd.f32 %v9707_v42, %v8863_v11  ;;  %9695 = vmatmul.mubr.msk.f32.gmra.mrb[80].mxu0 %vm1149_vm6, %v6817_v50  ;;  %v7029_v51 = vpop.f32.mrb[75].mxu1 }
 0xfa7   :  { %v7030_v59 = vadd.f32 %v8863_v11, %v7029_v51 }
 0xfa8   :  { %v7039_v21 = vmax.f32 %v7035_v20, 0.0 }
 0xfa9   :  { %v7038_v53 = vmax.f32 %v7030_v59, 0.0 }
 0xfab   :  { %9716 = vmatprep.mubr.msk.f32.mxu0 %vm1149_vm6, %v7038_v53 }
 0xfac   :  { %9717 = vmatmul.mubr.msk.f32.vlgmr.msra.gmra.mrb[82].mxu0 %vm1149_vm6, %v7039_v21 }
 0xfad   :  { %9738 = vmatprep.mubr.msk.f32.mxu0 %vm10229_vm0, %v12401_v4  ;;  %9991 = vmatpush3.bf16.msra.mxu0 %v9990_v62 }
 0xfae   :  { %9992 = vmatprep.subr.bf16.mxu0 %v12399_v1 }
 0xfb1   :  { %9994 = vmatpush3.bf16.msra.mxu0 %v9993_v18 }
 0xfb2   :  { %10007 = vmatprep.subr.bf16.mxu0 %v12399_v1 }
0x1071   :  { %v9693_v19 = vpop.f32.mrb[78].mxu0 }
0x1072   :  { %v6915_v57 = vadd.f32 %v9693_v19, %v8858_v24  ;;  %v6909_v39 = vpop.f32.mrb[79].mxu0 }
0x1073   :  { %v6910_v10 = vadd.f32 %v8858_v24, %v6909_v39 }
0x1074   :  { %v11710_v61 = vmax.f32 %v6915_v57, 0.0 }
0x1075   :  { %v11733_v23 = vmax.f32 %v6910_v10, 0.0 }
0x1076   :  { %12429 = vst [vmem:[#allocation3_spill] sm:$0xff] %v11710_v61  ;;  %v11741_v28 = vcombine.high %v11710_v61, %v11710_v61  ;;  %v7334_v40 = vrot.slane %v11710_v61, %v10550_v44  ;;  %v7702_v58 = vrot.slane %v11710_v61, %v11713_v46  ;;  %v8073_v15 = vrot.slane %v11710_v61, %v11731_v55 }
0x1077   :  { %12433 = vst [vmem:[#allocation7_spill] sm:$0xff] %v11733_v23  ;;  %v11752_v37 = vcombine.high %v11733_v23, %v11733_v23  ;;  %v7326_v12 = vrot.slane %v11733_v23, %v10550_v44  ;;  %v7694_v43 = vrot.slane %v11733_v23, %v11713_v46  ;;  %v8065_v45 = vrot.slane %v11733_v23, %v11731_v55 }
0x1078   :  { %12434 = vst [vmem:[#allocation8_spill] sm:$0xff] %v11741_v28  ;;  %v7338_v42 = vrot.slane %v11741_v28, %v10550_v44  ;;  %v7706_v20 = vrot.slane %v11741_v28, %v11713_v46  ;;  %v8077_v51 = vrot.slane %v11741_v28, %v11731_v55 }
0x1079   :  { %12436 = vst [vmem:[#allocation10_spill] sm:$0xff] %v11752_v37  ;;  %v9696_v3 = vpop.f32.mrb[80].mxu0  ;;  %v7330_v8 = vrot.slane %v11752_v37, %v10550_v44  ;;  %v7698_v38 = vrot.slane %v11752_v37, %v11713_v46  ;;  %v8069_v25 = vrot.slane %v11752_v37, %v11731_v55 }
0x107a   :  { %v6925_v11 = vadd.f32 %v9696_v3, %v8858_v24  ;;  %v6919_v50 = vpop.f32.mrb[81].mxu0 }
0x107b   :  { %v6920_v59 = vadd.f32 %v8858_v24, %v6919_v50  ;;  %v7355_v53 = vsel %vm7237_vm12, %v7330_v8, %v7326_v12  ;;  %v7723_v21 = vsel %vm7237_vm12, %v7698_v38, %v7694_v43  ;;  %v8094_v62 = vsel %vm7237_vm12, %v8069_v25, %v8065_v45 }
0x107c   :  { %v11797_v2 = vmax.f32 %v6925_v11, 0.0  ;;  %v7356_v26 = vsel %vm7239_vm13, %v7334_v40, %v7355_v53  ;;  %v7724_v18 = vsel %vm7239_vm13, %v7702_v58, %v7723_v21  ;;  %v8095_v27 = vsel %vm7239_vm13, %v8073_v15, %v8094_v62 }
0x107d   :  { %v11802_v41 = vmax.f32 %v6920_v59, 0.0  ;;  %v7357_v9 = vsel %vm7241_vm14, %v7338_v42, %v7356_v26  ;;  %v7725_v6 = vsel %vm7241_vm14, %v7706_v20, %v7724_v18  ;;  %v11810_v16 = vsel %vm7241_vm14, %v8077_v51, %v8095_v27 }
0x107e   :  { %v11814_v24 = vcombine.high %v11797_v2, %v11797_v2 }
0x107f   :  { %v11824_v10 = vcombine.high %v11802_v41, %v11802_v41  ;;  %v9718_v40 = vpop.f32.mrb[82].mxu0  ;;  %v7342_v12 = vrot.slane %v11802_v41, %v10550_v44  ;;  %v7710_v38 = vrot.slane %v11802_v41, %v11713_v46 }
0x1080   :  { %v7129_v15 = vadd.f32 %v9718_v40, %v8866_v32  ;;  %v7123_v3 = vpop.f32.mrb[83].mxu0 }
0x1081   :  { %v11838_v25 = vadd.f32 %v8866_v32, %v7123_v3  ;;  %v11854_v53 = vsel %vm7243_vm1, %v7342_v12, %v7357_v9  ;;  %v11873_v40 = vsel %vm7243_vm1, %v7710_v38, %v7725_v6  ;;  %v12441_v17 = vrot.slane %v11824_v10, %v10550_v44 }
0x1082   :  { %v7135_v20 = vcombine.high %v7129_v15, %v7129_v15  ;;  %v11848_v51 = vsel %vm7142_vm15, 0.0, %v7129_v15 }
0x1083   :  { %v7902_v21 = vmul.f32 %v11848_v51, %v11733_v23  ;;  %v7903_v62 = vmul.f32 %v11848_v51, %v11752_v37  ;;  %v7904_v26 = vmul.f32 %v11848_v51, %v11710_v61  ;;  %v7905_v18 = vmul.f32 %v11848_v51, %v11741_v28 }
0x1084   :  { %v11866_v27 = vsel %vm7143_vm3, 0.0, %v7135_v20  ;;  %v7906_v32 = vmul.f32 %v11848_v51, %v11802_v41 }
0x1085   :  { %v7910_v12 = vsel %vm7164_vm4, %v7902_v21, 0.0  ;;  %v7917_v15 = vsel %vm7164_vm4, %v7903_v62, 0.0  ;;  %v7924_v3 = vsel %vm7164_vm4, %v7904_v26, 0.0  ;;  %v7931_v58 = vsel %vm7164_vm4, %v7905_v18, 0.0 }
0x1086   :  { %v7911_v43 = vrot.slane %v7910_v12, 4  ;;  %v7918_v20 = vrot.slane %v7917_v15, 4  ;;  %v7925_v19 = vrot.slane %v7924_v3, 4  ;;  %v7932_v39 = vrot.slane %v7931_v58, 4 }
0x1087   :  { %v11881_v57 = vsel %vm7164_vm4, %v7906_v32, 0.0  ;;  %v8273_v6 = vmul.f32 %v11866_v27, %v11733_v23  ;;  %v8274_v38 = vmul.f32 %v11866_v27, %v11752_v37  ;;  %v8275_v21 = vmul.f32 %v11866_v27, %v11710_v61 }
0x1088   :  { %v11891_v62 = vmul.f32 %v11848_v51, %v11824_v10  ;;  %v7912_v26 = vadd.f32 %v7911_v43, %v7910_v12  ;;  %v7919_v18 = vadd.f32 %v7918_v20, %v7917_v15  ;;  %v11897_v32 = vmul.f32 %v11848_v51, %v11797_v2 }
0x1089   :  { %v11899_v49 = vadd.f32 %v7925_v19, %v7924_v3  ;;  %v11901_v30 = vadd.f32 %v7932_v39, %v7931_v58  ;;  %v8276_v42 = vmul.f32 %v11866_v27, %v11741_v28  ;;  %v8281_v43 = vsel %vm7164_vm4, %v8273_v6, 0.0 }
0x108a   :  { %v7913_v50 = vrot.slane %v7912_v26, 2  ;;  %v7920_v29 = vrot.slane %v7919_v18, 2  ;;  %v8282_v12 = vrot.slane %v8281_v43, 4  ;;  %v8288_v15 = vsel %vm7164_vm4, %v8274_v38, 0.0 }
0x108b   :  { %v8295_v20 = vsel %vm7164_vm4, %v8275_v21, 0.0  ;;  %v11910_v63 = vsel %vm7164_vm4, %v8276_v42, 0.0  ;;  %v8289_v58 = vrot.slane %v8288_v15, 4  ;;  %v11918_v9 = vmul.f32 %v11866_v27, %v11802_v41 }
0x108c   :  { %12439 = vst [vmem:[#allocation13_spill] sm:$0xff] %v11910_v63  ;;  %v11912_v19 = vadd.f32 %v7913_v50, %v7912_v26  ;;  %v11914_v39 = vadd.f32 %v7920_v29, %v7919_v18  ;;  %v8296_v3 = vrot.slane %v8295_v20, 4  ;;  %v11920_v45 = vadd.f32 %v8282_v12, %v8281_v43 }
0x108d   :  { %12440 = vst [vmem:[#allocation14_spill] sm:$0xff] %v11918_v9  ;;  %v7134_v6 = vcombine.high %v11838_v25, %v11838_v25  ;;  %v11927_v42 = vsel %vm7140_vm5, 0.0, %v11838_v25  ;;  %v11931_v38 = vadd.f32 %v8289_v58, %v8288_v15 }
0x108e   :  { %v11935_v18 = vadd.f32 %v8296_v3, %v8295_v20  ;;  %v7156_v43 = vmul.f32 %v11927_v42, %v11733_v23  ;;  %v7157_v12 = vmul.f32 %v11927_v42, %v11752_v37  ;;  %v7158_v29 = vmul.f32 %v11927_v42, %v11710_v61 }
0x108f   :  { %v7159_v15 = vmul.f32 %v11927_v42, %v11741_v28  ;;  %v7160_v58 = vmul.f32 %v11927_v42, %v11802_v41  ;;  %v11951_v3 = vsel %vm7141_vm7, 0.0, %v7134_v6  ;;  %v7161_v21 = vmul.f32 %v11927_v42, %v11824_v10 }
0x1090   :  { %v7165_v26 = vsel %vm7164_vm4, %v7156_v43, 0.0  ;;  %v7162_v50 = vmul.f32 %v11927_v42, %v11797_v2  ;;  %v7172_v35 = vsel %vm7164_vm4, %v7157_v12, 0.0  ;;  %v7179_v1 = vsel %vm7164_vm4, %v7158_v29, 0.0 }
0x1091   :  { %v7166_v25 = vrot.slane %v7165_v26, 4  ;;  %v7173_v4 = vrot.slane %v7172_v35, 4  ;;  %v7180_v20 = vrot.slane %v7179_v1, 4  ;;  %v7186_v22 = vsel %vm7164_vm4, %v7159_v15, 0.0 }
0x1092   :  { %v7193_v6 = vsel %vm7164_vm4, %v7160_v58, 0.0  ;;  %v7187_v11 = vrot.slane %v7186_v22, 4  ;;  %v7531_v43 = vmul.f32 %v11951_v3, %v11733_v23  ;;  %v7532_v56 = vmul.f32 %v11951_v3, %v11752_v37 }
0x1093   :  { %v7167_v34 = vadd.f32 %v7166_v25, %v7165_v26  ;;  %v7194_v8 = vrot.slane %v7193_v6, 4  ;;  %v7174_v59 = vadd.f32 %v7173_v4, %v7172_v35  ;;  %v7181_v47 = vadd.f32 %v7180_v20, %v7179_v1 }
0x1094   :  { %v7533_v29 = vmul.f32 %v11951_v3, %v11710_v61  ;;  %v7188_v36 = vadd.f32 %v7187_v11, %v7186_v22  ;;  %v7534_v15 = vmul.f32 %v11951_v3, %v11741_v28  ;;  %v11972_v26 = vmul.f32 %v11951_v3, %v11802_v41 }
0x1095   :  { %v7168_v12 = vrot.slane %v7167_v34, 2  ;;  %v7175_v25 = vrot.slane %v7174_v59, 2  ;;  %v7182_v58 = vrot.slane %v7181_v47, 2  ;;  %v11976_v1 = vmul.f32 %v11951_v3, %v11824_v10 }
0x1096   :  { %v7539_v4 = vsel %vm7164_vm4, %v7531_v43, 0.0  ;;  %v7546_v61 = vsel %vm7164_vm4, %v7532_v56, 0.0  ;;  %v7553_v11 = vsel %vm7164_vm4, %v7533_v29, 0.0  ;;  %v7560_v23 = vsel %vm7164_vm4, %v7534_v15, 0.0 }
0x1097   :  { %v7169_v35 = vadd.f32 %v7168_v12, %v7167_v34  ;;  %v7540_v20 = vrot.slane %v7539_v4, 4  ;;  %v7176_v22 = vadd.f32 %v7175_v25, %v7174_v59  ;;  %v7547_v28 = vrot.slane %v7546_v61, 4 }
0x1098   :  { %v7554_v37 = vrot.slane %v7553_v11, 4  ;;  %v7561_v31 = vrot.slane %v7560_v23, 4  ;;  %v7359_v43 = vsel %vm7245_vm8, %v12441_v17, %v11854_v53  ;;  %v12442_v56 = vrot.slane %v11797_v2, %v10550_v44 }
0x1099   :  { %v7170_v52 = vrot.slane %v7169_v35, 1  ;;  %v7541_v54 = vadd.f32 %v7540_v20, %v7539_v4  ;;  %v7177_v34 = vrot.slane %v7176_v22, 1  ;;  %v7548_v12 = vadd.f32 %v7547_v28, %v7546_v61 }
0x109a   :  { %v7555_v9 = vadd.f32 %v7554_v37, %v7553_v11  ;;  %v7360_v59 = vsel %vm7247_vm9, %v12442_v56, %v7359_v43  ;;  %v12443_v15 = vrot.slane %v11814_v24, %v10550_v44  ;;  %v7163_v4 = vmul.f32 %v11927_v42, %v11814_v24 }
0x109b   :  { %v7542_v29 = vrot.slane %v7541_v54, 2  ;;  %v7171_v20 = vadd.f32 %v7170_v52, %v7169_v35  ;;  %v7549_v63 = vrot.slane %v7548_v12, 2  ;;  %v7178_v61 = vadd.f32 %v7177_v34, %v7176_v22 }
0x109c   :  { %v7361_v25 = vsel %vm7249_vm10, %v12443_v15, %v7360_v59  ;;  %v7183_v17 = vadd.f32 %v7182_v58, %v7181_v47  ;;  %v7189_v28 = vrot.slane %v7188_v36, 2  ;;  %v12444_v53 = vpack.c.bf16 %v11673_v7, %v11668_v14 }
0x109d   :  { %9739 = vmatmul.mubr.msk.f32.vlgmr.msra.gmra.mrb[84].mxu0 %vm1149_vm6, %v7361_v25  ;;  %v7543_v37 = vadd.f32 %v7542_v29, %v7541_v54  ;;  %v7195_v11 = vadd.f32 %v7194_v8, %v7193_v6  ;;  %v7200_v44 = vsel %vm7164_vm4, %v7161_v21, 0.0  ;;  %v7207_v43 = vsel %vm7164_vm4, %v7162_v50, 0.0 }
0x109e   :  { %10009 = vmatpush3.bf16.msra.mxu0 %v12444_v53  ;;  %v12445_v56 = vmov 0.0   ;;  %v7550_v52 = vadd.f32 %v7549_v63, %v7548_v12  ;;  %v12446_v42 = vmov 0.0|0.0   ;;  %v7184_v35 = vrot.slane %v7183_v17, 1 }
0x109f   :  { %9768 = vmatprep.mubr.msk.f32.mxu0 %vm10229_vm0, %v12445_v56  ;;  %10010 = vmatprep.subr.bf16.mxu0 %v12446_v42  ;;  %v7190_v22 = vadd.f32 %v7189_v28, %v7188_v36  ;;  %v7201_v47 = vrot.slane %v7200_v44, 4  ;;  %v7196_v58 = vrot.slane %v7195_v11, 2  ;;  %v7208_v54 = vrot.slane %v7207_v43, 4 }
0x10a0   :  { %v7214_v34 = vsel %vm7164_vm4, %v7163_v4, 0.0  ;;  %v7238_v14 = vsel %vm7237_vm12, %v7178_v61, %v7171_v20  ;;  %v7185_v7 = vadd.f32 %v7184_v35, %v7183_v17  ;;  %v12447_v50 = vpack.c.bf16 %v11683_v60, %v11678_v13 }
0x10a1   :  { %v7191_v8 = vrot.slane %v7190_v22, 1  ;;  %v7202_v21 = vadd.f32 %v7201_v47, %v7200_v44  ;;  %v7215_v6 = vrot.slane %v7214_v34, 4  ;;  %v7197_v63 = vadd.f32 %v7196_v58, %v7195_v11 }
0x10a2   :  { %10012 = vmatpush3.bf16.msra.mxu0 %v12447_v50  ;;  %v7209_v12 = vadd.f32 %v7208_v54, %v7207_v43  ;;  %v7537_v36 = vmul.f32 %v11951_v3, %v11797_v2  ;;  %v7538_v59 = vmul.f32 %v11951_v3, %v11814_v24  ;;  %v7240_v4 = vsel %vm7239_vm13, %v7185_v7, %v7238_v14 }
0x10a3   :  { %v7192_v29 = vadd.f32 %v7191_v8, %v7190_v22  ;;  %v7203_v15 = vrot.slane %v7202_v21, 2  ;;  %v7216_v25 = vadd.f32 %v7215_v6, %v7214_v34  ;;  %10013 = vmatprep.subr.bf16.mxu0 %v12446_v42  ;;  %v7198_v20 = vrot.slane %v7197_v63, 1 }
0x10a4   :  { %v7210_v61 = vrot.slane %v7209_v12, 2  ;;  %v7544_v17 = vrot.slane %v7543_v37, 1  ;;  %v7551_v13 = vrot.slane %v7550_v52, 1  ;;  %v7556_v11 = vrot.slane %v7555_v9, 2 }
0x10a5   :  { %v7204_v60 = vadd.f32 %v7203_v15, %v7202_v21  ;;  %v7217_v28 = vrot.slane %v7216_v25, 2  ;;  %v7242_v53 = vsel %vm7241_vm14, %v7192_v29, %v7240_v4  ;;  %v7199_v44 = vadd.f32 %v7198_v20, %v7197_v63 }
0x10a6   :  { %v7211_v43 = vadd.f32 %v7210_v61, %v7209_v12  ;;  %v7545_v35 = vadd.f32 %v7544_v17, %v7543_v37  ;;  %v7552_v3 = vadd.f32 %v7551_v13, %v7550_v52  ;;  %v7557_v58 = vadd.f32 %v7556_v11, %v7555_v9 }
0x10a7   :  { %v7205_v22 = vrot.slane %v7204_v60, 1  ;;  %v7218_v47 = vadd.f32 %v7217_v28, %v7216_v25  ;;  %v7562_v54 = vadd.f32 %v7561_v31, %v7560_v23  ;;  %v7244_v14 = vsel %vm7243_vm1, %v7199_v44, %v7242_v53 }
0x10a8   :  { %v7212_v34 = vrot.slane %v7211_v43, 1  ;;  %v7567_v7 = vsel %vm7164_vm4, %v11972_v26, 0.0  ;;  %v7574_v8 = vsel %vm7164_vm4, %v11976_v1, 0.0  ;;  %v7558_v50 = vrot.slane %v7557_v58, 1 }
0x10a9   :  { %v7206_v21 = vadd.f32 %v7205_v22, %v7204_v60  ;;  %v7219_v6 = vrot.slane %v7218_v47, 1  ;;  %v7563_v63 = vrot.slane %v7562_v54, 2  ;;  %v7568_v37 = vrot.slane %v7567_v7, 4 }
0x10aa   :  { %v7213_v12 = vadd.f32 %v7212_v34, %v7211_v43  ;;  %v7575_v52 = vrot.slane %v7574_v8, 4  ;;  %v7581_v29 = vsel %vm7164_vm4, %v7537_v36, 0.0  ;;  %v7559_v23 = vadd.f32 %v7558_v50, %v7557_v58 }
0x10ab   :  { %v7220_v9 = vadd.f32 %v7219_v6, %v7218_v47  ;;  %v7246_v31 = vsel %vm7245_vm8, %v7206_v21, %v7244_v14  ;;  %v7564_v15 = vadd.f32 %v7563_v63, %v7562_v54  ;;  %v7569_v26 = vadd.f32 %v7568_v37, %v7567_v7 }
0x10ac   :  { %v7248_v25 = vsel %vm7247_vm9, %v7213_v12, %v7246_v31  ;;  %v7576_v4 = vadd.f32 %v7575_v52, %v7574_v8  ;;  %v7582_v20 = vrot.slane %v7581_v29, 4  ;;  %v7588_v17 = vsel %vm7164_vm4, %v7538_v59, 0.0 }
0x10ad   :  { %v7250_v1 = vsel %vm7249_vm10, %v7220_v9, %v7248_v25  ;;  %v7565_v61 = vrot.slane %v7564_v15, 1  ;;  %v7612_v13 = vsel %vm7237_vm12, %v7552_v3, %v7545_v35  ;;  %v7570_v36 = vrot.slane %v7569_v26, 2 }
0x10ae   :  { %9728 = vmatmul.mubr.msk.f32.vlgmr.msra.gmra.mrb[76].mxu1 %vm1149_vm6, %v7250_v1  ;;  %v7577_v60 = vrot.slane %v7576_v4, 2  ;;  %v7583_v28 = vadd.f32 %v7582_v20, %v7581_v29  ;;  %v7589_v53 = vrot.slane %v7588_v17, 4  ;;  %v12448_v11 = vrot.slane %v11920_v45, 2 }
0x10af   :  { %v7566_v43 = vadd.f32 %v7565_v61, %v7564_v15  ;;  %v7613_v22 = vsel %vm7239_vm13, %v7559_v23, %v7612_v13  ;;  %v12449_v59 = vrot.slane %v11824_v10, %v11713_v46  ;;  %9757 = vmatprep.mubr.msk.f32.mxu1 %vm10229_vm0, %v12445_v56  ;;  %v7571_v3 = vadd.f32 %v7570_v36, %v7569_v26 }
0x10b0   :  { %v12033_v44 = vadd.f32 %v12448_v11, %v11920_v45  ;;  %v7578_v47 = vadd.f32 %v7577_v60, %v7576_v4  ;;  %v7584_v58 = vrot.slane %v7583_v28, 2  ;;  %v7590_v54 = vadd.f32 %v7589_v53, %v7588_v17 }
0x10b1   :  { %v7727_v35 = vsel %vm7245_vm8, %v12449_v59, %v11873_v40  ;;  %v7614_v34 = vsel %vm7241_vm14, %v7566_v43, %v7613_v22  ;;  %v12450_v45 = vrot.slane %v11797_v2, %v11713_v46  ;;  %v7909_v7 = vmul.f32 %v11848_v51, %v11814_v24 }
0x10b2   :  { %v12451_v40 = vrot.slane %v11912_v19, 1  ;;  %v7572_v21 = vrot.slane %v7571_v3, 1  ;;  %v7579_v6 = vrot.slane %v7578_v47, 1  ;;  %v7585_v50 = vadd.f32 %v7584_v58, %v7583_v28 }
0x10b3   :  { %v7728_v14 = vsel %vm7247_vm9, %v12450_v45, %v7727_v35  ;;  %v7591_v63 = vrot.slane %v7590_v54, 2  ;;  %v12452_v12 = vrot.slane %v11914_v39, 1  ;;  %v12453_v52 = vrot.slane %v11899_v49, 2 }
0x10b4   :  { %v7916_v8 = vadd.f32 %v12451_v40, %v11912_v19  ;;  %v7934_v9 = vrot.slane %v11901_v30, 2  ;;  %v12454_v51 = vrot.slane %v11881_v57, 4  ;;  %v7573_v23 = vadd.f32 %v7572_v21, %v7571_v3 }
0x10b5   :  { %v7923_v37 = vadd.f32 %v12452_v12, %v11914_v39  ;;  %v7928_v29 = vadd.f32 %v12453_v52, %v11899_v49  ;;  %v7580_v19 = vadd.f32 %v7579_v6, %v7578_v47  ;;  %v7586_v15 = vrot.slane %v7585_v50, 1 }
0x10b6   :  { %v7940_v31 = vadd.f32 %v12454_v51, %v11881_v57  ;;  %v7592_v25 = vadd.f32 %v7591_v63, %v7590_v54  ;;  %v7935_v4 = vadd.f32 %v7934_v9, %v11901_v30  ;;  %v7945_v39 = vsel %vm7164_vm4, %v11891_v62, 0.0 }
0x10b7   :  { %v7929_v26 = vrot.slane %v7928_v29, 1  ;;  %v7587_v1 = vadd.f32 %v7586_v15, %v7585_v50  ;;  %v7615_v49 = vsel %vm7243_vm1, %v7573_v23, %v7614_v34  ;;  %v7946_v17 = vrot.slane %v7945_v39, 4 }
0x10b8   :  { %v7941_v20 = vrot.slane %v7940_v31, 2  ;;  %v7593_v61 = vrot.slane %v7592_v25, 1  ;;  %v7616_v13 = vsel %vm7245_vm8, %v7580_v19, %v7615_v49  ;;  %v7936_v57 = vrot.slane %v7935_v4, 1 }
0x10b9   :  { %v7930_v36 = vadd.f32 %v7929_v26, %v7928_v29  ;;  %v7617_v53 = vsel %vm7247_vm9, %v7587_v1, %v7616_v13  ;;  %v7947_v11 = vadd.f32 %v7946_v17, %v7945_v39  ;;  %v7952_v30 = vsel %vm7164_vm4, %v11897_v32, 0.0 }
0x10ba   :  { %v7942_v60 = vadd.f32 %v7941_v20, %v7940_v31  ;;  %v7594_v28 = vadd.f32 %v7593_v61, %v7592_v25  ;;  %v7937_v43 = vadd.f32 %v7936_v57, %v7935_v4  ;;  %v7953_v62 = vrot.slane %v7952_v30, 4  ;;  %v12460_v4 = vld [vmem:[#allocation13_spill] sm:$0xff] }
0x10bb   :  { %v7959_v59 = vsel %vm7164_vm4, %v7909_v7, 0.0  ;;  %v7948_v3 = vrot.slane %v7947_v11, 2  ;;  %v7983_v58 = vsel %vm7237_vm12, %v7923_v37, %v7916_v8  ;;  %v12455_v54 = vrot.slane %v11931_v38, 2 }
0x10bc   :  { %v7943_v22 = vrot.slane %v7942_v60, 1  ;;  %v7618_v35 = vsel %vm7249_vm10, %v7594_v28, %v7617_v53  ;;  %v7960_v47 = vrot.slane %v7959_v59, 4  ;;  %v7954_v40 = vadd.f32 %v7953_v62, %v7952_v30  ;;  %v12463_v28 = vld [vmem:[#allocation4_spill] sm:$0xff]  ;;  %v12464_v53 = vld [vmem:[#allocation2_spill] sm:$0xff] }
0x10bd   :  { %v8292_v34 = vadd.f32 %v12455_v54, %v11931_v38  ;;  %9769 = vmatmul.mubr.msk.f32.vlgmr.msra.gmra.mrb[86].mxu0 %vm1149_vm6, %v7618_v35  ;;  %v7984_v32 = vsel %vm7239_vm13, %v7930_v36, %v7983_v58  ;;  %v12456_v21 = vpack.c.bf16 %v11693_v5, %v11688_v0  ;;  %v7949_v7 = vadd.f32 %v7948_v3, %v7947_v11 }
0x10be   :  { %v7944_v45 = vadd.f32 %v7943_v22, %v7942_v60  ;;  %9779 = vmatprep.mubr.msk.f32.mxu0 %vm10229_vm0, %v12445_v56  ;;  %v7961_v6 = vadd.f32 %v7960_v47, %v7959_v59  ;;  %v7985_v8 = vsel %vm7241_vm14, %v7937_v43, %v7984_v32  ;;  %v8286_v50 = vrot.slane %v12033_v44, 1 }
0x10bf   :  { %10015 = vmatpush3.bf16.msra.mxu0 %v12456_v21  ;;  %v8278_v38 = vmul.f32 %v11866_v27, %v11824_v10  ;;  %v12457_v63 = vrot.slane %v11814_v24, %v11713_v46  ;;  %v7955_v5 = vrot.slane %v7954_v40, 2  ;;  %v7950_v37 = vrot.slane %v7949_v7, 1 }
0x10c0   :  { %10016 = vmatprep.subr.bf16.mxu0 %v12446_v42  ;;  %v7986_v12 = vsel %vm7243_vm1, %v7944_v45, %v7985_v8  ;;  %v7962_v52 = vrot.slane %v7961_v6, 2  ;;  %v12458_v29 = vrot.slane %v11802_v41, %v11731_v55  ;;  %v8279_v51 = vmul.f32 %v11866_v27, %v11797_v2 }
0x10c1   :  { %v7729_v0 = vsel %vm7249_vm10, %v12457_v63, %v7728_v14  ;;  %v7956_v31 = vadd.f32 %v7955_v5, %v7954_v40  ;;  %v8280_v46 = vmul.f32 %v11866_v27, %v11814_v24  ;;  %v8287_v14 = vadd.f32 %v8286_v50, %v12033_v44  ;;  %v12462_v27 = vld [vmem:[#allocation14_spill] sm:$0xff]  ;;  %v8899_v5 = vld [vmem:[%s12386_s16 + $0x90] sm:$0xff] }
0x10c2   :  { %v8097_v9 = vsel %vm7243_vm1, %v12458_v29, %v11810_v16  ;;  %v8293_v23 = vrot.slane %v8292_v34, 1  ;;  %v12459_v19 = vpack.c.bf16 %v11703_v48, %v11698_v33  ;;  %v7951_v15 = vadd.f32 %v7950_v37, %v7949_v7  ;;  %v12466_v7 = vld [vmem:[#allocation6_spill] sm:$0xff] }
0x10c3   :  { %v7963_v25 = vadd.f32 %v7962_v52, %v7961_v6  ;;  %v8298_v26 = vrot.slane %v11935_v18, 2  ;;  %v12461_v16 = vrot.slane %v12460_v4, 4  ;;  %v7957_v39 = vrot.slane %v7956_v31, 1  ;;  %v12467_v6 = vld [vmem:[#allocation5_spill] sm:$0xff] }
0x10c4   :  { %10018 = vmatpush3.bf16.msra.mxu0 %v12459_v19  ;;  %v8294_v1 = vadd.f32 %v8293_v23, %v8292_v34  ;;  %v8309_v44 = vsel %vm7164_vm4, %v12462_v27, 0.0  ;;  %v8316_v61 = vsel %vm7164_vm4, %v8278_v38, 0.0  ;;  %v7987_v33 = vsel %vm7245_vm8, %v7951_v15, %v7986_v12  ;;  %v8900_v12 = vld [vmem:[%s12386_s16 + $0x98] sm:$0xff]  ;;  %v12475_v27 = vld [vmem:[#allocation12_spill] sm:$0xff] }
0x10c5   :  { %v8304_v20 = vadd.f32 %v12461_v16, %v12460_v4  ;;  %10031 = vmatprep.subr.bf16.mxu0 %v12446_v42  ;;  %v7964_v49 = vrot.slane %v7963_v25, 1  ;;  %v8299_v48 = vadd.f32 %v8298_v26, %v11935_v18  ;;  %v7958_v13 = vadd.f32 %v7957_v39, %v7956_v31  ;;  %v12470_v23 = vld [vmem:[#allocation9_spill] sm:$0xff]  ;;  %v12471_v16 = vld [vmem:[#allocation7_spill] sm:$0xff] }
0x10c6   :  { %v8310_v36 = vrot.slane %v8309_v44, 4  ;;  %v8317_v57 = vrot.slane %v8316_v61, 4  ;;  %v8323_v60 = vsel %vm7164_vm4, %v8279_v51, 0.0  ;;  %v12465_v11 = vpack.c.bf16 %v12463_v28, %v12464_v53  ;;  %v12480_v28 = vld [vmem:[#allocation8_spill] sm:$0xff] }
0x10c7   :  { %v8305_v17 = vrot.slane %v8304_v20, 2  ;;  %9780 = vmatmul.mubr.msk.f32.vlgmr.msra.gmra.mrb[88].mxu0 %vm1149_vm6, %v7729_v0  ;;  %v7965_v30 = vadd.f32 %v7964_v49, %v7963_v25  ;;  %v8300_v43 = vrot.slane %v8299_v48, 1  ;;  %v8324_v62 = vrot.slane %v8323_v60, 4  ;;  %v12478_v49 = vld [vmem:[#allocation3_spill] sm:$0xff] }
0x10c8   :  { %10033 = vmatpush3.bf16.msra.mxu0 %v12465_v11  ;;  %9809 = vmatprep.mubr.msk.f32.mxu0 %vm10229_vm0, %v12445_v56  ;;  %v7988_v18 = vsel %vm7247_vm9, %v7958_v13, %v7987_v33  ;;  %v8311_v59 = vadd.f32 %v8310_v36, %v8309_v44  ;;  %v8318_v35 = vadd.f32 %v8317_v57, %v8316_v61  ;;  %v8330_v3 = vsel %vm7164_vm4, %v8280_v46, 0.0  ;;  %v12476_v44 = vld [vmem:[#allocation11_spill] sm:$0xff]  ;;  %v8924_v13 = vld [vmem:[%s12386_s16 + $0xe0] sm:$0xff] }
0x10c9   :  { %v8306_v22 = vadd.f32 %v8305_v17, %v8304_v20  ;;  %10034 = vmatprep.subr.bf16.mxu0 %v12446_v42  ;;  %v7989_v47 = vsel %vm7249_vm10, %v7965_v30, %v7988_v18  ;;  %v8301_v58 = vadd.f32 %v8300_v43, %v8299_v48  ;;  %v8325_v34 = vadd.f32 %v8324_v62, %v8323_v60  ;;  %v12473_v20 = vld [vmem:[#allocation10_spill] sm:$0xff]  ;;  %v8925_v36 = vld [vmem:[%s12386_s16 + $0xe8] sm:$0xff] }
0x10ca   :  { %v8312_v45 = vrot.slane %v8311_v59, 2  ;;  %v8319_v40 = vrot.slane %v8318_v35, 2  ;;  %v8331_v32 = vrot.slane %v8330_v3, 4  ;;  %v8354_v21 = vsel %vm7237_vm12, %v8294_v1, %v8287_v14 }
0x10cb   :  { %v8307_v54 = vrot.slane %v8306_v22, 1  ;;  %v12468_v8 = vpack.c.bf16 %v12466_v7, %v12467_v6  ;;  %v8089_v50 = vrot.slane %v11797_v2, %v11731_v55  ;;  %v8326_v63 = vrot.slane %v8325_v34, 2  ;;  %v8920_v6 = vld [vmem:[%s12386_s16 + $0xc0] sm:$0xff] }
0x10cc   :  { %v8355_v0 = vsel %vm7239_vm13, %v8301_v58, %v8354_v21  ;;  %v12469_v37 = vrot.slane %v11824_v10, %v11731_v55  ;;  %v8313_v29 = vadd.f32 %v8312_v45, %v8311_v59  ;;  %v8320_v51 = vadd.f32 %v8319_v40, %v8318_v35  ;;  %v8927_v45 = vld [vmem:[%s12386_s16 + $0xf8] sm:$0xff] }
0x10cd   :  { %10036 = vmatpush3.bf16.msra.mxu0 %v12468_v8  ;;  %v8308_v38 = vadd.f32 %v8307_v54, %v8306_v22  ;;  %v8332_v31 = vadd.f32 %v8331_v32, %v8330_v3  ;;  %v8327_v46 = vadd.f32 %v8326_v63, %v8325_v34  ;;  %v8452_v19 = vrot.slane %v11802_v41, %v12470_v23  ;;  %v8926_v34 = vld [vmem:[%s12386_s16 + $0xf0] sm:$0xff]  ;;  %v8921_v8 = vld [vmem:[%s12386_s16 + $0xc8] sm:$0xff]  ;;  %v8923_v63 = vld [vmem:[%s12386_s16 + $0xd8] sm:$0xff] }
0x10ce   :  { %10037 = vmatprep.subr.bf16.mxu0 %v12446_v42  ;;  %v8098_v52 = vsel %vm7245_vm8, %v12469_v37, %v8097_v9  ;;  %v8456_v15 = vrot.slane %v11824_v10, %v12470_v23  ;;  %v8314_v25 = vrot.slane %v8313_v29, 1  ;;  %v8321_v26 = vrot.slane %v8320_v51, 1  ;;  %v7445_v37 = vld [vmem:[%s12389_s18 + $0x10] sm:$0xff] }
0x10cf   :  { %v8356_v14 = vsel %vm7241_vm14, %v8308_v38, %v8355_v0  ;;  %v8333_v4 = vrot.slane %v8332_v31, 2  ;;  %v12472_v9 = vrot.slane %v12471_v16, %v12470_v23  ;;  %v12474_v39 = vrot.slane %v12473_v20, %v12470_v23  ;;  %v8922_v38 = vld [vmem:[%s12386_s16 + $0xd0] sm:$0xff]  ;;  %v8871_v16 = vld [vmem:[%s12390_s17] ss:$0 sm:$0xff] }
0x10d0   :  { %9810 = vmatmul.mubr.msk.f32.vlgmr.msra.gmra.mrb[90].mxu0 %vm1149_vm6, %v7989_v47  ;;  %v12477_v61 = vpack.c.bf16 %v12475_v27, %v12476_v44  ;;  %v10041_v41 = vpack.c.bf16 %v8900_v12, %v8899_v5  ;;  %v8328_v10 = vrot.slane %v8327_v46, 1  ;;  %v12479_v33 = vrot.slane %v12478_v49, %v12470_v23  ;;  %v7443_v5 = vld [vmem:[%s12389_s18] sm:$0xff]  ;;  %v7444_v12 = vld [vmem:[%s12389_s18 + $0x8] sm:$0xff] }
0x10d1   :  { %v8465_v1 = vsel %vm7237_vm12, %v12474_v39, %v12472_v9  ;;  %9820 = vmatprep.mubr.msk.f32.mxu0 %vm10229_vm0, %v12445_v56  ;;  %v8099_v17 = vsel %vm7247_vm9, %v8089_v50, %v8098_v52  ;;  %v8315_v57 = vadd.f32 %v8314_v25, %v8313_v29  ;;  %v8334_v60 = vadd.f32 %v8333_v4, %v8332_v31  ;;  %v7446_v29 = vld [vmem:[%s12389_s18 + $0x18] sm:$0xff]  ;;  %v7447_v31 = vld [vmem:[%s12389_s18 + $0x20] sm:$0xff] }
0x10d2   :  { %10039 = vmatpush3.bf16.msra.mxu0 %v12477_v61  ;;  %v8466_v48 = vsel %vm7239_vm13, %v12479_v33, %v8465_v1  ;;  %v12481_v53 = vrot.slane %v12480_v28, %v12470_v23  ;;  %v8322_v30 = vadd.f32 %v8321_v26, %v8320_v51  ;;  %v8460_v43 = vrot.slane %v11797_v2, %v12470_v23  ;;  %v8886_v39 = vld [vmem:[%s12389_s18 + $0x40] sm:$0xff]  ;;  %v8887_v1 = vld [vmem:[%s12389_s18 + $0x48] sm:$0xff] }
0x10d3   :  { %10040 = vmatprep.subr.bf16.mxu0 %v12446_v42  ;;  %v8464_v22 = vrot.slane %v11814_v24, %v12470_v23  ;;  %v8329_v18 = vadd.f32 %v8328_v10, %v8327_v46  ;;  %v8335_v59 = vrot.slane %v8334_v60, 1  ;;  %v8357_v35 = vsel %vm7243_vm1, %v8315_v57, %v8356_v14  ;;  %v7448_v46 = vld [vmem:[%s12389_s18 + $0x28] sm:$0xff]  ;;  %v7449_v23 = vld [vmem:[%s12389_s18 + $0x30] sm:$0xff]  ;;  %v8889_v10 = vld [vmem:[%s12389_s18 + $0x58] sm:$0xff] }
0x10d4   :  { %v8467_v11 = vsel %vm7241_vm14, %v12481_v53, %v8466_v48  ;;  %v8093_v47 = vrot.slane %v11814_v24, %v11731_v55  ;;  %v10056_v58 = vpack.c.bf16 %v8925_v36, %v8924_v13  ;;  %v8358_v54 = vsel %vm7245_vm8, %v8322_v30, %v8357_v35  ;;  %v8890_v33 = vld [vmem:[%s12389_s18 + $0x60] sm:$0xff]  ;;  %v8891_v48 = vld [vmem:[%s12389_s18 + $0x68] sm:$0xff]  ;;  %v8892_v36 = vld [vmem:[%s12389_s18 + $0x70] sm:$0xff] }
0x10d5   :  { %v8468_v62 = vsel %vm7243_vm1, %v8452_v19, %v8467_v11  ;;  %v8336_v40 = vadd.f32 %v8335_v59, %v8334_v60  ;;  %v8359_v32 = vsel %vm7247_vm9, %v8329_v18, %v8358_v54  ;;  %v10059_v7 = vpack.c.bf16 %v8927_v45, %v8926_v34  ;;  %v7450_v19 = vld [vmem:[%s12389_s18 + $0x38] sm:$0xff]  ;;  %v8885_v11 = vld [vmem:[%s12390_s17 + $0x1] ss:$0 sm:$0xff]  ;;  %v8914_v45 = vld [vmem:[%s12389_s18 + $0xa8] sm:$0xff] }
0x10d6   :  { %v8469_v3 = vsel %vm7245_vm8, %v8456_v15, %v8468_v62  ;;  %10042 = vmatpush3.bf16.msra.mxu0 %v10041_v41  ;;  %v8100_v24 = vsel %vm7249_vm10, %v8093_v47, %v8099_v17  ;;  %v10062_v50 = vpack.c.bf16 %v8921_v8, %v8920_v6  ;;  %v10065_v0 = vpack.c.bf16 %v8923_v63, %v8922_v38  ;;  %v8888_v41 = vld [vmem:[%s12389_s18 + $0x50] sm:$0xff]  ;;  %v8893_v57 = vld [vmem:[%s12389_s18 + $0x78] sm:$0xff]  ;;  %v8910_v62 = vld [vmem:[%s12389_s18 + $0x88] sm:$0xff] }
0x10d7   :  { %v8470_v2 = vsel %vm7247_vm9, %v8460_v43, %v8469_v3  ;;  %10055 = vmatprep.subr.bf16.mxu0 %v12446_v42  ;;  %v8360_v21 = vsel %vm7249_vm10, %v8336_v40, %v8359_v32  ;;  %v9996_v52 = vpack.c.bf16 %v7444_v12, %v7443_v5  ;;  %v9999_v51 = vpack.c.bf16 %v7446_v29, %v7445_v37  ;;  %v8911_v3 = vld [vmem:[%s12389_s18 + $0x90] sm:$0xff]  ;;  %v8912_v47 = vld [vmem:[%s12389_s18 + $0x98] sm:$0xff]  ;;  %v8913_v34 = vld [vmem:[%s12389_s18 + $0xa0] sm:$0xff] }
0x10d8   :  { %v8471_v55 = vsel %vm7249_vm10, %v8464_v22, %v8470_v2  ;;  %v10002_v14 = vpack.c.bf16 %v7448_v46, %v7447_v31  ;;  %v10005_v15 = vpack.c.bf16 %v7450_v19, %v7449_v23  ;;  %v10020_v44 = vpack.c.bf16 %v8887_v1, %v8886_v39  ;;  %v8909_v22 = vld [vmem:[%s12389_s18 + $0x80] sm:$0xff]  ;;  %v8915_v32 = vld [vmem:[%s12389_s18 + $0xb0] sm:$0xff]  ;;  %v8933_v38 = vld [vmem:[%s12389_s18 + $0xc8] sm:$0xff] }
0x10d9   :  { %9821 = vmatmul.mubr.msk.f32.vlgmr.msra.gmra.mrb[92].mxu0 %vm1149_vm6, %v8100_v24  ;;  %9997 = vmatpush3.bf16.msra.mxu1 %v9996_v52  ;;  %v10023_v49 = vpack.c.bf16 %v8889_v10, %v8888_v41  ;;  %v10026_v17 = vpack.c.bf16 %v8891_v48, %v8890_v33  ;;  %v10029_v28 = vpack.c.bf16 %v8893_v57, %v8892_v36  ;;  %v8934_v12 = vld [vmem:[%s12389_s18 + $0xd0] sm:$0xff]  ;;  %v8935_v37 = vld [vmem:[%s12389_s18 + $0xd8] sm:$0xff]  ;;  %v8936_v31 = vld [vmem:[%s12389_s18 + $0xe0] sm:$0xff] }
0x10da   :  { %10057 = vmatpush3.bf16.msra.mxu0 %v10056_v58  ;;  %9850 = vmatprep.mubr.msk.f32.mxu0 %vm10229_vm0, %v12445_v56  ;;  %v10044_v59 = vpack.c.bf16 %v8910_v62, %v8909_v22  ;;  %v10047_v54 = vpack.c.bf16 %v8912_v47, %v8911_v3  ;;  %v10050_v40 = vpack.c.bf16 %v8914_v45, %v8913_v34  ;;  %v8937_v46 = vld [vmem:[%s12389_s18 + $0xe8] sm:$0xff]  ;;  %v8938_v23 = vld [vmem:[%s12389_s18 + $0xf0] sm:$0xff]  ;;  %v8895_v1 = vld [vmem:[%s12391_s19 + $0x1] ss:$0 sm:$0xff] }
0x10db   :  { %10058 = vmatprep.subr.bf16.mxu0 %v12446_v42  ;;  %9998 = vmatprep.subr.bf16.mxu1 %v12446_v42  ;;  %v10071_v29 = vpack.c.bf16 %v8935_v37, %v8934_v12  ;;  %v8941_v33 = vld [vmem:[%s12391_s19 + $0x3] ss:$0 sm:$0xff]  ;;  %v8872_v36 = vld [vmem:[%s12391_s19] ss:$0 sm:$0xff] }
0x10dd   :  { %10000 = vmatpush3.bf16.msra.mxu1 %v9999_v51 }
0x10de   :  { %10060 = vmatpush3.bf16.msra.mxu0 %v10059_v7  ;;  %10001 = vmatprep.subr.bf16.mxu1 %v12446_v42 }
0x10df   :  { %10061 = vmatprep.subr.bf16.mxu0 %v12446_v42 }
0x10e1   :  { %9851 = vmatmul.mubr.msk.f32.vlgmr.msra.gmra.mrb[94].mxu0 %vm1149_vm6, %v8360_v21  ;;  %10003 = vmatpush3.bf16.msra.mxu1 %v10002_v14  ;;  %v8908_v21 = vld [vmem:[%s12390_s17 + $0x2] ss:$0 sm:$0xff]  ;;  %v10074_v14 = vpack.c.bf16 %v8937_v46, %v8936_v31 }
0x10e2   :  { %10063 = vmatpush3.bf16.msra.mxu0 %v10062_v50  ;;  %9861 = vmatprep.mubr.msk.f32.mxu0 %vm10229_vm0, %v12445_v56  ;;  %v8932_v50 = vld [vmem:[%s12389_s18 + $0xc0] sm:$0xff] }
0x10e3   :  { %10064 = vmatprep.subr.bf16.mxu0 %v12446_v42  ;;  %10004 = vmatprep.subr.bf16.mxu1 %v12446_v42 }
0x10e5   :  { %10006 = vmatpush3.bf16.msra.mxu1 %v10005_v15  ;;  %v8931_v15 = vld [vmem:[%s12390_s17 + $0x3] ss:$0 sm:$0xff]  ;;  %s10246_s17 = smov 3  }
0x10e6   :  { %10066 = vmatpush3.bf16.msra.mxu0 %v10065_v0  ;;  %10019 = vmatprep.subr.bf16.mxu1 %v12446_v42  ;;  %v10068_v0 = vpack.c.bf16 %v8933_v38, %v8932_v50 }
0x10e9   :  { %9862 = vmatmul.mubr.msk.f32.vlgmr.msra.gmra.mrb[96].mxu0 %vm1149_vm6, %v8471_v55  ;;  %v8916_v55 = vld [vmem:[%s12389_s18 + $0xb8] sm:$0xff]  ;;  %vm8660_vm6 = vcmask 72704  }
0x10ea   :  { %v10053_v7 = vpack.c.bf16 %v8916_v55, %v8915_v32 }
0x1170   :  { %v7430_v25 = vpop.f32.mrb[84].mxu0 }
0x1171   :  { %v9740_v26 = vpop.f32.mrb[85].mxu0 }
0x1181   :  { %v7319_v4 = vpop.f32.mrb[76].mxu1 }
0x1182   :  { %v7431_v9 = vadd.f32 %v7430_v25, %v7319_v4  ;;  %v9729_v20 = vpop.f32.mrb[77].mxu1 }
0x1184   :  { %v7441_v27 = vadd.f32 %v8871_v16, %v7431_v9 }
0x1186   :  { %v7442_v61 = vmax.f32 %v7441_v27, 0.0 }
0x1188   :  { %9758 = vmatmul.mubr.msk.f32.vlgmr.msra.gmra.mrb[78].mxu1 %vm165_vm2, %v7442_v61 }
0x1189   :  { %10021 = vmatpush3.bf16.msra.mxu1 %v10020_v44  ;;  %9798 = vmatprep.mubr.msk.f32.mxu1 %vm10229_vm0, %v12445_v56 }
0x118a   :  { %10022 = vmatprep.subr.bf16.mxu1 %v12446_v42 }
0x118d   :  { %10024 = vmatpush3.bf16.msra.mxu1 %v10023_v49 }
0x118e   :  { %10025 = vmatprep.subr.bf16.mxu1 %v12446_v42 }
0x1190   :  { %v7687_v13 = vpop.f32.mrb[86].mxu0 }
0x1191   :  { %v9770_v60 = vpop.f32.mrb[87].mxu0  ;;  %10027 = vmatpush3.bf16.msra.mxu1 %v10026_v17 }
0x1192   :  { %10028 = vmatprep.subr.bf16.mxu1 %v12446_v42 }
0x1195   :  { %10030 = vmatpush3.bf16.msra.mxu1 %v10029_v28 }
0x1196   :  { %10043 = vmatprep.subr.bf16.mxu1 %v12446_v42 }
0x119a   :  { %v7798_v53 = vpop.f32.mrb[88].mxu0 }
0x119b   :  { %v7799_v30 = vadd.f32 %v7798_v53, %v7687_v13  ;;  %v9781_v43 = vpop.f32.mrb[89].mxu0 }
0x119d   :  { %v7810_v18 = vadd.f32 %v8885_v11, %v7799_v30 }
0x119f   :  { %v7811_v35 = vmax.f32 %v7810_v18, 0.0 }
0x11a1   :  { %9799 = vmatmul.mubr.msk.f32.vlgmr.msra.gmra.mrb[80].mxu1 %vm165_vm2, %v7811_v35 }
0x11a2   :  { %10045 = vmatpush3.bf16.msra.mxu1 %v10044_v59  ;;  %9839 = vmatprep.mubr.msk.f32.mxu1 %vm10229_vm0, %v12445_v56 }
0x11a3   :  { %v8058_v58 = vpop.f32.mrb[90].mxu0  ;;  %10046 = vmatprep.subr.bf16.mxu1 %v12446_v42 }
0x11a4   :  { %v9811_v2 = vpop.f32.mrb[91].mxu0 }
0x11a6   :  { %10048 = vmatpush3.bf16.msra.mxu1 %v10047_v54 }
0x11a7   :  { %10049 = vmatprep.subr.bf16.mxu1 %v12446_v42 }
0x11aa   :  { %10051 = vmatpush3.bf16.msra.mxu1 %v10050_v40 }
0x11ab   :  { %10052 = vmatprep.subr.bf16.mxu1 %v12446_v42 }
0x11ac   :  { %v8169_v24 = vpop.f32.mrb[92].mxu0 }
0x11ad   :  { %v8170_v6 = vadd.f32 %v8169_v24, %v8058_v58  ;;  %v9822_v8 = vpop.f32.mrb[93].mxu0 }
0x11ae   :  { %10054 = vmatpush3.bf16.msra.mxu1 %v10053_v7 }
0x11af   :  { %v8181_v63 = vadd.f32 %v8908_v21, %v8170_v6  ;;  %10067 = vmatprep.subr.bf16.mxu1 %v12446_v42 }
0x11b1   :  { %v8182_v5 = vmax.f32 %v8181_v63, 0.0 }
0x11b3   :  { %9840 = vmatmul.mubr.msk.f32.vlgmr.msra.gmra.mrb[82].mxu1 %vm165_vm2, %v8182_v5 }
0x11b4   :  { %v8429_v52 = vpop.f32.mrb[94].mxu0  ;;  %10069 = vmatpush3.bf16.msra.mxu1 %v10068_v0  ;;  %9880 = vmatprep.mubr.msk.f32.mxu1 %vm10229_vm0, %v12445_v56  ;;  %v8939_v56 = vld [vmem:[%s12389_s18 + $0xf8] sm:$0xff]  ;;  %vm8656_vm0 = vcmask 23552  }
0x11b5   :  { %v9852_v51 = vpop.f32.mrb[95].mxu0  ;;  %10070 = vmatprep.subr.bf16.mxu1 %v12446_v42  ;;  %v10077_v25 = vpack.c.bf16 %v8939_v56, %v8938_v23 }
0x11b8   :  { %10072 = vmatpush3.bf16.msra.mxu1 %v10071_v29 }
0x11b9   :  { %10073 = vmatprep.subr.bf16.mxu1 %v12446_v42 }
0x11bc   :  { %v8540_v19 = vpop.f32.mrb[96].mxu0  ;;  %10075 = vmatpush3.bf16.msra.mxu1 %v10074_v14 }
0x11bd   :  { %v8541_v26 = vadd.f32 %v8540_v19, %v8429_v52  ;;  %v9863_v4 = vpop.f32.mrb[97].mxu0  ;;  %10076 = vmatprep.subr.bf16.mxu1 %v12446_v42  ;;  %v8918_v42 = vld [vmem:[%s12391_s19 + $0x2] ss:$0 sm:$0xff] }
0x11bf   :  { %v8552_v16 = vadd.f32 %v8931_v15, %v8541_v26 }
0x11c0   :  { %10078 = vmatpush3.bf16.msra.mxu1 %v10077_v25 }
0x11c1   :  { %v8553_v9 = vmax.f32 %v8552_v16, 0.0 }
0x11c3   :  { %9881 = vmatmul.mubr.msk.f32.vlgmr.msra.gmra.mrb[84].mxu1 %vm165_vm2, %v8553_v9  ;;  %vm8658_vm2 = vcmask 48128  }
0x125b   :  { %v7527_v20 = vpop.f32.mrb[78].mxu1 }
0x125c   :  { %v9759_v39 = vpop.f32.mrb[79].mxu1  ;;  %v7528_v60 = vadd.f32 %v8872_v36, %v7527_v20 }
0x1274   :  { %v7898_v27 = vpop.f32.mrb[80].mxu1 }
0x1275   :  { %v7899_v44 = vadd.f32 %v8895_v1, %v7898_v27  ;;  %v9800_v61 = vpop.f32.mrb[81].mxu1 }
0x1277   :  { %8645 = vrot.lane.b32.xlu1 %v7899_v44, %s10246_s17 }
0x1286   :  { %v8269_v41 = vpop.f32.mrb[82].mxu1 }
0x1287   :  { %v8270_v10 = vadd.f32 %v8918_v42, %v8269_v41  ;;  %v9841_v49 = vpop.f32.mrb[83].mxu1 }
0x1289   :  { %8649 = vrot.lane.b32.xlu0 %v8270_v10, %s10247_s21 }
0x1296   :  { %v8640_v48 = vpop.f32.mrb[84].mxu1 }
0x1297   :  { %v8641_v17 = vadd.f32 %v8941_v33, %v8640_v48  ;;  %v9882_v13 = vpop.f32.mrb[85].mxu1 }
0x1299   :  { %8653 = vrot.lane.b32.xlu1 %v8641_v17, %s10248_s23 }
0x12e9   :  { %v8646_v57 = vpop.permute.xlu1 %8645 }
0x12ea   :  { %v8657_v53 = vsel %vm8656_vm0, %v7528_v60, %v8646_v57 }
0x12fb   :  { %v8650_v28 = vpop.permute.xlu0 %8649 }
0x12fc   :  { %v8659_v11 = vsel %vm8658_vm2, %v8657_v53, %v8650_v28 }
0x130b   :  { %v8654_v30 = vpop.permute.xlu1 %8653 }
0x130c   :  { %v8661_v43 = vsel %vm8660_vm6, %v8659_v11, %v8654_v30 }
0x130d   :  { %8663 = vst.msk [vmem:[%s12392_s20] sm:$0xff] %vm8662_vm11, %v8661_v43 }

</bundles_post_ra>
